<compile_context>
chip_gen: v6e
topology: v6e:2x2x1
jax: 0.10.0
libtpu: 0.0.40
codegen_flags: <defaults>
</compile_context>

<pallas_src>
import math

import jax
import jax.numpy as jnp
import numpy as np
from jax.experimental import pallas as pl
from jax.experimental.pallas import tpu as pltpu

LN_EPS = 1e-5

_WEIGHT_ORDER = (
    "wqkv_t", "bqkv", "wout_t", "bout",
    "ln1_g", "ln1_b", "ln2_g", "ln2_b",
    "w1_t", "b1", "w2_t", "b2",
)


def _layernorm(x, gamma, beta):
    mean = jnp.mean(x, axis=-1, keepdims=True)
    var = jnp.mean((x - mean) ** 2, axis=-1, keepdims=True)
    return (x - mean) * jax.lax.rsqrt(var + LN_EPS) * gamma + beta


def _pick_block_batch(B, S):
    """How many sequences to pack per grid step (a divisor of B)."""
    divisors = [d for d in range(1, B + 1) if B % d == 0]
    # keep block row-count a multiple of 8 (sublane rule) unless it is the full extent
    ok = [d for d in divisors if (d * S) % 8 == 0 or d == B]
    if not ok:
        return B
    for d in ok:                                   # smallest block with >=256 MXU rows,
        if d * S >= 256 and (B // d) >= 2:         # keep >=2 grid steps (v7x megacore)
            return d
    for d in ok:
        if d * S >= 256:
            return d
    two_step = [d for d in ok if (B // d) >= 2]
    return two_step[-1] if two_step else ok[-1]


def _weight_spec(shape, single_buffer):
    nd = len(shape)
    index_map = lambda b, _nd=nd: (0,) * _nd      # constant block -> fetched once
    if single_buffer:
        # Weights never change across the grid; don't double-buffer them.
        return pl.BlockSpec(shape, index_map, pipeline_mode=pl.Buffered(1))
    return pl.BlockSpec(shape, index_map)


def _einshape_supported(S, H, Dh):
    """Probe that pltpu.einshape exists and uses head-major grouping."""
    try:
        x = jnp.arange(S * H * Dh, dtype=jnp.float32).reshape(S, H * Dh)

        def probe_kernel(x_ref, o_ref):
            o_ref[...] = pltpu.einshape("s(hd)->hsd", x_ref[...], h=H, d=Dh)

        y = pl.pallas_call(
            probe_kernel,
            out_shape=jax.ShapeDtypeStruct((H, S, Dh), jnp.float32),
        )(x)
        expect = x.reshape(S, H, Dh).transpose(1, 0, 2)
        return bool(jnp.allclose(y, expect))
    except Exception:
        return False


def _make_kernel(S, D, H, Bt, head_mode):
    """head_mode: 'einshape' | 'stack' | 'loop' (decreasingly optimized)."""
    Dh = D // H
    scale = 1.0 / math.sqrt(Dh)
    bf16 = jnp.bfloat16

    def split_heads(t2d):                     # (S, D) f32 -> (H, S, Dh) f32
        if head_mode == "einshape":
            return pltpu.einshape("s(hd)->hsd", t2d, h=H, d=Dh)
        return jnp.stack([t2d[:, h * Dh:(h + 1) * Dh] for h in range(H)], axis=0)

    def merge_heads(t3d):                     # (H, S, Dh) f32 -> (S, D) f32
        if head_mode == "einshape":
            return pltpu.einshape("hsd->s(hd)", t3d)
        return jnp.concatenate([t3d[h] for h in range(H)], axis=-1)

    def attend(q2, k2, v2, bias_row):         # (S,D)x3 f32, (1,S) f32 -> (S,D) f32
        if head_mode == "loop":
            # Last-resort formulation (previously proven on hardware).
            outs = []
            for h in range(H):
                qh = q2[:, h * Dh:(h + 1) * Dh].astype(bf16)
                kh = k2[:, h * Dh:(h + 1) * Dh].astype(bf16)
                vh = v2[:, h * Dh:(h + 1) * Dh].astype(bf16)
                s = jnp.dot(qh, kh.T, preferred_element_type=jnp.float32) * scale
                s = s + bias_row
                s = s - jnp.max(s, axis=-1, keepdims=True)
                p = jnp.exp(s)
                p = p * pl.reciprocal(jnp.sum(p, axis=-1, keepdims=True), approx=True)
                outs.append(jnp.dot(p.astype(bf16), vh,
                                    preferred_element_type=jnp.float32))
            return jnp.concatenate(outs, axis=-1)

        # Head-batched attention: one einsum over all heads.
        qh = split_heads(q2).astype(bf16)
        kh = split_heads(k2).astype(bf16)
        vh = split_heads(v2).astype(bf16)
        s = jnp.einsum("hqd,hkd->hqk", qh, kh,
                       preferred_element_type=jnp.float32) * scale
        s = s + bias_row.reshape(1, 1, S)
        s = s - jnp.max(s, axis=-1, keepdims=True)
        p = jnp.exp(s)
        p = p * pl.reciprocal(jnp.sum(p, axis=-1, keepdims=True), approx=True)
        ctx = jnp.einsum("hqk,hkd->hqd", p.astype(bf16), vh,
                         preferred_element_type=jnp.float32)
        return merge_heads(ctx)

    def kernel(x_ref, maskb_ref, wqkv_ref, bqkv_ref, wout_ref, bout_ref,
               g1_ref, be1_ref, g2_ref, be2_ref, w1_ref, bf1_ref, w2_ref, bf2_ref,
               o_ref):
        x = x_ref[...]                        # (Bt*S, D) f32 — Bt sequences, row-stacked
        mask3 = maskb_ref[...]                # (Bt, 1, S) additive key bias

        # ---------------- self-attention block (norm_first) ----------------
        xn = _layernorm(x, g1_ref[...], be1_ref[...])
        qkv = (jnp.dot(xn.astype(bf16), wqkv_ref[...],
                       preferred_element_type=jnp.float32) + bqkv_ref[...])
        q = qkv[:, 0:D]
        k = qkv[:, D:2 * D]
        v = qkv[:, 2 * D:3 * D]

        ctx_rows = []
        for b in range(Bt):                   # attention never mixes sequences
            rows = slice(b * S, (b + 1) * S)
            ctx_rows.append(attend(q[rows], k[rows], v[rows], mask3[b]))
        ctx = ctx_rows[0] if Bt == 1 else jnp.concatenate(ctx_rows, axis=0)

        attn = (jnp.dot(ctx.astype(bf16), wout_ref[...],
                        preferred_element_type=jnp.float32) + bout_ref[...])
        x1 = x + attn

        # ---------------- feed-forward block (norm_first) ----------------
        xn2 = _layernorm(x1, g2_ref[...], be2_ref[...])
        h1 = (jnp.dot(xn2.astype(bf16), w1_ref[...],
                      preferred_element_type=jnp.float32) + bf1_ref[...])
        h1 = jnp.maximum(h1, 0.0)             # ReLU
        ff = (jnp.dot(h1.astype(bf16), w2_ref[...],
                      preferred_element_type=jnp.float32) + bf2_ref[...])
        y = x1 + ff

        # torch.nan_to_num semantics: nan->0, +inf->f32max, -inf->f32min
        y = jnp.where(jnp.isnan(y), 0.0, y)
        y = jnp.clip(y, jnp.finfo(jnp.float32).min, jnp.finfo(jnp.float32).max)
        o_ref[...] = y

    return kernel


def _build_call(B, S, D, n_heads, Bt, head_mode, single_buffer, weights):
    kernel = _make_kernel(S, D, n_heads, Bt, head_mode)
    in_specs = [
        pl.BlockSpec((Bt * S, D), lambda b: (b, 0)),      # activation rows
        pl.BlockSpec((Bt, 1, S), lambda b: (b, 0, 0)),    # additive key bias
    ] + [_weight_spec(w.shape, single_buffer) for w in weights]
    return pl.pallas_call(
        kernel,
        out_shape=jax.ShapeDtypeStruct((B * S, D), jnp.float32),
        grid_spec=pltpu.PrefetchScalarGridSpec(
            num_scalar_prefetch=0,
            grid=(B // Bt,),
            in_specs=in_specs,
            out_specs=pl.BlockSpec((Bt * S, D), lambda b: (b, 0)),
        ),
        compiler_params=pltpu.CompilerParams(
            dimension_semantics=("parallel",),
            vmem_limit_bytes=64 * 1024 * 1024,
        ),
    )


def init_params(key, d_model, dim_feedforward=2048):
    ks = jax.random.split(key, 4)
    scale = 0.02

    def w(k, shape):  # weights stored bf16 (MXU operands); biases / LN stay f32
        return (scale * jax.random.normal(k, shape, jnp.float32)).astype(jnp.bfloat16)

    return {
        # stored already transposed for y = x @ W_t + b
        "wqkv_t": w(ks[0], (d_model, 3 * d_model)),
        "bqkv": jnp.zeros((1, 3 * d_model), jnp.float32),
        "wout_t": w(ks[1], (d_model, d_model)),
        "bout": jnp.zeros((1, d_model), jnp.float32),
        "ln1_g": jnp.ones((1, d_model), jnp.float32),
        "ln1_b": jnp.zeros((1, d_model), jnp.float32),
        "ln2_g": jnp.ones((1, d_model), jnp.float32),
        "ln2_b": jnp.zeros((1, d_model), jnp.float32),
        "w1_t": w(ks[2], (d_model, dim_feedforward)),
        "b1": jnp.zeros((1, dim_feedforward), jnp.float32),
        "w2_t": w(ks[3], (dim_feedforward, d_model)),
        "b2": jnp.zeros((1, d_model), jnp.float32),
    }


def safe_enc_layer(x, params, *, n_heads, key_padding_mask=None, noise_key=None):
    """x: (B, S, D) float32. key_padding_mask: (B, S) bool, True == padded."""
    B, S, D = x.shape
    assert D % n_heads == 0
    x = x.astype(jnp.float32)

    # x = x + 1e-5 * randn_like(x)   (plain-JAX glue)
    if noise_key is not None:
        x = x + 1e-5 * jax.random.normal(noise_key, x.shape, jnp.float32)

    if key_padding_mask is None:
        maskb = jnp.zeros((B, 1, S), jnp.float32)
    else:
        maskb = jnp.where(key_padding_mask, -1e9, 0.0).astype(jnp.float32)
        maskb = maskb.reshape(B, 1, S)

    Bt = _pick_block_batch(B, S)
    x_flat = x.reshape(B * S, D)                      # lane-dense row slab
    weights = [params[k] for k in _WEIGHT_ORDER]

    head_mode = "einshape" if _einshape_supported(S, n_heads, D // n_heads) else "stack"
    # Graceful degradation ladder: full optimization first, proven baseline last.
    attempts = ((head_mode, True), (head_mode, False), ("loop", False))
    last_err = None
    for mode, single_buffer in attempts:
        try:
            y_flat = _build_call(B, S, D, n_heads, Bt, mode, single_buffer,
                                 weights)(x_flat, maskb, *weights)
            return y_flat.reshape(B, S, D)
        except Exception as err:  # feature unavailable on this jax build -> next config
            last_err = err
    raise last_err


def _reference(x, params, *, n_heads, key_padding_mask=None, noise_key=None):
    """Pure-JAX reference of the pre-norm encoder layer (f32 math)."""
    x = x.astype(jnp.float32)
    if noise_key is not None:
        x = x + 1e-5 * jax.random.normal(noise_key, x.shape, jnp.float32)
    B, S, D = x.shape
    H, Dh = n_heads, D // n_heads

    def ln(z, g, b):
        m = z.mean(-1, keepdims=True)
        v = ((z - m) ** 2).mean(-1, keepdims=True)
        return (z - m) / jnp.sqrt(v + LN_EPS) * g + b

    f32 = lambda a: a.astype(jnp.float32)
    xn = ln(x, params["ln1_g"][0], params["ln1_b"][0])
    qkv = xn @ f32(params["wqkv_t"]) + params["bqkv"][0]
    q, k, v = qkv[..., :D], qkv[..., D:2 * D], qkv[..., 2 * D:]
    q = q.reshape(B, S, H, Dh).transpose(0, 2, 1, 3)
    k = k.reshape(B, S, H, Dh).transpose(0, 2, 1, 3)
    v = v.reshape(B, S, H, Dh).transpose(0, 2, 1, 3)
    s = jnp.einsum("bhqd,bhkd->bhqk", q, k) / math.sqrt(Dh)
    if key_padding_mask is not None:
        s = s + jnp.where(key_padding_mask, -1e9, 0.0)[:, None, None, :]
    p = jax.nn.softmax(s, axis=-1)
    ctx = jnp.einsum("bhqk,bhkd->bhqd", p, v).transpose(0, 2, 1, 3).reshape(B, S, D)
    attn = ctx @ f32(params["wout_t"]) + params["bout"][0]
    x1 = x + attn
    xn2 = ln(x1, params["ln2_g"][0], params["ln2_b"][0])
    h1 = jax.nn.relu(xn2 @ f32(params["w1_t"]) + params["b1"][0])
    ff = h1 @ f32(params["w2_t"]) + params["b2"][0]
    return jnp.nan_to_num(x1 + ff)


if __name__ == "__main__":
    d_model, n_heads = 32, 4
    B, S = 2, 8

    key = jax.random.PRNGKey(0)
    k_params, k_x, k_noise = jax.random.split(key, 3)

    params = init_params(k_params, d_model)
    x = jax.random.normal(k_x, (B, S, d_model), jnp.float32)

    # key_padding_mask: True == padded.  Batch 1 has its last 2 tokens padded.
    key_padding_mask = jnp.zeros((B, S), dtype=bool).at[1, -2:].set(True)

    y = safe_enc_layer(
        x, params,
        n_heads=n_heads,
        key_padding_mask=key_padding_mask,
        noise_key=k_noise,
    )
    jax.block_until_ready(y)

    assert y.shape == (B, S, d_model) and y.dtype == jnp.float32
    assert bool(jnp.isfinite(y).all())

    y_ref = _reference(
        x, params,
        n_heads=n_heads,
        key_padding_mask=key_padding_mask,
        noise_key=k_noise,
    )
    np.testing.assert_allclose(np.asarray(y), np.asarray(y_ref), atol=2e-2, rtol=2e-2)

    print("KERNEL_OK")
</pallas_src>

<mosaic_0001>
module attributes {stable_mosaic.version = 11 : i64} {
  func.func @kernel(%arg0: i32, %arg1: memref<8x32xf32, #tpu.memory_space<vmem>>, %arg2: memref<1x1x8xf32, #tpu.memory_space<vmem>>, %arg3: memref<32x96xbf16, #tpu.memory_space<vmem>>, %arg4: memref<1x96xf32, #tpu.memory_space<vmem>>, %arg5: memref<32x32xbf16, #tpu.memory_space<vmem>>, %arg6: memref<1x32xf32, #tpu.memory_space<vmem>>, %arg7: memref<1x32xf32, #tpu.memory_space<vmem>>, %arg8: memref<1x32xf32, #tpu.memory_space<vmem>>, %arg9: memref<1x32xf32, #tpu.memory_space<vmem>>, %arg10: memref<1x32xf32, #tpu.memory_space<vmem>>, %arg11: memref<32x2048xbf16, #tpu.memory_space<vmem>>, %arg12: memref<1x2048xf32, #tpu.memory_space<vmem>>, %arg13: memref<2048x32xbf16, #tpu.memory_space<vmem>>, %arg14: memref<1x32xf32, #tpu.memory_space<vmem>>, %arg15: memref<8x32xf32, #tpu.memory_space<vmem>>) attributes {dimension_semantics = [#tpu.dimension_semantics<parallel>], iteration_bounds = array<i64: 2>, scalar_prefetch = 0 : i64, scratch_operands = 0 : i64, tpu.core_type = #tpu.core_type<tc>, window_params = [{transform_indices = @transform_0, window_bounds = array<i64: 8, 32>}, {transform_indices = @transform_1, window_bounds = array<i64: 1, 1, 8>}, {pipeline_mode = #tpu.pipeline_mode<synchronous>, transform_indices = @transform_2, window_bounds = array<i64: 32, 96>}, {pipeline_mode = #tpu.pipeline_mode<synchronous>, transform_indices = @transform_3, window_bounds = array<i64: 1, 96>}, {pipeline_mode = #tpu.pipeline_mode<synchronous>, transform_indices = @transform_4, window_bounds = array<i64: 32, 32>}, {pipeline_mode = #tpu.pipeline_mode<synchronous>, transform_indices = @transform_5, window_bounds = array<i64: 1, 32>}, {pipeline_mode = #tpu.pipeline_mode<synchronous>, transform_indices = @transform_6, window_bounds = array<i64: 1, 32>}, {pipeline_mode = #tpu.pipeline_mode<synchronous>, transform_indices = @transform_7, window_bounds = array<i64: 1, 32>}, {pipeline_mode = #tpu.pipeline_mode<synchronous>, transform_indices = @transform_8, window_bounds = array<i64: 1, 32>}, {pipeline_mode = #tpu.pipeline_mode<synchronous>, transform_indices = @transform_9, window_bounds = array<i64: 1, 32>}, {pipeline_mode = #tpu.pipeline_mode<synchronous>, transform_indices = @transform_10, window_bounds = array<i64: 32, 2048>}, {pipeline_mode = #tpu.pipeline_mode<synchronous>, transform_indices = @transform_11, window_bounds = array<i64: 1, 2048>}, {pipeline_mode = #tpu.pipeline_mode<synchronous>, transform_indices = @transform_12, window_bounds = array<i64: 2048, 32>}, {pipeline_mode = #tpu.pipeline_mode<synchronous>, transform_indices = @transform_13, window_bounds = array<i64: 1, 32>}, {transform_indices = @transform_14, window_bounds = array<i64: 8, 32>}]} {
    %c0 = arith.constant 0 : index
    %c0_0 = arith.constant 0 : index
    %0 = vector.load %arg1[%c0, %c0_0] : memref<8x32xf32, #tpu.memory_space<vmem>>, vector<8x32xf32>
    %c0_1 = arith.constant 0 : index
    %c0_2 = arith.constant 0 : index
    %c0_3 = arith.constant 0 : index
    %1 = vector.load %arg2[%c0_1, %c0_2, %c0_3] : memref<1x1x8xf32, #tpu.memory_space<vmem>>, vector<1x1x8xf32>
    %c0_4 = arith.constant 0 : index
    %c0_5 = arith.constant 0 : index
    %2 = vector.load %arg7[%c0_4, %c0_5] : memref<1x32xf32, #tpu.memory_space<vmem>>, vector<1x32xf32>
    %c0_6 = arith.constant 0 : index
    %c0_7 = arith.constant 0 : index
    %3 = vector.load %arg8[%c0_6, %c0_7] : memref<1x32xf32, #tpu.memory_space<vmem>>, vector<1x32xf32>
    %cst = arith.constant dense<0.000000e+00> : vector<8xf32>
    %4 = vector.multi_reduction <add>, %0, %cst [1] : vector<8x32xf32> to vector<8xf32>
    %5 = vector.shape_cast %4 : vector<8xf32> to vector<8x1xf32>
    %cst_8 = arith.constant 3.200000e+01 : f32
    %6 = vector.broadcast %cst_8 : f32 to vector<8x1xf32>
    %7 = arith.divf %5, %6 : vector<8x1xf32>
    %8 = vector.broadcast %7 : vector<8x1xf32> to vector<8x32xf32>
    %9 = arith.subf %0, %8 : vector<8x32xf32>
    %10 = arith.mulf %9, %9 : vector<8x32xf32>
    %cst_9 = arith.constant dense<0.000000e+00> : vector<8xf32>
    %11 = vector.multi_reduction <add>, %10, %cst_9 [1] : vector<8x32xf32> to vector<8xf32>
    %12 = vector.shape_cast %11 : vector<8xf32> to vector<8x1xf32>
    %cst_10 = arith.constant 3.200000e+01 : f32
    %13 = vector.broadcast %cst_10 : f32 to vector<8x1xf32>
    %14 = arith.divf %12, %13 : vector<8x1xf32>
    %15 = vector.broadcast %7 : vector<8x1xf32> to vector<8x32xf32>
    %16 = arith.subf %0, %15 : vector<8x32xf32>
    %cst_11 = arith.constant 9.99999974E-6 : f32
    %17 = vector.broadcast %cst_11 : f32 to vector<8x1xf32>
    %18 = arith.addf %14, %17 : vector<8x1xf32>
    %19 = math.rsqrt %18 : vector<8x1xf32>
    %20 = vector.broadcast %19 : vector<8x1xf32> to vector<8x32xf32>
    %21 = arith.mulf %16, %20 : vector<8x32xf32>
    %22 = vector.broadcast %2 : vector<1x32xf32> to vector<8x32xf32>
    %23 = arith.mulf %21, %22 : vector<8x32xf32>
    %24 = vector.broadcast %3 : vector<1x32xf32> to vector<8x32xf32>
    %25 = arith.addf %23, %24 : vector<8x32xf32>
    %26 = arith.truncf %25 : vector<8x32xf32> to vector<8x32xbf16>
    %c0_12 = arith.constant 0 : index
    %c0_13 = arith.constant 0 : index
    %27 = vector.load %arg3[%c0_12, %c0_13] : memref<32x96xbf16, #tpu.memory_space<vmem>>, vector<32x96xbf16>
    %cst_14 = arith.constant dense<0.000000e+00> : vector<8x96xf32>
    %28 = tpu.matmul %26, %27, %cst_14 {dimension_numbers = #tpu.dot_dimension_numbers<[1], [0], [0], [1], [0, 0, 1, 1], [], []>} : vector<8x32xbf16>, vector<32x96xbf16>, vector<8x96xf32> -> vector<8x96xf32>
    %c0_15 = arith.constant 0 : index
    %c0_16 = arith.constant 0 : index
    %29 = vector.load %arg4[%c0_15, %c0_16] : memref<1x96xf32, #tpu.memory_space<vmem>>, vector<1x96xf32>
    %30 = vector.broadcast %29 : vector<1x96xf32> to vector<8x96xf32>
    %31 = arith.addf %28, %30 : vector<8x96xf32>
    %32 = vector.extract_strided_slice %31 {offsets = [0, 0], sizes = [8, 32], strides = [1, 1]} : vector<8x96xf32> to vector<8x32xf32>
    %33 = vector.extract_strided_slice %31 {offsets = [0, 32], sizes = [8, 32], strides = [1, 1]} : vector<8x96xf32> to vector<8x32xf32>
    %34 = vector.extract_strided_slice %31 {offsets = [0, 64], sizes = [8, 32], strides = [1, 1]} : vector<8x96xf32> to vector<8x32xf32>
    %35 = vector.shape_cast %1 : vector<1x1x8xf32> to vector<1x8xf32>
    %36 = vector.extract_strided_slice %32 {offsets = [0, 0], sizes = [8, 8], strides = [1, 1]} : vector<8x32xf32> to vector<8x8xf32>
    %37 = vector.extract_strided_slice %32 {offsets = [0, 8], sizes = [8, 8], strides = [1, 1]} : vector<8x32xf32> to vector<8x8xf32>
    %38 = vector.extract_strided_slice %32 {offsets = [0, 16], sizes = [8, 8], strides = [1, 1]} : vector<8x32xf32> to vector<8x8xf32>
    %39 = vector.extract_strided_slice %32 {offsets = [0, 24], sizes = [8, 8], strides = [1, 1]} : vector<8x32xf32> to vector<8x8xf32>
    %40 = vector.shape_cast %36 : vector<8x8xf32> to vector<1x8x8xf32>
    %41 = vector.shape_cast %37 : vector<8x8xf32> to vector<1x8x8xf32>
    %42 = vector.shape_cast %38 : vector<8x8xf32> to vector<1x8x8xf32>
    %43 = vector.shape_cast %39 : vector<8x8xf32> to vector<1x8x8xf32>
    %44 = tpu.concatenate %40, %41, %42, %43 in 0 : vector<1x8x8xf32>, vector<1x8x8xf32>, vector<1x8x8xf32>, vector<1x8x8xf32> -> vector<4x8x8xf32>
    %45 = arith.truncf %44 : vector<4x8x8xf32> to vector<4x8x8xbf16>
    %46 = vector.extract_strided_slice %33 {offsets = [0, 0], sizes = [8, 8], strides = [1, 1]} : vector<8x32xf32> to vector<8x8xf32>
    %47 = vector.extract_strided_slice %33 {offsets = [0, 8], sizes = [8, 8], strides = [1, 1]} : vector<8x32xf32> to vector<8x8xf32>
    %48 = vector.extract_strided_slice %33 {offsets = [0, 16], sizes = [8, 8], strides = [1, 1]} : vector<8x32xf32> to vector<8x8xf32>
    %49 = vector.extract_strided_slice %33 {offsets = [0, 24], sizes = [8, 8], strides = [1, 1]} : vector<8x32xf32> to vector<8x8xf32>
    %50 = vector.shape_cast %46 : vector<8x8xf32> to vector<1x8x8xf32>
    %51 = vector.shape_cast %47 : vector<8x8xf32> to vector<1x8x8xf32>
    %52 = vector.shape_cast %48 : vector<8x8xf32> to vector<1x8x8xf32>
    %53 = vector.shape_cast %49 : vector<8x8xf32> to vector<1x8x8xf32>
    %54 = tpu.concatenate %50, %51, %52, %53 in 0 : vector<1x8x8xf32>, vector<1x8x8xf32>, vector<1x8x8xf32>, vector<1x8x8xf32> -> vector<4x8x8xf32>
    %55 = arith.truncf %54 : vector<4x8x8xf32> to vector<4x8x8xbf16>
    %56 = vector.extract_strided_slice %34 {offsets = [0, 0], sizes = [8, 8], strides = [1, 1]} : vector<8x32xf32> to vector<8x8xf32>
    %57 = vector.extract_strided_slice %34 {offsets = [0, 8], sizes = [8, 8], strides = [1, 1]} : vector<8x32xf32> to vector<8x8xf32>
    %58 = vector.extract_strided_slice %34 {offsets = [0, 16], sizes = [8, 8], strides = [1, 1]} : vector<8x32xf32> to vector<8x8xf32>
    %59 = vector.extract_strided_slice %34 {offsets = [0, 24], sizes = [8, 8], strides = [1, 1]} : vector<8x32xf32> to vector<8x8xf32>
    %60 = vector.shape_cast %56 : vector<8x8xf32> to vector<1x8x8xf32>
    %61 = vector.shape_cast %57 : vector<8x8xf32> to vector<1x8x8xf32>
    %62 = vector.shape_cast %58 : vector<8x8xf32> to vector<1x8x8xf32>
    %63 = vector.shape_cast %59 : vector<8x8xf32> to vector<1x8x8xf32>
    %64 = tpu.concatenate %60, %61, %62, %63 in 0 : vector<1x8x8xf32>, vector<1x8x8xf32>, vector<1x8x8xf32>, vector<1x8x8xf32> -> vector<4x8x8xf32>
    %65 = arith.truncf %64 : vector<4x8x8xf32> to vector<4x8x8xbf16>
    "tpu.trace_start"() <{level = 10 : i32, message = "hqd,hkd->hqk"}> : () -> ()
    %cst_17 = arith.constant dense<0.000000e+00> : vector<4x8x8xf32>
    %66 = tpu.matmul %45, %55, %cst_17 {dimension_numbers = #tpu.dot_dimension_numbers<[2], [2], [1], [1], [0, 0, 0, 1, 1, 1], [0], [0]>} : vector<4x8x8xbf16>, vector<4x8x8xbf16>, vector<4x8x8xf32> -> vector<4x8x8xf32>
    "tpu.trace_stop"() : () -> ()
    %cst_18 = arith.constant 0.353553385 : f32
    %67 = vector.broadcast %cst_18 : f32 to vector<4x8x8xf32>
    %68 = arith.mulf %66, %67 : vector<4x8x8xf32>
    %69 = vector.shape_cast %35 : vector<1x8xf32> to vector<1x1x8xf32>
    %70 = vector.broadcast %69 : vector<1x1x8xf32> to vector<4x8x8xf32>
    %71 = arith.addf %68, %70 : vector<4x8x8xf32>
    %cst_19 = arith.constant dense<0xFF800000> : vector<4x8xf32>
    %72 = vector.multi_reduction <maximumf>, %71, %cst_19 [2] : vector<4x8x8xf32> to vector<4x8xf32>
    %73 = vector.shape_cast %72 : vector<4x8xf32> to vector<4x8x1xf32>
    %74 = vector.broadcast %73 : vector<4x8x1xf32> to vector<4x8x8xf32>
    %75 = arith.subf %71, %74 : vector<4x8x8xf32>
    %76 = math.exp %75 : vector<4x8x8xf32>
    %cst_20 = arith.constant dense<0.000000e+00> : vector<4x8xf32>
    %77 = vector.multi_reduction <add>, %76, %cst_20 [2] : vector<4x8x8xf32> to vector<4x8xf32>
    %78 = vector.shape_cast %77 : vector<4x8xf32> to vector<4x8x1xf32>
    %79 = tpu.reciprocal %78 {approx = true} : vector<4x8x1xf32> -> vector<4x8x1xf32>
    %80 = vector.broadcast %79 : vector<4x8x1xf32> to vector<4x8x8xf32>
    %81 = arith.mulf %76, %80 : vector<4x8x8xf32>
    %82 = arith.truncf %81 : vector<4x8x8xf32> to vector<4x8x8xbf16>
    "tpu.trace_start"() <{level = 10 : i32, message = "hqk,hkd->hqd"}> : () -> ()
    %cst_21 = arith.constant dense<0.000000e+00> : vector<4x8x8xf32>
    %83 = tpu.matmul %82, %65, %cst_21 {dimension_numbers = #tpu.dot_dimension_numbers<[2], [1], [1], [2], [0, 0, 0, 1, 1, 2], [0], [0]>} : vector<4x8x8xbf16>, vector<4x8x8xbf16>, vector<4x8x8xf32> -> vector<4x8x8xf32>
    "tpu.trace_stop"() : () -> ()
    %84 = vector.extract_strided_slice %83 {offsets = [0, 0, 0], sizes = [1, 8, 8], strides = [1, 1, 1]} : vector<4x8x8xf32> to vector<1x8x8xf32>
    %85 = vector.shape_cast %84 : vector<1x8x8xf32> to vector<8x8xf32>
    %86 = vector.extract_strided_slice %83 {offsets = [1, 0, 0], sizes = [1, 8, 8], strides = [1, 1, 1]} : vector<4x8x8xf32> to vector<1x8x8xf32>
    %87 = vector.shape_cast %86 : vector<1x8x8xf32> to vector<8x8xf32>
    %88 = vector.extract_strided_slice %83 {offsets = [2, 0, 0], sizes = [1, 8, 8], strides = [1, 1, 1]} : vector<4x8x8xf32> to vector<1x8x8xf32>
    %89 = vector.shape_cast %88 : vector<1x8x8xf32> to vector<8x8xf32>
    %90 = vector.extract_strided_slice %83 {offsets = [3, 0, 0], sizes = [1, 8, 8], strides = [1, 1, 1]} : vector<4x8x8xf32> to vector<1x8x8xf32>
    %91 = vector.shape_cast %90 : vector<1x8x8xf32> to vector<8x8xf32>
    %92 = tpu.concatenate %85, %87, %89, %91 in 1 : vector<8x8xf32>, vector<8x8xf32>, vector<8x8xf32>, vector<8x8xf32> -> vector<8x32xf32>
    %93 = arith.truncf %92 : vector<8x32xf32> to vector<8x32xbf16>
    %c0_22 = arith.constant 0 : index
    %c0_23 = arith.constant 0 : index
    %94 = vector.load %arg5[%c0_22, %c0_23] : memref<32x32xbf16, #tpu.memory_space<vmem>>, vector<32x32xbf16>
    %cst_24 = arith.constant dense<0.000000e+00> : vector<8x32xf32>
    %95 = tpu.matmul %93, %94, %cst_24 {dimension_numbers = #tpu.dot_dimension_numbers<[1], [0], [0], [1], [0, 0, 1, 1], [], []>} : vector<8x32xbf16>, vector<32x32xbf16>, vector<8x32xf32> -> vector<8x32xf32>
    %c0_25 = arith.constant 0 : index
    %c0_26 = arith.constant 0 : index
    %96 = vector.load %arg6[%c0_25, %c0_26] : memref<1x32xf32, #tpu.memory_space<vmem>>, vector<1x32xf32>
    %97 = vector.broadcast %96 : vector<1x32xf32> to vector<8x32xf32>
    %98 = arith.addf %95, %97 : vector<8x32xf32>
    %99 = arith.addf %0, %98 : vector<8x32xf32>
    %c0_27 = arith.constant 0 : index
    %c0_28 = arith.constant 0 : index
    %100 = vector.load %arg9[%c0_27, %c0_28] : memref<1x32xf32, #tpu.memory_space<vmem>>, vector<1x32xf32>
    %c0_29 = arith.constant 0 : index
    %c0_30 = arith.constant 0 : index
    %101 = vector.load %arg10[%c0_29, %c0_30] : memref<1x32xf32, #tpu.memory_space<vmem>>, vector<1x32xf32>
    %cst_31 = arith.constant dense<0.000000e+00> : vector<8xf32>
    %102 = vector.multi_reduction <add>, %99, %cst_31 [1] : vector<8x32xf32> to vector<8xf32>
    %103 = vector.shape_cast %102 : vector<8xf32> to vector<8x1xf32>
    %cst_32 = arith.constant 3.200000e+01 : f32
    %104 = vector.broadcast %cst_32 : f32 to vector<8x1xf32>
    %105 = arith.divf %103, %104 : vector<8x1xf32>
    %106 = vector.broadcast %105 : vector<8x1xf32> to vector<8x32xf32>
    %107 = arith.subf %99, %106 : vector<8x32xf32>
    %108 = arith.mulf %107, %107 : vector<8x32xf32>
    %cst_33 = arith.constant dense<0.000000e+00> : vector<8xf32>
    %109 = vector.multi_reduction <add>, %108, %cst_33 [1] : vector<8x32xf32> to vector<8xf32>
    %110 = vector.shape_cast %109 : vector<8xf32> to vector<8x1xf32>
    %cst_34 = arith.constant 3.200000e+01 : f32
    %111 = vector.broadcast %cst_34 : f32 to vector<8x1xf32>
    %112 = arith.divf %110, %111 : vector<8x1xf32>
    %113 = vector.broadcast %105 : vector<8x1xf32> to vector<8x32xf32>
    %114 = arith.subf %99, %113 : vector<8x32xf32>
    %cst_35 = arith.constant 9.99999974E-6 : f32
    %115 = vector.broadcast %cst_35 : f32 to vector<8x1xf32>
    %116 = arith.addf %112, %115 : vector<8x1xf32>
    %117 = math.rsqrt %116 : vector<8x1xf32>
    %118 = vector.broadcast %117 : vector<8x1xf32> to vector<8x32xf32>
    %119 = arith.mulf %114, %118 : vector<8x32xf32>
    %120 = vector.broadcast %100 : vector<1x32xf32> to vector<8x32xf32>
    %121 = arith.mulf %119, %120 : vector<8x32xf32>
    %122 = vector.broadcast %101 : vector<1x32xf32> to vector<8x32xf32>
    %123 = arith.addf %121, %122 : vector<8x32xf32>
    %124 = arith.truncf %123 : vector<8x32xf32> to vector<8x32xbf16>
    %c0_36 = arith.constant 0 : index
    %c0_37 = arith.constant 0 : index
    %125 = vector.load %arg11[%c0_36, %c0_37] : memref<32x2048xbf16, #tpu.memory_space<vmem>>, vector<32x2048xbf16>
    %cst_38 = arith.constant dense<0.000000e+00> : vector<8x2048xf32>
    %126 = tpu.matmul %124, %125, %cst_38 {dimension_numbers = #tpu.dot_dimension_numbers<[1], [0], [0], [1], [0, 0, 1, 1], [], []>} : vector<8x32xbf16>, vector<32x2048xbf16>, vector<8x2048xf32> -> vector<8x2048xf32>
    %c0_39 = arith.constant 0 : index
    %c0_40 = arith.constant 0 : index
    %127 = vector.load %arg12[%c0_39, %c0_40] : memref<1x2048xf32, #tpu.memory_space<vmem>>, vector<1x2048xf32>
    %128 = vector.broadcast %127 : vector<1x2048xf32> to vector<8x2048xf32>
    %129 = arith.addf %126, %128 : vector<8x2048xf32>
    %cst_41 = arith.constant 0.000000e+00 : f32
    %130 = vector.broadcast %cst_41 : f32 to vector<8x2048xf32>
    %131 = arith.maximumf %129, %130 : vector<8x2048xf32>
    %132 = arith.truncf %131 : vector<8x2048xf32> to vector<8x2048xbf16>
    %c0_42 = arith.constant 0 : index
    %c0_43 = arith.constant 0 : index
    %133 = vector.load %arg13[%c0_42, %c0_43] : memref<2048x32xbf16, #tpu.memory_space<vmem>>, vector<2048x32xbf16>
    %cst_44 = arith.constant dense<0.000000e+00> : vector<8x32xf32>
    %134 = tpu.matmul %132, %133, %cst_44 {dimension_numbers = #tpu.dot_dimension_numbers<[1], [0], [0], [1], [0, 0, 1, 1], [], []>} : vector<8x2048xbf16>, vector<2048x32xbf16>, vector<8x32xf32> -> vector<8x32xf32>
    %c0_45 = arith.constant 0 : index
    %c0_46 = arith.constant 0 : index
    %135 = vector.load %arg14[%c0_45, %c0_46] : memref<1x32xf32, #tpu.memory_space<vmem>>, vector<1x32xf32>
    %136 = vector.broadcast %135 : vector<1x32xf32> to vector<8x32xf32>
    %137 = arith.addf %134, %136 : vector<8x32xf32>
    %138 = arith.addf %99, %137 : vector<8x32xf32>
    %139 = arith.cmpf one, %138, %138 : vector<8x32xf32>
    %cst_47 = arith.constant 0.000000e+00 : f32
    %140 = vector.broadcast %cst_47 : f32 to vector<8x32xf32>
    %141 = arith.select %139, %140, %138 : vector<8x32xi1>, vector<8x32xf32>
    %cst_48 = arith.constant -3.40282347E+38 : f32
    %cst_49 = arith.constant 3.40282347E+38 : f32
    %142 = vector.broadcast %cst_48 : f32 to vector<8x32xf32>
    %143 = arith.maximumf %142, %141 : vector<8x32xf32>
    %144 = vector.broadcast %cst_49 : f32 to vector<8x32xf32>
    %145 = arith.minimumf %144, %143 : vector<8x32xf32>
    %c0_50 = arith.constant 0 : index
    %c0_51 = arith.constant 0 : index
    %146 = vector.load %arg15[%c0_50, %c0_51] : memref<8x32xf32, #tpu.memory_space<vmem>>, vector<8x32xf32>
    tpu.vector_store %arg15[%c0_50, %c0_51], %145 {strides = array<i32>} : memref<8x32xf32, #tpu.memory_space<vmem>>, vector<8x32xf32>,
    return
  }
  func.func @transform_0(%arg0: i32) -> (i32, i32) {
    %c0_i32 = arith.constant 0 : i32
    %c0_i32_0 = arith.constant 0 : i32
    return %arg0, %c0_i32 : i32, i32
  }
  func.func @transform_1(%arg0: i32) -> (i32, i32, i32) {
    %c0_i32 = arith.constant 0 : i32
    %c0_i32_0 = arith.constant 0 : i32
    %c0_i32_1 = arith.constant 0 : i32
    return %arg0, %c0_i32, %c0_i32_0 : i32, i32, i32
  }
  func.func @transform_2(%arg0: i32) -> (i32, i32) {
    %c0_i32 = arith.constant 0 : i32
    %c0_i32_0 = arith.constant 0 : i32
    %c0_i32_1 = arith.constant 0 : i32
    return %c0_i32, %c0_i32_0 : i32, i32
  }
  func.func @transform_3(%arg0: i32) -> (i32, i32) {
    %c0_i32 = arith.constant 0 : i32
    %c0_i32_0 = arith.constant 0 : i32
    %c0_i32_1 = arith.constant 0 : i32
    return %c0_i32, %c0_i32_0 : i32, i32
  }
  func.func @transform_4(%arg0: i32) -> (i32, i32) {
    %c0_i32 = arith.constant 0 : i32
    %c0_i32_0 = arith.constant 0 : i32
    %c0_i32_1 = arith.constant 0 : i32
    return %c0_i32, %c0_i32_0 : i32, i32
  }
  func.func @transform_5(%arg0: i32) -> (i32, i32) {
    %c0_i32 = arith.constant 0 : i32
    %c0_i32_0 = arith.constant 0 : i32
    %c0_i32_1 = arith.constant 0 : i32
    return %c0_i32, %c0_i32_0 : i32, i32
  }
  func.func @transform_6(%arg0: i32) -> (i32, i32) {
    %c0_i32 = arith.constant 0 : i32
    %c0_i32_0 = arith.constant 0 : i32
    %c0_i32_1 = arith.constant 0 : i32
    return %c0_i32, %c0_i32_0 : i32, i32
  }
  func.func @transform_7(%arg0: i32) -> (i32, i32) {
    %c0_i32 = arith.constant 0 : i32
    %c0_i32_0 = arith.constant 0 : i32
    %c0_i32_1 = arith.constant 0 : i32
    return %c0_i32, %c0_i32_0 : i32, i32
  }
  func.func @transform_8(%arg0: i32) -> (i32, i32) {
    %c0_i32 = arith.constant 0 : i32
    %c0_i32_0 = arith.constant 0 : i32
    %c0_i32_1 = arith.constant 0 : i32
    return %c0_i32, %c0_i32_0 : i32, i32
  }
  func.func @transform_9(%arg0: i32) -> (i32, i32) {
    %c0_i32 = arith.constant 0 : i32
    %c0_i32_0 = arith.constant 0 : i32
    %c0_i32_1 = arith.constant 0 : i32
    return %c0_i32, %c0_i32_0 : i32, i32
  }
  func.func @transform_10(%arg0: i32) -> (i32, i32) {
    %c0_i32 = arith.constant 0 : i32
    %c0_i32_0 = arith.constant 0 : i32
    %c0_i32_1 = arith.constant 0 : i32
    return %c0_i32, %c0_i32_0 : i32, i32
  }
  func.func @transform_11(%arg0: i32) -> (i32, i32) {
    %c0_i32 = arith.constant 0 : i32
    %c0_i32_0 = arith.constant 0 : i32
    %c0_i32_1 = arith.constant 0 : i32
    return %c0_i32, %c0_i32_0 : i32, i32
  }
  func.func @transform_12(%arg0: i32) -> (i32, i32) {
    %c0_i32 = arith.constant 0 : i32
    %c0_i32_0 = arith.constant 0 : i32
    %c0_i32_1 = arith.constant 0 : i32
    return %c0_i32, %c0_i32_0 : i32, i32
  }
  func.func @transform_13(%arg0: i32) -> (i32, i32) {
    %c0_i32 = arith.constant 0 : i32
    %c0_i32_0 = arith.constant 0 : i32
    %c0_i32_1 = arith.constant 0 : i32
    return %c0_i32, %c0_i32_0 : i32, i32
  }
  func.func @transform_14(%arg0: i32) -> (i32, i32) {
    %c0_i32 = arith.constant 0 : i32
    %c0_i32_0 = arith.constant 0 : i32
    return %arg0, %c0_i32 : i32, i32
  }
}

module attributes {stable_mosaic.version = 11 : i64} {
  func.func @kernel(%arg0: i32, %arg1: memref<8x32xf32, #tpu.memory_space<vmem>>, %arg2: memref<1x1x8xf32, #tpu.memory_space<vmem>>, %arg3: memref<32x96xbf16, #tpu.memory_space<vmem>>, %arg4: memref<1x96xf32, #tpu.memory_space<vmem>>, %arg5: memref<32x32xbf16, #tpu.memory_space<vmem>>, %arg6: memref<1x32xf32, #tpu.memory_space<vmem>>, %arg7: memref<1x32xf32, #tpu.memory_space<vmem>>, %arg8: memref<1x32xf32, #tpu.memory_space<vmem>>, %arg9: memref<1x32xf32, #tpu.memory_space<vmem>>, %arg10: memref<1x32xf32, #tpu.memory_space<vmem>>, %arg11: memref<32x2048xbf16, #tpu.memory_space<vmem>>, %arg12: memref<1x2048xf32, #tpu.memory_space<vmem>>, %arg13: memref<2048x32xbf16, #tpu.memory_space<vmem>>, %arg14: memref<1x32xf32, #tpu.memory_space<vmem>>, %arg15: memref<8x32xf32, #tpu.memory_space<vmem>>) attributes {dimension_semantics = [#tpu.dimension_semantics<parallel>], iteration_bounds = array<i64: 2>, scalar_prefetch = 0 : i64, scratch_operands = 0 : i64, tpu.core_type = #tpu.core_type<tc>, window_params = [{transform_indices = @transform_0, window_bounds = array<i64: 8, 32>}, {transform_indices = @transform_1, window_bounds = array<i64: 1, 1, 8>}, {pipeline_mode = #tpu.pipeline_mode<synchronous>, transform_indices = @transform_2, window_bounds = array<i64: 32, 96>}, {pipeline_mode = #tpu.pipeline_mode<synchronous>, transform_indices = @transform_3, window_bounds = array<i64: 1, 96>}, {pipeline_mode = #tpu.pipeline_mode<synchronous>, transform_indices = @transform_4, window_bounds = array<i64: 32, 32>}, {pipeline_mode = #tpu.pipeline_mode<synchronous>, transform_indices = @transform_5, window_bounds = array<i64: 1, 32>}, {pipeline_mode = #tpu.pipeline_mode<synchronous>, transform_indices = @transform_6, window_bounds = array<i64: 1, 32>}, {pipeline_mode = #tpu.pipeline_mode<synchronous>, transform_indices = @transform_7, window_bounds = array<i64: 1, 32>}, {pipeline_mode = #tpu.pipeline_mode<synchronous>, transform_indices = @transform_8, window_bounds = array<i64: 1, 32>}, {pipeline_mode = #tpu.pipeline_mode<synchronous>, transform_indices = @transform_9, window_bounds = array<i64: 1, 32>}, {pipeline_mode = #tpu.pipeline_mode<synchronous>, transform_indices = @transform_10, window_bounds = array<i64: 32, 2048>}, {pipeline_mode = #tpu.pipeline_mode<synchronous>, transform_indices = @transform_11, window_bounds = array<i64: 1, 2048>}, {pipeline_mode = #tpu.pipeline_mode<synchronous>, transform_indices = @transform_12, window_bounds = array<i64: 2048, 32>}, {pipeline_mode = #tpu.pipeline_mode<synchronous>, transform_indices = @transform_13, window_bounds = array<i64: 1, 32>}, {transform_indices = @transform_14, window_bounds = array<i64: 8, 32>}]} {
    %c0 = arith.constant 0 : index
    %c0_0 = arith.constant 0 : index
    %0 = vector.load %arg1[%c0, %c0_0] : memref<8x32xf32, #tpu.memory_space<vmem>>, vector<8x32xf32>
    %c0_1 = arith.constant 0 : index
    %c0_2 = arith.constant 0 : index
    %c0_3 = arith.constant 0 : index
    %1 = vector.load %arg2[%c0_1, %c0_2, %c0_3] : memref<1x1x8xf32, #tpu.memory_space<vmem>>, vector<1x1x8xf32>
    %c0_4 = arith.constant 0 : index
    %c0_5 = arith.constant 0 : index
    %2 = vector.load %arg7[%c0_4, %c0_5] : memref<1x32xf32, #tpu.memory_space<vmem>>, vector<1x32xf32>
    %c0_6 = arith.constant 0 : index
    %c0_7 = arith.constant 0 : index
    %3 = vector.load %arg8[%c0_6, %c0_7] : memref<1x32xf32, #tpu.memory_space<vmem>>, vector<1x32xf32>
    %cst = arith.constant dense<0.000000e+00> : vector<8xf32>
    %4 = vector.multi_reduction <add>, %0, %cst [1] : vector<8x32xf32> to vector<8xf32>
    %5 = vector.shape_cast %4 : vector<8xf32> to vector<8x1xf32>
    %cst_8 = arith.constant 3.200000e+01 : f32
    %6 = vector.broadcast %cst_8 : f32 to vector<8x1xf32>
    %7 = arith.divf %5, %6 : vector<8x1xf32>
    %8 = vector.broadcast %7 : vector<8x1xf32> to vector<8x32xf32>
    %9 = arith.subf %0, %8 : vector<8x32xf32>
    %10 = arith.mulf %9, %9 : vector<8x32xf32>
    %cst_9 = arith.constant dense<0.000000e+00> : vector<8xf32>
    %11 = vector.multi_reduction <add>, %10, %cst_9 [1] : vector<8x32xf32> to vector<8xf32>
    %12 = vector.shape_cast %11 : vector<8xf32> to vector<8x1xf32>
    %cst_10 = arith.constant 3.200000e+01 : f32
    %13 = vector.broadcast %cst_10 : f32 to vector<8x1xf32>
    %14 = arith.divf %12, %13 : vector<8x1xf32>
    %15 = vector.broadcast %7 : vector<8x1xf32> to vector<8x32xf32>
    %16 = arith.subf %0, %15 : vector<8x32xf32>
    %cst_11 = arith.constant 9.99999974E-6 : f32
    %17 = vector.broadcast %cst_11 : f32 to vector<8x1xf32>
    %18 = arith.addf %14, %17 : vector<8x1xf32>
    %19 = math.rsqrt %18 : vector<8x1xf32>
    %20 = vector.broadcast %19 : vector<8x1xf32> to vector<8x32xf32>
    %21 = arith.mulf %16, %20 : vector<8x32xf32>
    %22 = vector.broadcast %2 : vector<1x32xf32> to vector<8x32xf32>
    %23 = arith.mulf %21, %22 : vector<8x32xf32>
    %24 = vector.broadcast %3 : vector<1x32xf32> to vector<8x32xf32>
    %25 = arith.addf %23, %24 : vector<8x32xf32>
    %26 = arith.truncf %25 : vector<8x32xf32> to vector<8x32xbf16>
    %c0_12 = arith.constant 0 : index
    %c0_13 = arith.constant 0 : index
    %27 = vector.load %arg3[%c0_12, %c0_13] : memref<32x96xbf16, #tpu.memory_space<vmem>>, vector<32x96xbf16>
    %cst_14 = arith.constant dense<0.000000e+00> : vector<8x96xf32>
    %28 = tpu.matmul %26, %27, %cst_14 {dimension_numbers = #tpu.dot_dimension_numbers<[1], [0], [0], [1], [0, 0, 1, 1], [], []>} : vector<8x32xbf16>, vector<32x96xbf16>, vector<8x96xf32> -> vector<8x96xf32>
    %c0_15 = arith.constant 0 : index
    %c0_16 = arith.constant 0 : index
    %29 = vector.load %arg4[%c0_15, %c0_16] : memref<1x96xf32, #tpu.memory_space<vmem>>, vector<1x96xf32>
    %30 = vector.broadcast %29 : vector<1x96xf32> to vector<8x96xf32>
    %31 = arith.addf %28, %30 : vector<8x96xf32>
    %32 = vector.extract_strided_slice %31 {offsets = [0, 0], sizes = [8, 32], strides = [1, 1]} : vector<8x96xf32> to vector<8x32xf32>
    %33 = vector.extract_strided_slice %31 {offsets = [0, 32], sizes = [8, 32], strides = [1, 1]} : vector<8x96xf32> to vector<8x32xf32>
    %34 = vector.extract_strided_slice %31 {offsets = [0, 64], sizes = [8, 32], strides = [1, 1]} : vector<8x96xf32> to vector<8x32xf32>
    %35 = vector.shape_cast %1 : vector<1x1x8xf32> to vector<1x8xf32>
    %36 = vector.extract_strided_slice %32 {offsets = [0, 0], sizes = [8, 8], strides = [1, 1]} : vector<8x32xf32> to vector<8x8xf32>
    %37 = vector.extract_strided_slice %32 {offsets = [0, 8], sizes = [8, 8], strides = [1, 1]} : vector<8x32xf32> to vector<8x8xf32>
    %38 = vector.extract_strided_slice %32 {offsets = [0, 16], sizes = [8, 8], strides = [1, 1]} : vector<8x32xf32> to vector<8x8xf32>
    %39 = vector.extract_strided_slice %32 {offsets = [0, 24], sizes = [8, 8], strides = [1, 1]} : vector<8x32xf32> to vector<8x8xf32>
    %40 = vector.shape_cast %36 : vector<8x8xf32> to vector<1x8x8xf32>
    %41 = vector.shape_cast %37 : vector<8x8xf32> to vector<1x8x8xf32>
    %42 = vector.shape_cast %38 : vector<8x8xf32> to vector<1x8x8xf32>
    %43 = vector.shape_cast %39 : vector<8x8xf32> to vector<1x8x8xf32>
    %44 = tpu.concatenate %40, %41, %42, %43 in 0 : vector<1x8x8xf32>, vector<1x8x8xf32>, vector<1x8x8xf32>, vector<1x8x8xf32> -> vector<4x8x8xf32>
    %45 = arith.truncf %44 : vector<4x8x8xf32> to vector<4x8x8xbf16>
    %46 = vector.extract_strided_slice %33 {offsets = [0, 0], sizes = [8, 8], strides = [1, 1]} : vector<8x32xf32> to vector<8x8xf32>
    %47 = vector.extract_strided_slice %33 {offsets = [0, 8], sizes = [8, 8], strides = [1, 1]} : vector<8x32xf32> to vector<8x8xf32>
    %48 = vector.extract_strided_slice %33 {offsets = [0, 16], sizes = [8, 8], strides = [1, 1]} : vector<8x32xf32> to vector<8x8xf32>
    %49 = vector.extract_strided_slice %33 {offsets = [0, 24], sizes = [8, 8], strides = [1, 1]} : vector<8x32xf32> to vector<8x8xf32>
    %50 = vector.shape_cast %46 : vector<8x8xf32> to vector<1x8x8xf32>
    %51 = vector.shape_cast %47 : vector<8x8xf32> to vector<1x8x8xf32>
    %52 = vector.shape_cast %48 : vector<8x8xf32> to vector<1x8x8xf32>
    %53 = vector.shape_cast %49 : vector<8x8xf32> to vector<1x8x8xf32>
    %54 = tpu.concatenate %50, %51, %52, %53 in 0 : vector<1x8x8xf32>, vector<1x8x8xf32>, vector<1x8x8xf32>, vector<1x8x8xf32> -> vector<4x8x8xf32>
    %55 = arith.truncf %54 : vector<4x8x8xf32> to vector<4x8x8xbf16>
    %56 = vector.extract_strided_slice %34 {offsets = [0, 0], sizes = [8, 8], strides = [1, 1]} : vector<8x32xf32> to vector<8x8xf32>
    %57 = vector.extract_strided_slice %34 {offsets = [0, 8], sizes = [8, 8], strides = [1, 1]} : vector<8x32xf32> to vector<8x8xf32>
    %58 = vector.extract_strided_slice %34 {offsets = [0, 16], sizes = [8, 8], strides = [1, 1]} : vector<8x32xf32> to vector<8x8xf32>
    %59 = vector.extract_strided_slice %34 {offsets = [0, 24], sizes = [8, 8], strides = [1, 1]} : vector<8x32xf32> to vector<8x8xf32>
    %60 = vector.shape_cast %56 : vector<8x8xf32> to vector<1x8x8xf32>
    %61 = vector.shape_cast %57 : vector<8x8xf32> to vector<1x8x8xf32>
    %62 = vector.shape_cast %58 : vector<8x8xf32> to vector<1x8x8xf32>
    %63 = vector.shape_cast %59 : vector<8x8xf32> to vector<1x8x8xf32>
    %64 = tpu.concatenate %60, %61, %62, %63 in 0 : vector<1x8x8xf32>, vector<1x8x8xf32>, vector<1x8x8xf32>, vector<1x8x8xf32> -> vector<4x8x8xf32>
    %65 = arith.truncf %64 : vector<4x8x8xf32> to vector<4x8x8xbf16>
    "tpu.trace_start"() <{level = 10 : i32, message = "hqd,hkd->hqk"}> : () -> ()
    %cst_17 = arith.constant dense<0.000000e+00> : vector<4x8x8xf32>
    %66 = tpu.matmul %45, %55, %cst_17 {dimension_numbers = #tpu.dot_dimension_numbers<[2], [2], [1], [1], [0, 0, 0, 1, 1, 1], [0], [0]>} : vector<4x8x8xbf16>, vector<4x8x8xbf16>, vector<4x8x8xf32> -> vector<4x8x8xf32>
    "tpu.trace_stop"() : () -> ()
    %cst_18 = arith.constant 0.353553385 : f32
    %67 = vector.broadcast %cst_18 : f32 to vector<4x8x8xf32>
    %68 = arith.mulf %66, %67 : vector<4x8x8xf32>
    %69 = vector.shape_cast %35 : vector<1x8xf32> to vector<1x1x8xf32>
    %70 = vector.broadcast %69 : vector<1x1x8xf32> to vector<4x8x8xf32>
    %71 = arith.addf %68, %70 : vector<4x8x8xf32>
    %cst_19 = arith.constant dense<0xFF800000> : vector<4x8xf32>
    %72 = vector.multi_reduction <maximumf>, %71, %cst_19 [2] : vector<4x8x8xf32> to vector<4x8xf32>
    %73 = vector.shape_cast %72 : vector<4x8xf32> to vector<4x8x1xf32>
    %74 = vector.broadcast %73 : vector<4x8x1xf32> to vector<4x8x8xf32>
    %75 = arith.subf %71, %74 : vector<4x8x8xf32>
    %76 = math.exp %75 : vector<4x8x8xf32>
    %cst_20 = arith.constant dense<0.000000e+00> : vector<4x8xf32>
    %77 = vector.multi_reduction <add>, %76, %cst_20 [2] : vector<4x8x8xf32> to vector<4x8xf32>
    %78 = vector.shape_cast %77 : vector<4x8xf32> to vector<4x8x1xf32>
    %79 = tpu.reciprocal %78 {approx = true} : vector<4x8x1xf32> -> vector<4x8x1xf32>
    %80 = vector.broadcast %79 : vector<4x8x1xf32> to vector<4x8x8xf32>
    %81 = arith.mulf %76, %80 : vector<4x8x8xf32>
    %82 = arith.truncf %81 : vector<4x8x8xf32> to vector<4x8x8xbf16>
    "tpu.trace_start"() <{level = 10 : i32, message = "hqk,hkd->hqd"}> : () -> ()
    %cst_21 = arith.constant dense<0.000000e+00> : vector<4x8x8xf32>
    %83 = tpu.matmul %82, %65, %cst_21 {dimension_numbers = #tpu.dot_dimension_numbers<[2], [1], [1], [2], [0, 0, 0, 1, 1, 2], [0], [0]>} : vector<4x8x8xbf16>, vector<4x8x8xbf16>, vector<4x8x8xf32> -> vector<4x8x8xf32>
    "tpu.trace_stop"() : () -> ()
    %84 = vector.extract_strided_slice %83 {offsets = [0, 0, 0], sizes = [1, 8, 8], strides = [1, 1, 1]} : vector<4x8x8xf32> to vector<1x8x8xf32>
    %85 = vector.shape_cast %84 : vector<1x8x8xf32> to vector<8x8xf32>
    %86 = vector.extract_strided_slice %83 {offsets = [1, 0, 0], sizes = [1, 8, 8], strides = [1, 1, 1]} : vector<4x8x8xf32> to vector<1x8x8xf32>
    %87 = vector.shape_cast %86 : vector<1x8x8xf32> to vector<8x8xf32>
    %88 = vector.extract_strided_slice %83 {offsets = [2, 0, 0], sizes = [1, 8, 8], strides = [1, 1, 1]} : vector<4x8x8xf32> to vector<1x8x8xf32>
    %89 = vector.shape_cast %88 : vector<1x8x8xf32> to vector<8x8xf32>
    %90 = vector.extract_strided_slice %83 {offsets = [3, 0, 0], sizes = [1, 8, 8], strides = [1, 1, 1]} : vector<4x8x8xf32> to vector<1x8x8xf32>
    %91 = vector.shape_cast %90 : vector<1x8x8xf32> to vector<8x8xf32>
    %92 = tpu.concatenate %85, %87, %89, %91 in 1 : vector<8x8xf32>, vector<8x8xf32>, vector<8x8xf32>, vector<8x8xf32> -> vector<8x32xf32>
    %93 = arith.truncf %92 : vector<8x32xf32> to vector<8x32xbf16>
    %c0_22 = arith.constant 0 : index
    %c0_23 = arith.constant 0 : index
    %94 = vector.load %arg5[%c0_22, %c0_23] : memref<32x32xbf16, #tpu.memory_space<vmem>>, vector<32x32xbf16>
    %cst_24 = arith.constant dense<0.000000e+00> : vector<8x32xf32>
    %95 = tpu.matmul %93, %94, %cst_24 {dimension_numbers = #tpu.dot_dimension_numbers<[1], [0], [0], [1], [0, 0, 1, 1], [], []>} : vector<8x32xbf16>, vector<32x32xbf16>, vector<8x32xf32> -> vector<8x32xf32>
    %c0_25 = arith.constant 0 : index
    %c0_26 = arith.constant 0 : index
    %96 = vector.load %arg6[%c0_25, %c0_26] : memref<1x32xf32, #tpu.memory_space<vmem>>, vector<1x32xf32>
    %97 = vector.broadcast %96 : vector<1x32xf32> to vector<8x32xf32>
    %98 = arith.addf %95, %97 : vector<8x32xf32>
    %99 = arith.addf %0, %98 : vector<8x32xf32>
    %c0_27 = arith.constant 0 : index
    %c0_28 = arith.constant 0 : index
    %100 = vector.load %arg9[%c0_27, %c0_28] : memref<1x32xf32, #tpu.memory_space<vmem>>, vector<1x32xf32>
    %c0_29 = arith.constant 0 : index
    %c0_30 = arith.constant 0 : index
    %101 = vector.load %arg10[%c0_29, %c0_30] : memref<1x32xf32, #tpu.memory_space<vmem>>, vector<1x32xf32>
    %cst_31 = arith.constant dense<0.000000e+00> : vector<8xf32>
    %102 = vector.multi_reduction <add>, %99, %cst_31 [1] : vector<8x32xf32> to vector<8xf32>
    %103 = vector.shape_cast %102 : vector<8xf32> to vector<8x1xf32>
    %cst_32 = arith.constant 3.200000e+01 : f32
    %104 = vector.broadcast %cst_32 : f32 to vector<8x1xf32>
    %105 = arith.divf %103, %104 : vector<8x1xf32>
    %106 = vector.broadcast %105 : vector<8x1xf32> to vector<8x32xf32>
    %107 = arith.subf %99, %106 : vector<8x32xf32>
    %108 = arith.mulf %107, %107 : vector<8x32xf32>
    %cst_33 = arith.constant dense<0.000000e+00> : vector<8xf32>
    %109 = vector.multi_reduction <add>, %108, %cst_33 [1] : vector<8x32xf32> to vector<8xf32>
    %110 = vector.shape_cast %109 : vector<8xf32> to vector<8x1xf32>
    %cst_34 = arith.constant 3.200000e+01 : f32
    %111 = vector.broadcast %cst_34 : f32 to vector<8x1xf32>
    %112 = arith.divf %110, %111 : vector<8x1xf32>
    %113 = vector.broadcast %105 : vector<8x1xf32> to vector<8x32xf32>
    %114 = arith.subf %99, %113 : vector<8x32xf32>
    %cst_35 = arith.constant 9.99999974E-6 : f32
    %115 = vector.broadcast %cst_35 : f32 to vector<8x1xf32>
    %116 = arith.addf %112, %115 : vector<8x1xf32>
    %117 = math.rsqrt %116 : vector<8x1xf32>
    %118 = vector.broadcast %117 : vector<8x1xf32> to vector<8x32xf32>
    %119 = arith.mulf %114, %118 : vector<8x32xf32>
    %120 = vector.broadcast %100 : vector<1x32xf32> to vector<8x32xf32>
    %121 = arith.mulf %119, %120 : vector<8x32xf32>
    %122 = vector.broadcast %101 : vector<1x32xf32> to vector<8x32xf32>
    %123 = arith.addf %121, %122 : vector<8x32xf32>
    %124 = arith.truncf %123 : vector<8x32xf32> to vector<8x32xbf16>
    %c0_36 = arith.constant 0 : index
    %c0_37 = arith.constant 0 : index
    %125 = vector.load %arg11[%c0_36, %c0_37] : memref<32x2048xbf16, #tpu.memory_space<vmem>>, vector<32x2048xbf16>
    %cst_38 = arith.constant dense<0.000000e+00> : vector<8x2048xf32>
    %126 = tpu.matmul %124, %125, %cst_38 {dimension_numbers = #tpu.dot_dimension_numbers<[1], [0], [0], [1], [0, 0, 1, 1], [], []>} : vector<8x32xbf16>, vector<32x2048xbf16>, vector<8x2048xf32> -> vector<8x2048xf32>
    %c0_39 = arith.constant 0 : index
    %c0_40 = arith.constant 0 : index
    %127 = vector.load %arg12[%c0_39, %c0_40] : memref<1x2048xf32, #tpu.memory_space<vmem>>, vector<1x2048xf32>
    %128 = vector.broadcast %127 : vector<1x2048xf32> to vector<8x2048xf32>
    %129 = arith.addf %126, %128 : vector<8x2048xf32>
    %cst_41 = arith.constant 0.000000e+00 : f32
    %130 = vector.broadcast %cst_41 : f32 to vector<8x2048xf32>
    %131 = arith.maximumf %129, %130 : vector<8x2048xf32>
    %132 = arith.truncf %131 : vector<8x2048xf32> to vector<8x2048xbf16>
    %c0_42 = arith.constant 0 : index
    %c0_43 = arith.constant 0 : index
    %133 = vector.load %arg13[%c0_42, %c0_43] : memref<2048x32xbf16, #tpu.memory_space<vmem>>, vector<2048x32xbf16>
    %cst_44 = arith.constant dense<0.000000e+00> : vector<8x32xf32>
    %134 = tpu.matmul %132, %133, %cst_44 {dimension_numbers = #tpu.dot_dimension_numbers<[1], [0], [0], [1], [0, 0, 1, 1], [], []>} : vector<8x2048xbf16>, vector<2048x32xbf16>, vector<8x32xf32> -> vector<8x32xf32>
    %c0_45 = arith.constant 0 : index
    %c0_46 = arith.constant 0 : index
    %135 = vector.load %arg14[%c0_45, %c0_46] : memref<1x32xf32, #tpu.memory_space<vmem>>, vector<1x32xf32>
    %136 = vector.broadcast %135 : vector<1x32xf32> to vector<8x32xf32>
    %137 = arith.addf %134, %136 : vector<8x32xf32>
    %138 = arith.addf %99, %137 : vector<8x32xf32>
    %139 = arith.cmpf one, %138, %138 : vector<8x32xf32>
    %cst_47 = arith.constant 0.000000e+00 : f32
    %140 = vector.broadcast %cst_47 : f32 to vector<8x32xf32>
    %141 = arith.select %139, %140, %138 : vector<8x32xi1>, vector<8x32xf32>
    %cst_48 = arith.constant -3.40282347E+38 : f32
    %cst_49 = arith.constant 3.40282347E+38 : f32
    %142 = vector.broadcast %cst_48 : f32 to vector<8x32xf32>
    %143 = arith.maximumf %142, %141 : vector<8x32xf32>
    %144 = vector.broadcast %cst_49 : f32 to vector<8x32xf32>
    %145 = arith.minimumf %144, %143 : vector<8x32xf32>
    %c0_50 = arith.constant 0 : index
    %c0_51 = arith.constant 0 : index
    %146 = vector.load %arg15[%c0_50, %c0_51] : memref<8x32xf32, #tpu.memory_space<vmem>>, vector<8x32xf32>
    tpu.vector_store %arg15[%c0_50, %c0_51], %145 {strides = array<i32>} : memref<8x32xf32, #tpu.memory_space<vmem>>, vector<8x32xf32>,
    return
  }
  func.func @transform_0(%arg0: i32) -> (i32, i32) {
    %c0_i32 = arith.constant 0 : i32
    %c0_i32_0 = arith.constant 0 : i32
    return %arg0, %c0_i32 : i32, i32
  }
  func.func @transform_1(%arg0: i32) -> (i32, i32, i32) {
    %c0_i32 = arith.constant 0 : i32
    %c0_i32_0 = arith.constant 0 : i32
    %c0_i32_1 = arith.constant 0 : i32
    return %arg0, %c0_i32, %c0_i32_0 : i32, i32, i32
  }
  func.func @transform_2(%arg0: i32) -> (i32, i32) {
    %c0_i32 = arith.constant 0 : i32
    %c0_i32_0 = arith.constant 0 : i32
    %c0_i32_1 = arith.constant 0 : i32
    return %c0_i32, %c0_i32_0 : i32, i32
  }
  func.func @transform_3(%arg0: i32) -> (i32, i32) {
    %c0_i32 = arith.constant 0 : i32
    %c0_i32_0 = arith.constant 0 : i32
    %c0_i32_1 = arith.constant 0 : i32
    return %c0_i32, %c0_i32_0 : i32, i32
  }
  func.func @transform_4(%arg0: i32) -> (i32, i32) {
    %c0_i32 = arith.constant 0 : i32
    %c0_i32_0 = arith.constant 0 : i32
    %c0_i32_1 = arith.constant 0 : i32
    return %c0_i32, %c0_i32_0 : i32, i32
  }
  func.func @transform_5(%arg0: i32) -> (i32, i32) {
    %c0_i32 = arith.constant 0 : i32
    %c0_i32_0 = arith.constant 0 : i32
    %c0_i32_1 = arith.constant 0 : i32
    return %c0_i32, %c0_i32_0 : i32, i32
  }
  func.func @transform_6(%arg0: i32) -> (i32, i32) {
    %c0_i32 = arith.constant 0 : i32
    %c0_i32_0 = arith.constant 0 : i32
    %c0_i32_1 = arith.constant 0 : i32
    return %c0_i32, %c0_i32_0 : i32, i32
  }
  func.func @transform_7(%arg0: i32) -> (i32, i32) {
    %c0_i32 = arith.constant 0 : i32
    %c0_i32_0 = arith.constant 0 : i32
    %c0_i32_1 = arith.constant 0 : i32
    return %c0_i32, %c0_i32_0 : i32, i32
  }
  func.func @transform_8(%arg0: i32) -> (i32, i32) {
    %c0_i32 = arith.constant 0 : i32
    %c0_i32_0 = arith.constant 0 : i32
    %c0_i32_1 = arith.constant 0 : i32
    return %c0_i32, %c0_i32_0 : i32, i32
  }
  func.func @transform_9(%arg0: i32) -> (i32, i32) {
    %c0_i32 = arith.constant 0 : i32
    %c0_i32_0 = arith.constant 0 : i32
    %c0_i32_1 = arith.constant 0 : i32
    return %c0_i32, %c0_i32_0 : i32, i32
  }
  func.func @transform_10(%arg0: i32) -> (i32, i32) {
    %c0_i32 = arith.constant 0 : i32
    %c0_i32_0 = arith.constant 0 : i32
    %c0_i32_1 = arith.constant 0 : i32
    return %c0_i32, %c0_i32_0 : i32, i32
  }
  func.func @transform_11(%arg0: i32) -> (i32, i32) {
    %c0_i32 = arith.constant 0 : i32
    %c0_i32_0 = arith.constant 0 : i32
    %c0_i32_1 = arith.constant 0 : i32
    return %c0_i32, %c0_i32_0 : i32, i32
  }
  func.func @transform_12(%arg0: i32) -> (i32, i32) {
    %c0_i32 = arith.constant 0 : i32
    %c0_i32_0 = arith.constant 0 : i32
    %c0_i32_1 = arith.constant 0 : i32
    return %c0_i32, %c0_i32_0 : i32, i32
  }
  func.func @transform_13(%arg0: i32) -> (i32, i32) {
    %c0_i32 = arith.constant 0 : i32
    %c0_i32_0 = arith.constant 0 : i32
    %c0_i32_1 = arith.constant 0 : i32
    return %c0_i32, %c0_i32_0 : i32, i32
  }
  func.func @transform_14(%arg0: i32) -> (i32, i32) {
    %c0_i32 = arith.constant 0 : i32
    %c0_i32_0 = arith.constant 0 : i32
    return %arg0, %c0_i32 : i32, i32
  }
}

module attributes {stable_mosaic.version = 11 : i64} {
  func.func @kernel(%arg0: i32, %arg1: memref<8x32xf32, #tpu.memory_space<vmem>>, %arg2: memref<1x1x8xf32, #tpu.memory_space<vmem>>, %arg3: memref<32x96xbf16, #tpu.memory_space<vmem>>, %arg4: memref<1x96xf32, #tpu.memory_space<vmem>>, %arg5: memref<32x32xbf16, #tpu.memory_space<vmem>>, %arg6: memref<1x32xf32, #tpu.memory_space<vmem>>, %arg7: memref<1x32xf32, #tpu.memory_space<vmem>>, %arg8: memref<1x32xf32, #tpu.memory_space<vmem>>, %arg9: memref<1x32xf32, #tpu.memory_space<vmem>>, %arg10: memref<1x32xf32, #tpu.memory_space<vmem>>, %arg11: memref<32x2048xbf16, #tpu.memory_space<vmem>>, %arg12: memref<1x2048xf32, #tpu.memory_space<vmem>>, %arg13: memref<2048x32xbf16, #tpu.memory_space<vmem>>, %arg14: memref<1x32xf32, #tpu.memory_space<vmem>>, %arg15: memref<8x32xf32, #tpu.memory_space<vmem>>) attributes {dimension_semantics = [#tpu.dimension_semantics<parallel>], iteration_bounds = array<i64: 2>, scalar_prefetch = 0 : i64, scratch_operands = 0 : i64, tpu.core_type = #tpu.core_type<tc>, window_params = [{transform_indices = @transform_0, window_bounds = array<i64: 8, 32>}, {transform_indices = @transform_1, window_bounds = array<i64: 1, 1, 8>}, {pipeline_mode = #tpu.pipeline_mode<synchronous>, transform_indices = @transform_2, window_bounds = array<i64: 32, 96>}, {pipeline_mode = #tpu.pipeline_mode<synchronous>, transform_indices = @transform_3, window_bounds = array<i64: 1, 96>}, {pipeline_mode = #tpu.pipeline_mode<synchronous>, transform_indices = @transform_4, window_bounds = array<i64: 32, 32>}, {pipeline_mode = #tpu.pipeline_mode<synchronous>, transform_indices = @transform_5, window_bounds = array<i64: 1, 32>}, {pipeline_mode = #tpu.pipeline_mode<synchronous>, transform_indices = @transform_6, window_bounds = array<i64: 1, 32>}, {pipeline_mode = #tpu.pipeline_mode<synchronous>, transform_indices = @transform_7, window_bounds = array<i64: 1, 32>}, {pipeline_mode = #tpu.pipeline_mode<synchronous>, transform_indices = @transform_8, window_bounds = array<i64: 1, 32>}, {pipeline_mode = #tpu.pipeline_mode<synchronous>, transform_indices = @transform_9, window_bounds = array<i64: 1, 32>}, {pipeline_mode = #tpu.pipeline_mode<synchronous>, transform_indices = @transform_10, window_bounds = array<i64: 32, 2048>}, {pipeline_mode = #tpu.pipeline_mode<synchronous>, transform_indices = @transform_11, window_bounds = array<i64: 1, 2048>}, {pipeline_mode = #tpu.pipeline_mode<synchronous>, transform_indices = @transform_12, window_bounds = array<i64: 2048, 32>}, {pipeline_mode = #tpu.pipeline_mode<synchronous>, transform_indices = @transform_13, window_bounds = array<i64: 1, 32>}, {transform_indices = @transform_14, window_bounds = array<i64: 8, 32>}]} {
    %c0 = arith.constant 0 : index
    %c0_0 = arith.constant 0 : index
    %0 = vector.load %arg1[%c0, %c0_0] : memref<8x32xf32, #tpu.memory_space<vmem>>, vector<8x32xf32>
    %c0_1 = arith.constant 0 : index
    %c0_2 = arith.constant 0 : index
    %c0_3 = arith.constant 0 : index
    %1 = vector.load %arg2[%c0_1, %c0_2, %c0_3] : memref<1x1x8xf32, #tpu.memory_space<vmem>>, vector<1x1x8xf32>
    %c0_4 = arith.constant 0 : index
    %c0_5 = arith.constant 0 : index
    %2 = vector.load %arg7[%c0_4, %c0_5] : memref<1x32xf32, #tpu.memory_space<vmem>>, vector<1x32xf32>
    %c0_6 = arith.constant 0 : index
    %c0_7 = arith.constant 0 : index
    %3 = vector.load %arg8[%c0_6, %c0_7] : memref<1x32xf32, #tpu.memory_space<vmem>>, vector<1x32xf32>
    %cst = arith.constant dense<0.000000e+00> : vector<8xf32>
    %4 = vector.multi_reduction <add>, %0, %cst [1] : vector<8x32xf32> to vector<8xf32>
    %5 = vector.shape_cast %4 : vector<8xf32> to vector<8x1xf32>
    %cst_8 = arith.constant 3.200000e+01 : f32
    %6 = vector.broadcast %cst_8 : f32 to vector<8x1xf32>
    %7 = arith.divf %5, %6 : vector<8x1xf32>
    %8 = vector.broadcast %7 : vector<8x1xf32> to vector<8x32xf32>
    %9 = arith.subf %0, %8 : vector<8x32xf32>
    %10 = arith.mulf %9, %9 : vector<8x32xf32>
    %cst_9 = arith.constant dense<0.000000e+00> : vector<8xf32>
    %11 = vector.multi_reduction <add>, %10, %cst_9 [1] : vector<8x32xf32> to vector<8xf32>
    %12 = vector.shape_cast %11 : vector<8xf32> to vector<8x1xf32>
    %cst_10 = arith.constant 3.200000e+01 : f32
    %13 = vector.broadcast %cst_10 : f32 to vector<8x1xf32>
    %14 = arith.divf %12, %13 : vector<8x1xf32>
    %15 = vector.broadcast %7 : vector<8x1xf32> to vector<8x32xf32>
    %16 = arith.subf %0, %15 : vector<8x32xf32>
    %cst_11 = arith.constant 9.99999974E-6 : f32
    %17 = vector.broadcast %cst_11 : f32 to vector<8x1xf32>
    %18 = arith.addf %14, %17 : vector<8x1xf32>
    %19 = math.rsqrt %18 : vector<8x1xf32>
    %20 = vector.broadcast %19 : vector<8x1xf32> to vector<8x32xf32>
    %21 = arith.mulf %16, %20 : vector<8x32xf32>
    %22 = vector.broadcast %2 : vector<1x32xf32> to vector<8x32xf32>
    %23 = arith.mulf %21, %22 : vector<8x32xf32>
    %24 = vector.broadcast %3 : vector<1x32xf32> to vector<8x32xf32>
    %25 = arith.addf %23, %24 : vector<8x32xf32>
    %26 = arith.truncf %25 : vector<8x32xf32> to vector<8x32xbf16>
    %c0_12 = arith.constant 0 : index
    %c0_13 = arith.constant 0 : index
    %27 = vector.load %arg3[%c0_12, %c0_13] : memref<32x96xbf16, #tpu.memory_space<vmem>>, vector<32x96xbf16>
    %cst_14 = arith.constant dense<0.000000e+00> : vector<8x96xf32>
    %28 = tpu.matmul %26, %27, %cst_14 {dimension_numbers = #tpu.dot_dimension_numbers<[1], [0], [0], [1], [0, 0, 1, 1], [], []>} : vector<8x32xbf16>, vector<32x96xbf16>, vector<8x96xf32> -> vector<8x96xf32>
    %c0_15 = arith.constant 0 : index
    %c0_16 = arith.constant 0 : index
    %29 = vector.load %arg4[%c0_15, %c0_16] : memref<1x96xf32, #tpu.memory_space<vmem>>, vector<1x96xf32>
    %30 = vector.broadcast %29 : vector<1x96xf32> to vector<8x96xf32>
    %31 = arith.addf %28, %30 : vector<8x96xf32>
    %32 = vector.extract_strided_slice %31 {offsets = [0, 0], sizes = [8, 32], strides = [1, 1]} : vector<8x96xf32> to vector<8x32xf32>
    %33 = vector.extract_strided_slice %31 {offsets = [0, 32], sizes = [8, 32], strides = [1, 1]} : vector<8x96xf32> to vector<8x32xf32>
    %34 = vector.extract_strided_slice %31 {offsets = [0, 64], sizes = [8, 32], strides = [1, 1]} : vector<8x96xf32> to vector<8x32xf32>
    %35 = vector.shape_cast %1 : vector<1x1x8xf32> to vector<1x8xf32>
    %36 = vector.extract_strided_slice %32 {offsets = [0, 0], sizes = [8, 8], strides = [1, 1]} : vector<8x32xf32> to vector<8x8xf32>
    %37 = arith.truncf %36 : vector<8x8xf32> to vector<8x8xbf16>
    %38 = vector.extract_strided_slice %33 {offsets = [0, 0], sizes = [8, 8], strides = [1, 1]} : vector<8x32xf32> to vector<8x8xf32>
    %39 = arith.truncf %38 : vector<8x8xf32> to vector<8x8xbf16>
    %40 = vector.extract_strided_slice %34 {offsets = [0, 0], sizes = [8, 8], strides = [1, 1]} : vector<8x32xf32> to vector<8x8xf32>
    %41 = arith.truncf %40 : vector<8x8xf32> to vector<8x8xbf16>
    %42 = tpu.transpose %39, [1, 0] : vector<8x8xbf16> -> vector<8x8xbf16>
    %cst_17 = arith.constant dense<0.000000e+00> : vector<8x8xf32>
    %43 = tpu.matmul %37, %42, %cst_17 {dimension_numbers = #tpu.dot_dimension_numbers<[1], [0], [0], [1], [0, 0, 1, 1], [], []>} : vector<8x8xbf16>, vector<8x8xbf16>, vector<8x8xf32> -> vector<8x8xf32>
    %cst_18 = arith.constant 0.353553385 : f32
    %44 = vector.broadcast %cst_18 : f32 to vector<8x8xf32>
    %45 = arith.mulf %43, %44 : vector<8x8xf32>
    %46 = vector.broadcast %35 : vector<1x8xf32> to vector<8x8xf32>
    %47 = arith.addf %45, %46 : vector<8x8xf32>
    %cst_19 = arith.constant dense<0xFF800000> : vector<8xf32>
    %48 = vector.multi_reduction <maximumf>, %47, %cst_19 [1] : vector<8x8xf32> to vector<8xf32>
    %49 = vector.shape_cast %48 : vector<8xf32> to vector<8x1xf32>
    %50 = vector.broadcast %49 : vector<8x1xf32> to vector<8x8xf32>
    %51 = arith.subf %47, %50 : vector<8x8xf32>
    %52 = math.exp %51 : vector<8x8xf32>
    %cst_20 = arith.constant dense<0.000000e+00> : vector<8xf32>
    %53 = vector.multi_reduction <add>, %52, %cst_20 [1] : vector<8x8xf32> to vector<8xf32>
    %54 = vector.shape_cast %53 : vector<8xf32> to vector<8x1xf32>
    %55 = tpu.reciprocal %54 {approx = true} : vector<8x1xf32> -> vector<8x1xf32>
    %56 = vector.broadcast %55 : vector<8x1xf32> to vector<8x8xf32>
    %57 = arith.mulf %52, %56 : vector<8x8xf32>
    %58 = arith.truncf %57 : vector<8x8xf32> to vector<8x8xbf16>
    %cst_21 = arith.constant dense<0.000000e+00> : vector<8x8xf32>
    %59 = tpu.matmul %58, %41, %cst_21 {dimension_numbers = #tpu.dot_dimension_numbers<[1], [0], [0], [1], [0, 0, 1, 1], [], []>} : vector<8x8xbf16>, vector<8x8xbf16>, vector<8x8xf32> -> vector<8x8xf32>
    %60 = vector.extract_strided_slice %32 {offsets = [0, 8], sizes = [8, 8], strides = [1, 1]} : vector<8x32xf32> to vector<8x8xf32>
    %61 = arith.truncf %60 : vector<8x8xf32> to vector<8x8xbf16>
    %62 = vector.extract_strided_slice %33 {offsets = [0, 8], sizes = [8, 8], strides = [1, 1]} : vector<8x32xf32> to vector<8x8xf32>
    %63 = arith.truncf %62 : vector<8x8xf32> to vector<8x8xbf16>
    %64 = vector.extract_strided_slice %34 {offsets = [0, 8], sizes = [8, 8], strides = [1, 1]} : vector<8x32xf32> to vector<8x8xf32>
    %65 = arith.truncf %64 : vector<8x8xf32> to vector<8x8xbf16>
    %66 = tpu.transpose %63, [1, 0] : vector<8x8xbf16> -> vector<8x8xbf16>
    %cst_22 = arith.constant dense<0.000000e+00> : vector<8x8xf32>
    %67 = tpu.matmul %61, %66, %cst_22 {dimension_numbers = #tpu.dot_dimension_numbers<[1], [0], [0], [1], [0, 0, 1, 1], [], []>} : vector<8x8xbf16>, vector<8x8xbf16>, vector<8x8xf32> -> vector<8x8xf32>
    %cst_23 = arith.constant 0.353553385 : f32
    %68 = vector.broadcast %cst_23 : f32 to vector<8x8xf32>
    %69 = arith.mulf %67, %68 : vector<8x8xf32>
    %70 = vector.broadcast %35 : vector<1x8xf32> to vector<8x8xf32>
    %71 = arith.addf %69, %70 : vector<8x8xf32>
    %cst_24 = arith.constant dense<0xFF800000> : vector<8xf32>
    %72 = vector.multi_reduction <maximumf>, %71, %cst_24 [1] : vector<8x8xf32> to vector<8xf32>
    %73 = vector.shape_cast %72 : vector<8xf32> to vector<8x1xf32>
    %74 = vector.broadcast %73 : vector<8x1xf32> to vector<8x8xf32>
    %75 = arith.subf %71, %74 : vector<8x8xf32>
    %76 = math.exp %75 : vector<8x8xf32>
    %cst_25 = arith.constant dense<0.000000e+00> : vector<8xf32>
    %77 = vector.multi_reduction <add>, %76, %cst_25 [1] : vector<8x8xf32> to vector<8xf32>
    %78 = vector.shape_cast %77 : vector<8xf32> to vector<8x1xf32>
    %79 = tpu.reciprocal %78 {approx = true} : vector<8x1xf32> -> vector<8x1xf32>
    %80 = vector.broadcast %79 : vector<8x1xf32> to vector<8x8xf32>
    %81 = arith.mulf %76, %80 : vector<8x8xf32>
    %82 = arith.truncf %81 : vector<8x8xf32> to vector<8x8xbf16>
    %cst_26 = arith.constant dense<0.000000e+00> : vector<8x8xf32>
    %83 = tpu.matmul %82, %65, %cst_26 {dimension_numbers = #tpu.dot_dimension_numbers<[1], [0], [0], [1], [0, 0, 1, 1], [], []>} : vector<8x8xbf16>, vector<8x8xbf16>, vector<8x8xf32> -> vector<8x8xf32>
    %84 = vector.extract_strided_slice %32 {offsets = [0, 16], sizes = [8, 8], strides = [1, 1]} : vector<8x32xf32> to vector<8x8xf32>
    %85 = arith.truncf %84 : vector<8x8xf32> to vector<8x8xbf16>
    %86 = vector.extract_strided_slice %33 {offsets = [0, 16], sizes = [8, 8], strides = [1, 1]} : vector<8x32xf32> to vector<8x8xf32>
    %87 = arith.truncf %86 : vector<8x8xf32> to vector<8x8xbf16>
    %88 = vector.extract_strided_slice %34 {offsets = [0, 16], sizes = [8, 8], strides = [1, 1]} : vector<8x32xf32> to vector<8x8xf32>
    %89 = arith.truncf %88 : vector<8x8xf32> to vector<8x8xbf16>
    %90 = tpu.transpose %87, [1, 0] : vector<8x8xbf16> -> vector<8x8xbf16>
    %cst_27 = arith.constant dense<0.000000e+00> : vector<8x8xf32>
    %91 = tpu.matmul %85, %90, %cst_27 {dimension_numbers = #tpu.dot_dimension_numbers<[1], [0], [0], [1], [0, 0, 1, 1], [], []>} : vector<8x8xbf16>, vector<8x8xbf16>, vector<8x8xf32> -> vector<8x8xf32>
    %cst_28 = arith.constant 0.353553385 : f32
    %92 = vector.broadcast %cst_28 : f32 to vector<8x8xf32>
    %93 = arith.mulf %91, %92 : vector<8x8xf32>
    %94 = vector.broadcast %35 : vector<1x8xf32> to vector<8x8xf32>
    %95 = arith.addf %93, %94 : vector<8x8xf32>
    %cst_29 = arith.constant dense<0xFF800000> : vector<8xf32>
    %96 = vector.multi_reduction <maximumf>, %95, %cst_29 [1] : vector<8x8xf32> to vector<8xf32>
    %97 = vector.shape_cast %96 : vector<8xf32> to vector<8x1xf32>
    %98 = vector.broadcast %97 : vector<8x1xf32> to vector<8x8xf32>
    %99 = arith.subf %95, %98 : vector<8x8xf32>
    %100 = math.exp %99 : vector<8x8xf32>
    %cst_30 = arith.constant dense<0.000000e+00> : vector<8xf32>
    %101 = vector.multi_reduction <add>, %100, %cst_30 [1] : vector<8x8xf32> to vector<8xf32>
    %102 = vector.shape_cast %101 : vector<8xf32> to vector<8x1xf32>
    %103 = tpu.reciprocal %102 {approx = true} : vector<8x1xf32> -> vector<8x1xf32>
    %104 = vector.broadcast %103 : vector<8x1xf32> to vector<8x8xf32>
    %105 = arith.mulf %100, %104 : vector<8x8xf32>
    %106 = arith.truncf %105 : vector<8x8xf32> to vector<8x8xbf16>
    %cst_31 = arith.constant dense<0.000000e+00> : vector<8x8xf32>
    %107 = tpu.matmul %106, %89, %cst_31 {dimension_numbers = #tpu.dot_dimension_numbers<[1], [0], [0], [1], [0, 0, 1, 1], [], []>} : vector<8x8xbf16>, vector<8x8xbf16>, vector<8x8xf32> -> vector<8x8xf32>
    %108 = vector.extract_strided_slice %32 {offsets = [0, 24], sizes = [8, 8], strides = [1, 1]} : vector<8x32xf32> to vector<8x8xf32>
    %109 = arith.truncf %108 : vector<8x8xf32> to vector<8x8xbf16>
    %110 = vector.extract_strided_slice %33 {offsets = [0, 24], sizes = [8, 8], strides = [1, 1]} : vector<8x32xf32> to vector<8x8xf32>
    %111 = arith.truncf %110 : vector<8x8xf32> to vector<8x8xbf16>
    %112 = vector.extract_strided_slice %34 {offsets = [0, 24], sizes = [8, 8], strides = [1, 1]} : vector<8x32xf32> to vector<8x8xf32>
    %113 = arith.truncf %112 : vector<8x8xf32> to vector<8x8xbf16>
    %114 = tpu.transpose %111, [1, 0] : vector<8x8xbf16> -> vector<8x8xbf16>
    %cst_32 = arith.constant dense<0.000000e+00> : vector<8x8xf32>
    %115 = tpu.matmul %109, %114, %cst_32 {dimension_numbers = #tpu.dot_dimension_numbers<[1], [0], [0], [1], [0, 0, 1, 1], [], []>} : vector<8x8xbf16>, vector<8x8xbf16>, vector<8x8xf32> -> vector<8x8xf32>
    %cst_33 = arith.constant 0.353553385 : f32
    %116 = vector.broadcast %cst_33 : f32 to vector<8x8xf32>
    %117 = arith.mulf %115, %116 : vector<8x8xf32>
    %118 = vector.broadcast %35 : vector<1x8xf32> to vector<8x8xf32>
    %119 = arith.addf %117, %118 : vector<8x8xf32>
    %cst_34 = arith.constant dense<0xFF800000> : vector<8xf32>
    %120 = vector.multi_reduction <maximumf>, %119, %cst_34 [1] : vector<8x8xf32> to vector<8xf32>
    %121 = vector.shape_cast %120 : vector<8xf32> to vector<8x1xf32>
    %122 = vector.broadcast %121 : vector<8x1xf32> to vector<8x8xf32>
    %123 = arith.subf %119, %122 : vector<8x8xf32>
    %124 = math.exp %123 : vector<8x8xf32>
    %cst_35 = arith.constant dense<0.000000e+00> : vector<8xf32>
    %125 = vector.multi_reduction <add>, %124, %cst_35 [1] : vector<8x8xf32> to vector<8xf32>
    %126 = vector.shape_cast %125 : vector<8xf32> to vector<8x1xf32>
    %127 = tpu.reciprocal %126 {approx = true} : vector<8x1xf32> -> vector<8x1xf32>
    %128 = vector.broadcast %127 : vector<8x1xf32> to vector<8x8xf32>
    %129 = arith.mulf %124, %128 : vector<8x8xf32>
    %130 = arith.truncf %129 : vector<8x8xf32> to vector<8x8xbf16>
    %cst_36 = arith.constant dense<0.000000e+00> : vector<8x8xf32>
    %131 = tpu.matmul %130, %113, %cst_36 {dimension_numbers = #tpu.dot_dimension_numbers<[1], [0], [0], [1], [0, 0, 1, 1], [], []>} : vector<8x8xbf16>, vector<8x8xbf16>, vector<8x8xf32> -> vector<8x8xf32>
    %132 = tpu.concatenate %59, %83, %107, %131 in 1 : vector<8x8xf32>, vector<8x8xf32>, vector<8x8xf32>, vector<8x8xf32> -> vector<8x32xf32>
    %133 = arith.truncf %132 : vector<8x32xf32> to vector<8x32xbf16>
    %c0_37 = arith.constant 0 : index
    %c0_38 = arith.constant 0 : index
    %134 = vector.load %arg5[%c0_37, %c0_38] : memref<32x32xbf16, #tpu.memory_space<vmem>>, vector<32x32xbf16>
    %cst_39 = arith.constant dense<0.000000e+00> : vector<8x32xf32>
    %135 = tpu.matmul %133, %134, %cst_39 {dimension_numbers = #tpu.dot_dimension_numbers<[1], [0], [0], [1], [0, 0, 1, 1], [], []>} : vector<8x32xbf16>, vector<32x32xbf16>, vector<8x32xf32> -> vector<8x32xf32>
    %c0_40 = arith.constant 0 : index
    %c0_41 = arith.constant 0 : index
    %136 = vector.load %arg6[%c0_40, %c0_41] : memref<1x32xf32, #tpu.memory_space<vmem>>, vector<1x32xf32>
    %137 = vector.broadcast %136 : vector<1x32xf32> to vector<8x32xf32>
    %138 = arith.addf %135, %137 : vector<8x32xf32>
    %139 = arith.addf %0, %138 : vector<8x32xf32>
    %c0_42 = arith.constant 0 : index
    %c0_43 = arith.constant 0 : index
    %140 = vector.load %arg9[%c0_42, %c0_43] : memref<1x32xf32, #tpu.memory_space<vmem>>, vector<1x32xf32>
    %c0_44 = arith.constant 0 : index
    %c0_45 = arith.constant 0 : index
    %141 = vector.load %arg10[%c0_44, %c0_45] : memref<1x32xf32, #tpu.memory_space<vmem>>, vector<1x32xf32>
    %cst_46 = arith.constant dense<0.000000e+00> : vector<8xf32>
    %142 = vector.multi_reduction <add>, %139, %cst_46 [1] : vector<8x32xf32> to vector<8xf32>
    %143 = vector.shape_cast %142 : vector<8xf32> to vector<8x1xf32>
    %cst_47 = arith.constant 3.200000e+01 : f32
    %144 = vector.broadcast %cst_47 : f32 to vector<8x1xf32>
    %145 = arith.divf %143, %144 : vector<8x1xf32>
    %146 = vector.broadcast %145 : vector<8x1xf32> to vector<8x32xf32>
    %147 = arith.subf %139, %146 : vector<8x32xf32>
    %148 = arith.mulf %147, %147 : vector<8x32xf32>
    %cst_48 = arith.constant dense<0.000000e+00> : vector<8xf32>
    %149 = vector.multi_reduction <add>, %148, %cst_48 [1] : vector<8x32xf32> to vector<8xf32>
    %150 = vector.shape_cast %149 : vector<8xf32> to vector<8x1xf32>
    %cst_49 = arith.constant 3.200000e+01 : f32
    %151 = vector.broadcast %cst_49 : f32 to vector<8x1xf32>
    %152 = arith.divf %150, %151 : vector<8x1xf32>
    %153 = vector.broadcast %145 : vector<8x1xf32> to vector<8x32xf32>
    %154 = arith.subf %139, %153 : vector<8x32xf32>
    %cst_50 = arith.constant 9.99999974E-6 : f32
    %155 = vector.broadcast %cst_50 : f32 to vector<8x1xf32>
    %156 = arith.addf %152, %155 : vector<8x1xf32>
    %157 = math.rsqrt %156 : vector<8x1xf32>
    %158 = vector.broadcast %157 : vector<8x1xf32> to vector<8x32xf32>
    %159 = arith.mulf %154, %158 : vector<8x32xf32>
    %160 = vector.broadcast %140 : vector<1x32xf32> to vector<8x32xf32>
    %161 = arith.mulf %159, %160 : vector<8x32xf32>
    %162 = vector.broadcast %141 : vector<1x32xf32> to vector<8x32xf32>
    %163 = arith.addf %161, %162 : vector<8x32xf32>
    %164 = arith.truncf %163 : vector<8x32xf32> to vector<8x32xbf16>
    %c0_51 = arith.constant 0 : index
    %c0_52 = arith.constant 0 : index
    %165 = vector.load %arg11[%c0_51, %c0_52] : memref<32x2048xbf16, #tpu.memory_space<vmem>>, vector<32x2048xbf16>
    %cst_53 = arith.constant dense<0.000000e+00> : vector<8x2048xf32>
    %166 = tpu.matmul %164, %165, %cst_53 {dimension_numbers = #tpu.dot_dimension_numbers<[1], [0], [0], [1], [0, 0, 1, 1], [], []>} : vector<8x32xbf16>, vector<32x2048xbf16>, vector<8x2048xf32> -> vector<8x2048xf32>
    %c0_54 = arith.constant 0 : index
    %c0_55 = arith.constant 0 : index
    %167 = vector.load %arg12[%c0_54, %c0_55] : memref<1x2048xf32, #tpu.memory_space<vmem>>, vector<1x2048xf32>
    %168 = vector.broadcast %167 : vector<1x2048xf32> to vector<8x2048xf32>
    %169 = arith.addf %166, %168 : vector<8x2048xf32>
    %cst_56 = arith.constant 0.000000e+00 : f32
    %170 = vector.broadcast %cst_56 : f32 to vector<8x2048xf32>
    %171 = arith.maximumf %169, %170 : vector<8x2048xf32>
    %172 = arith.truncf %171 : vector<8x2048xf32> to vector<8x2048xbf16>
    %c0_57 = arith.constant 0 : index
    %c0_58 = arith.constant 0 : index
    %173 = vector.load %arg13[%c0_57, %c0_58] : memref<2048x32xbf16, #tpu.memory_space<vmem>>, vector<2048x32xbf16>
    %cst_59 = arith.constant dense<0.000000e+00> : vector<8x32xf32>
    %174 = tpu.matmul %172, %173, %cst_59 {dimension_numbers = #tpu.dot_dimension_numbers<[1], [0], [0], [1], [0, 0, 1, 1], [], []>} : vector<8x2048xbf16>, vector<2048x32xbf16>, vector<8x32xf32> -> vector<8x32xf32>
    %c0_60 = arith.constant 0 : index
    %c0_61 = arith.constant 0 : index
    %175 = vector.load %arg14[%c0_60, %c0_61] : memref<1x32xf32, #tpu.memory_space<vmem>>, vector<1x32xf32>
    %176 = vector.broadcast %175 : vector<1x32xf32> to vector<8x32xf32>
    %177 = arith.addf %174, %176 : vector<8x32xf32>
    %178 = arith.addf %139, %177 : vector<8x32xf32>
    %179 = arith.cmpf one, %178, %178 : vector<8x32xf32>
    %cst_62 = arith.constant 0.000000e+00 : f32
    %180 = vector.broadcast %cst_62 : f32 to vector<8x32xf32>
    %181 = arith.select %179, %180, %178 : vector<8x32xi1>, vector<8x32xf32>
    %cst_63 = arith.constant -3.40282347E+38 : f32
    %cst_64 = arith.constant 3.40282347E+38 : f32
    %182 = vector.broadcast %cst_63 : f32 to vector<8x32xf32>
    %183 = arith.maximumf %182, %181 : vector<8x32xf32>
    %184 = vector.broadcast %cst_64 : f32 to vector<8x32xf32>
    %185 = arith.minimumf %184, %183 : vector<8x32xf32>
    %c0_65 = arith.constant 0 : index
    %c0_66 = arith.constant 0 : index
    %186 = vector.load %arg15[%c0_65, %c0_66] : memref<8x32xf32, #tpu.memory_space<vmem>>, vector<8x32xf32>
    tpu.vector_store %arg15[%c0_65, %c0_66], %185 {strides = array<i32>} : memref<8x32xf32, #tpu.memory_space<vmem>>, vector<8x32xf32>,
    return
  }
  func.func @transform_0(%arg0: i32) -> (i32, i32) {
    %c0_i32 = arith.constant 0 : i32
    %c0_i32_0 = arith.constant 0 : i32
    return %arg0, %c0_i32 : i32, i32
  }
  func.func @transform_1(%arg0: i32) -> (i32, i32, i32) {
    %c0_i32 = arith.constant 0 : i32
    %c0_i32_0 = arith.constant 0 : i32
    %c0_i32_1 = arith.constant 0 : i32
    return %arg0, %c0_i32, %c0_i32_0 : i32, i32, i32
  }
  func.func @transform_2(%arg0: i32) -> (i32, i32) {
    %c0_i32 = arith.constant 0 : i32
    %c0_i32_0 = arith.constant 0 : i32
    %c0_i32_1 = arith.constant 0 : i32
    return %c0_i32, %c0_i32_0 : i32, i32
  }
  func.func @transform_3(%arg0: i32) -> (i32, i32) {
    %c0_i32 = arith.constant 0 : i32
    %c0_i32_0 = arith.constant 0 : i32
    %c0_i32_1 = arith.constant 0 : i32
    return %c0_i32, %c0_i32_0 : i32, i32
  }
  func.func @transform_4(%arg0: i32) -> (i32, i32) {
    %c0_i32 = arith.constant 0 : i32
    %c0_i32_0 = arith.constant 0 : i32
    %c0_i32_1 = arith.constant 0 : i32
    return %c0_i32, %c0_i32_0 : i32, i32
  }
  func.func @transform_5(%arg0: i32) -> (i32, i32) {
    %c0_i32 = arith.constant 0 : i32
    %c0_i32_0 = arith.constant 0 : i32
    %c0_i32_1 = arith.constant 0 : i32
    return %c0_i32, %c0_i32_0 : i32, i32
  }
  func.func @transform_6(%arg0: i32) -> (i32, i32) {
    %c0_i32 = arith.constant 0 : i32
    %c0_i32_0 = arith.constant 0 : i32
    %c0_i32_1 = arith.constant 0 : i32
    return %c0_i32, %c0_i32_0 : i32, i32
  }
  func.func @transform_7(%arg0: i32) -> (i32, i32) {
    %c0_i32 = arith.constant 0 : i32
    %c0_i32_0 = arith.constant 0 : i32
    %c0_i32_1 = arith.constant 0 : i32
    return %c0_i32, %c0_i32_0 : i32, i32
  }
  func.func @transform_8(%arg0: i32) -> (i32, i32) {
    %c0_i32 = arith.constant 0 : i32
    %c0_i32_0 = arith.constant 0 : i32
    %c0_i32_1 = arith.constant 0 : i32
    return %c0_i32, %c0_i32_0 : i32, i32
  }
  func.func @transform_9(%arg0: i32) -> (i32, i32) {
    %c0_i32 = arith.constant 0 : i32
    %c0_i32_0 = arith.constant 0 : i32
    %c0_i32_1 = arith.constant 0 : i32
    return %c0_i32, %c0_i32_0 : i32, i32
  }
  func.func @transform_10(%arg0: i32) -> (i32, i32) {
    %c0_i32 = arith.constant 0 : i32
    %c0_i32_0 = arith.constant 0 : i32
    %c0_i32_1 = arith.constant 0 : i32
    return %c0_i32, %c0_i32_0 : i32, i32
  }
  func.func @transform_11(%arg0: i32) -> (i32, i32) {
    %c0_i32 = arith.constant 0 : i32
    %c0_i32_0 = arith.constant 0 : i32
    %c0_i32_1 = arith.constant 0 : i32
    return %c0_i32, %c0_i32_0 : i32, i32
  }
  func.func @transform_12(%arg0: i32) -> (i32, i32) {
    %c0_i32 = arith.constant 0 : i32
    %c0_i32_0 = arith.constant 0 : i32
    %c0_i32_1 = arith.constant 0 : i32
    return %c0_i32, %c0_i32_0 : i32, i32
  }
  func.func @transform_13(%arg0: i32) -> (i32, i32) {
    %c0_i32 = arith.constant 0 : i32
    %c0_i32_0 = arith.constant 0 : i32
    %c0_i32_1 = arith.constant 0 : i32
    return %c0_i32, %c0_i32_0 : i32, i32
  }
  func.func @transform_14(%arg0: i32) -> (i32, i32) {
    %c0_i32 = arith.constant 0 : i32
    %c0_i32_0 = arith.constant 0 : i32
    return %arg0, %c0_i32 : i32, i32
  }
}

</mosaic_0001>

<bundles_post_ra>
// kernel: tpu_custom_call.1
= control target key start
LH: loop header
LB: loop body
LE: loop exit
PB: predicated region body
PF: predicated region fallthrough
CT: control target
= control target key end

     0   :  { %s4873_s0 = inlined_call_operand.vmem [shape: f32[16,32], index: 0, kind: input, shape index: {}]   ;;  %s4874_s1 = inlined_call_operand.vmem [shape: f32[2,1,8], index: 1, kind: input, shape index: {}]   ;;  %s4875_s2 = inlined_call_operand.vmem [shape: bf16[32,96], index: 2, kind: input, shape index: {}]   ;;  %s4876_s3 = inlined_call_operand.vmem [shape: f32[1,96], index: 3, kind: input, shape index: {}]   ;;  %s4877_s4 = inlined_call_operand.vmem [shape: bf16[32,32], index: 4, kind: input, shape index: {}]   ;;  %s4878_s5 = inlined_call_operand.vmem [shape: f32[1,32], index: 5, kind: input, shape index: {}]   ;;  %s4879_s6 = inlined_call_operand.vmem [shape: f32[1,32], index: 6, kind: input, shape index: {}]   ;;  %s4880_s7 = inlined_call_operand.vmem [shape: f32[1,32], index: 7, kind: input, shape index: {}]   ;;  %s4881_s8 = inlined_call_operand.vmem [shape: f32[1,32], index: 8, kind: input, shape index: {}]   ;;  %s4882_s9 = inlined_call_operand.vmem [shape: f32[1,32], index: 9, kind: input, shape index: {}]   ;;  %s4883_s10 = inlined_call_operand.vmem [shape: bf16[32,2048], index: 10, kind: input, shape index: {}]   ;;  %s4884_s11 = inlined_call_operand.vmem [shape: f32[1,2048], index: 11, kind: input, shape index: {}]   ;;  %s4885_s12 = inlined_call_operand.vmem [shape: bf16[2048,32], index: 12, kind: input, shape index: {}]   ;;  %s4886_s13 = inlined_call_operand.vmem [shape: f32[1,32], index: 13, kind: input, shape index: {}]   ;;  %s4887_s14 = inlined_call_operand.hbm [shape: f32[16,32], index: 14, kind: output, shape index: {}]  }
   0x1   :  { %4888 = sst [smem:[#allocation5_spill]] %s4873_s0 }
   0x2   :  { %4889 = sst [smem:[#allocation6_spill]] %s4874_s1 }
   0x3   :  { %4890 = sst [smem:[#allocation7_spill]] %s4875_s2 }
   0x4   :  { %4891 = sst [smem:[#allocation8_spill]] %s4876_s3 }
   0x5   :  { %4892 = sst [smem:[#allocation9_spill]] %s4877_s4 }
   0x6   :  { %19 = vsyncpa [#allocation3], 0 }
   0x7   :  { %21 = vsyncpa [#allocation3 + $0x1], 0  ;;  %s4051_s29 = smov 0   ;;  %s4053_s30 = smov 0  }
   0x8   :  { %s4055_s15 = smov 0   ;;  %s4057_s16 = smov 0  }
   0x9 LB: > { %s4072_s17 = sadd.s32 4294967295, %s3962_s16   ;;  %s3237_s18 = sadd.s32 4294967294, %s3962_s16   ;;  %s3962_s16 = sphi %s4057_s16, %s4903_s16   ;;  %s3958_s15 = sphi %s4055_s15, %s4902_s15   ;;  %s3954_s30 = sphi %s4053_s30, %s4901_s30   ;;  %s3950_s29 = sphi %s4051_s29, %s4900_s29  }
   0xa   : > { %s4076_s19 = sadd.s32 1, %s3962_s16   ;;  %s338_s20 = sadd.s32 1, %s3958_s15 }
   0xb   : > { %s335_s21 = ssub.s32 %s3962_s16, %s4076_s19  ;;  %p348_p0 = scmp.ne.s32.totalorder %s3958_s15, %s3954_s30 }
   0xc   : > { %p336_p1 = scmp.eq.s32.totalorder %s335_s21, 0  ;;  %p349_p2 = scmp.eq.s32.totalorder %s4072_s17, 1 }
   0xd   : > { %p354_p3 = scmp.ne.s32.totalorder %s3954_s30, %s3950_s29  ;;  %p355_p4 = scmp.eq.s32.totalorder %s3237_s18, 1 }
   0xe   : > { %s4087_s22 = scalar_select %p336_p1, %s3958_s15, %s338_s20  }
   0xf   : > { %p4089_p5 = por %p349_p2, %p348_p0  ;;  %p4093_p6 = por %p355_p4, %p354_p3 }
  0x10   : > { %p3240_p7 = scmp.ge.s32.totalorder %s3962_s16, 1  ;;  %p422_p8 = scmp.lt.s32.totalorder %s3962_s16, 3 }
  0x12   : > { %p423_p9 = pnand %p3240_p7, %p422_p8 }
  0x13   : > { %p470_p10 = scmp.lt.s32.totalorder (!%p423_p9), %s4072_s17, 1  ;;  %s4895_s0 = sld [smem:[#allocation5_spill]] (!%p423_p9) }
  0x14   : > { %426 = sbr.rel (%p423_p9) target bundleno = 2630 (0xa46), region = 76  ;;  %s4896_s2 = sld [smem:[#allocation7_spill]] (!%p423_p9) }
  0x15   : > { %s4897_s3 = sld [smem:[#allocation8_spill]] (!%p423_p9)  ;;  %s3966_s28 = smov (!%p423_p9), 104  }
  0x16   : > { %s3968_s20 = smov (!%p423_p9), 112   ;;  %s3969_s21 = smov (!%p423_p9), 96  }
  0x17   : > { %s4898_s1 = sld [smem:[#allocation6_spill]] (!%p423_p9)  ;;  %s3971_s27 = smov (!%p423_p9), 8  }
  0x18   : > { %s4899_s4 = sld [smem:[#allocation9_spill]] (!%p423_p9) }
  0x19   : > { %s4101_s25 = scalar_select %p470_p10, %s4072_s17, 1  ;;  %vm482_vm0 = vcmask 261120   ;;  %v3964_v8 = vmov 0.0   ;;  %vm3965_vm1 = vmmov 0   ;;  %v3243_v14 = vld [vmem:[%s4879_s6] ss:$0 sm:$0xff] }
  0x1a   : > { %v3750_v7 = vld [vmem:[%s4896_s2 + $0x8] sm:$0xff]   ;;  %3636 = vmatprep.subr.bf16.mxu0 %v3964_v8  ;;  %3640 = vmatprep.mubr.msk.bf16.mxu0 %vm3965_vm1, %v3964_v8  ;;  %v3751_v9 = vld [vmem:[%s4896_s2] sm:$0xff]   ;;  %vm595_vm2 = vcmask 64512   ;;  %vm856_vm3 = vcmask 1043456   ;;  %vm1057_vm4 = vcmask 130048   ;;  %vm1059_vm5 = vcmask 195584  }
  0x1b   : > { %s3242_s26 = sshll.u32 %s4101_s25, 3  ;;  %3637 = vmatpush3.bf16.msra.mxu0 %v3750_v7  ;;  %3644 = vmatprep.subr.bf16.mxu1 %v3964_v8  ;;  %v3244_v16 = vld [vmem:[%s4880_s7] ss:$0 sm:$0xff]  ;;  %s3435_s2 = sshll.u32 %s4072_s17, 7 }
  0x1c   : > { %s473_s18 = scalar_lea.vmem %s4895_s0, %s3242_s26  ;;  %3638 = vmatprep.subr.bf16.mxu0 %v3964_v8  ;;  %3646 = vmatprep.mubr.msk.bf16.mxu1 %vm3965_vm1, %v3964_v8  ;;  %v3245_v20 = vld [vmem:[%s4897_s3] ss:$0 sm:$0xff]  ;;  %s467_s0 = sand.u32 1, %s3954_s30  }
  0x1d   : > { %v4107_v0 = vld [vmem:[%s473_s18] sm:$0xff]  ;;  %s3967_s18 = smov 120   ;;  %s3975_s3 = smov [#allocation2]  }
  0x1e   : > { %v483_v1 = vsel %vm482_vm0, %v4107_v0, 0.0  ;;  %s3906_s17 = sshll.u32 %s3975_s3, 4  ;;  %s3907_s17 = int_to_ptr.vmem [resolvable:$false] %s3906_s17 }
  0x1f   : > { %484 = vadd.xlane.f32.xlu0 %v483_v1  ;;  %3639 = vmatpush3.bf16.msra.mxu0 %v3751_v9 }
  0x20   : > { %3650 = vmatprep.subr.bf16.mxu0 %v3964_v8 }
  0xa8   : > { %v485_v2 = vpop.xlane.xlu0 %484 }
  0xa9   : > { %v487_v3 = vmul.f32 0.03125, %v485_v2 }
  0xab   : > { %v488_v4 = vsub.f32 %v4107_v0, %v487_v3 }
  0xad   : > { %v489_v5 = vmul.f32 %v488_v4, %v488_v4 }
  0xaf   : > { %v490_v6 = vsel %vm482_vm0, %v489_v5, 0.0 }
  0xb0   : > { %491 = vadd.xlane.f32.xlu0 %v490_v6 }
 0x139   : > { %v492_v10 = vpop.xlane.xlu0 %491 }
 0x13a   : > { %v493_v11 = vmul.f32 0.03125, %v492_v10 }
 0x13c   : > { %v494_v12 = vadd.f32 1e-05, %v493_v11 }
 0x13e   : > { %3882 = vrsqrt.f32 %v494_v12 }
 0x14b   : > { %v3883_v13 = vpop.eup %3882 }
 0x14c   : > { %v496_v15 = vmul.f32 %v3883_v13, %v488_v4 }
 0x14e   : > { %v503_v17 = vmul.f32 %v3243_v14, %v496_v15 }
 0x150   : > { %v510_v18 = vadd.f32 %v3244_v16, %v503_v17 }
 0x152   : > { %v511_v19 = vpack.c.bf16 %v510_v18, %v510_v18 }
 0x154   : > { %3641 = vmatmul.mubr.msk.bf16.vlgmr.msra.gmra.mxu0 %vm482_vm0, %v511_v19 }
 0x155   : > { %3652 = vmatprep.mubr.msk.bf16.mxu0 %vm3965_vm1, %v3964_v8 }
 0x214   : > { %v572_v21 = vpop.f32.mrf.mxu0 }
 0x215   : > { %v573_v22 = vadd.f32 %v3245_v20, %v572_v21 }
 0x216   : > { %v3642_v23 = vpop.f32.mrf.mxu0 }
 0x217   : > { %585 = vrot.lane.b32.xlu0 %v573_v22, %s3966_s28  ;;  %579 = vrot.lane.b32.xlu1 %v573_v22, %s3967_s18  ;;  %v4139_v26 = vpack.c.bf16 %v573_v22, %v573_v22  ;;  %s476_s28 = scalar_lea.vmem %s4898_s1, %s4101_s25  ;;  %s3970_s25 = smov 64  }
 0x218   : > { %v575_v24 = vpop.f32.mrf.mxu0  ;;  %v3253_v42 = vld [vmem:[%s476_s28] ss:$0 sm:$0xff]  ;;  %s3972_s28 = smov 16   ;;  %s3241_s1 = sshll.u32 %s467_s0, 3 }
 0x21a   : > { %v3643_v25 = vpop.f32.mrf.mxu0 }
 0x21b   : > { %582 = vrot.lane.b32.xlu1 %v573_v22, %s3968_s20  ;;  %s469_s20 = scalar_lea.vmem [#allocation2], %s3241_s1  ;;  %s3908_s1 = scalar_lea.vmem %s3907_s17, 256 }
 0x21f   : > { %593 = vrot.lane.b32.xlu1 %v4139_v26, %s3969_s21 }
 0x289   : > { %v580_v27 = vpop.permute.xlu1 %579  ;;  %v586_v31 = vpop.permute.xlu0 %585 }
 0x28a   : > { %v4142_v28 = vpack.c.bf16 %v580_v27, %v580_v27  ;;  %v4148_v33 = vpack.c.bf16 %v586_v31, %v586_v31 }
 0x28c   : > { %643 = vrot.lane.b32.xlu1 %v4142_v28, %s3969_s21 }
 0x28d   : > { %v583_v29 = vpop.permute.xlu1 %582 }
 0x28e   : > { %v4145_v30 = vpack.c.bf16 %v583_v29, %v583_v29 }
 0x290   : > { %692 = vrot.lane.b32.xlu1 %v4145_v30, %s3969_s21 }
 0x291   : > { %v594_v32 = vpop.permute.xlu1 %593 }
 0x292   : > { %v600_v34 = vsel %vm595_vm2, %v594_v32, 0 }
 0x293   : > { %3645 = vmatpush3.bf16.xpose.msra.mxu1 %v600_v34 }
 0x294   : > { %741 = vrot.lane.b32.xlu1 %v4148_v33, %s3969_s21  ;;  %3656 = vmatprep.subr.bf16.mxu1 %v3964_v8  ;;  %s3169_s21 = sshll.u32 %s469_s20, 4  ;;  %s3170_s21 = int_to_ptr.vmem [resolvable:$true] %s3169_s21 }
 0x295   : > { %s3902_s18 = scalar_lea.vmem %s3170_s21, 128  ;;  %p3909_p0 = scmp.lt.s32.totalorder %s3170_s21, %s3907_s17 }
 0x296   : > { %p3903_p11 = scmp.ne.s32.totalorder %s3170_s21, %s3902_s18  ;;  %p3910_p1 = scmp.lt.s32.totalorder %s3908_s1, %s3902_s18 }
 0x298   : > { %p3904_p12 = pnand %p3903_p11, %p4089_p5  ;;  %p3911_p2 = por %p3910_p1, %p3909_p0 }
 0x29a   : > { %3647 = vmatmul.mubr.msk.bf16.vlgmr.msra.gmra.mxu1 %vm595_vm2, %v4139_v26  ;;  %p3905_p13 = pneg %p3904_p12 }
 0x29b   : > { %3658 = vmatprep.mubr.msk.bf16.mxu1 %vm3965_vm1, %v3964_v8 }
 0x29c   : > { %p3912_p3 = pnand %p3911_p2, %p3905_p13 }
 0x2fe   : > { %v644_v35 = vpop.permute.xlu1 %643 }
 0x2ff   : > { %v649_v36 = vsel %vm595_vm2, %v644_v35, 0 }
 0x300   : > { %3651 = vmatpush3.bf16.xpose.msra.mxu0 %v649_v36 }
 0x301   : > { %3662 = vmatprep.subr.bf16.mxu0 %v3964_v8 }
 0x302   : > { %v693_v37 = vpop.permute.xlu1 %692 }
 0x303   : > { %v698_v38 = vsel %vm595_vm2, %v693_v37, 0 }
 0x304   : > { %3657 = vmatpush3.bf16.xpose.msra.mxu1 %v698_v38 }
 0x305   : > { %3668 = vmatprep.subr.bf16.mxu1 %v3964_v8 }
 0x306   : > { %v742_v39 = vpop.permute.xlu1 %741 }
 0x307   : > { %v747_v40 = vsel %vm595_vm2, %v742_v39, 0  ;;  %3653 = vmatmul.mubr.msk.bf16.vlgmr.msra.gmra.mxu0 %vm595_vm2, %v4142_v28 }
 0x308   : > { %3663 = vmatpush3.bf16.xpose.msra.mxu0 %v747_v40  ;;  %3664 = vmatprep.mubr.msk.bf16.mxu0 %vm3965_vm1, %v3964_v8 }
 0x309   : > { %3674 = vmatprep.subr.bf16.mxu0 %v3964_v8 }
 0x30b   : > { %3659 = vmatmul.mubr.msk.bf16.vlgmr.msra.gmra.mxu1 %vm595_vm2, %v4145_v30 }
 0x30c   : > { %3670 = vmatprep.mubr.msk.bf16.mxu1 %vm3965_vm1, %v3964_v8 }
 0x30f   : > { %3665 = vmatmul.mubr.msk.bf16.vlgmr.msra.gmra.mxu0 %vm595_vm2, %v4148_v33 }
 0x310   : > { %3676 = vmatprep.mubr.msk.bf16.mxu0 %vm3965_vm1, %v3964_v8 }
 0x35a   : > { %v636_v41 = vpop.f32.mrf.mxu1 }
 0x35b   : > { %v789_v43 = vmul.f32 0.35355338, %v636_v41 }
 0x35c   : > { %v3648_v44 = vpop.f32.mrf.mxu1 }
 0x35d   : > { %v799_v45 = vadd.f32 %v3253_v42, %v789_v43 }
 0x35e   : > { %v639_v46 = vpop.f32.mrf.mxu1 }
 0x35f   : > { %v803_v47 = vsel %vm595_vm2, %v799_v45, -inf }
 0x360   : > { %804 = vmax.xlane.f32.xlu1 %v803_v47  ;;  %v3649_v48 = vpop.f32.mrf.mxu1 }
 0x3c7   : > { %v685_v49 = vpop.f32.mrf.mxu0 }
 0x3c8   : > { %v790_v50 = vmul.f32 0.35355338, %v685_v49 }
 0x3c9   : > { %v3654_v51 = vpop.f32.mrf.mxu0 }
 0x3ca   : > { %v800_v52 = vadd.f32 %v3253_v42, %v790_v50 }
 0x3cb   : > { %v688_v53 = vpop.f32.mrf.mxu0  ;;  %v734_v54 = vpop.f32.mrf.mxu1 }
 0x3cc   : > { %v791_v55 = vmul.f32 0.35355338, %v734_v54  ;;  %v806_v56 = vsel %vm595_vm2, %v800_v52, -inf }
 0x3cd   : > { %v3660_v57 = vpop.f32.mrf.mxu1  ;;  %807 = vmax.xlane.f32.xlu0 %v806_v56  ;;  %v3655_v58 = vpop.f32.mrf.mxu0  ;;  %v3752_v56 = vld [vmem:[%s4899_s4 + $0x8] sm:$0xff]  }
 0x3ce   : > { %v801_v59 = vadd.f32 %v3253_v42, %v791_v55  ;;  %v3753_v57 = vld [vmem:[%s4899_s4] sm:$0xff]  }
 0x3cf   : > { %v737_v60 = vpop.f32.mrf.mxu1  ;;  %v783_v61 = vpop.f32.mrf.mxu0 }
 0x3d0   : > { %v792_v62 = vmul.f32 0.35355338, %v783_v61  ;;  %v809_v63 = vsel %vm595_vm2, %v801_v59, -inf }
 0x3d1   : > { %810 = vmax.xlane.f32.xlu1 %v809_v63  ;;  %v3661_v1 = vpop.f32.mrf.mxu1  ;;  %v3666_v2 = vpop.f32.mrf.mxu0 }
 0x3d2   : > { %v802_v3 = vadd.f32 %v3253_v42, %v792_v62 }
 0x3d3   : > { %v786_v4 = vpop.f32.mrf.mxu0 }
 0x3d4   : > { %v812_v5 = vsel %vm595_vm2, %v802_v3, -inf }
 0x3d5   : > { %813 = vmax.xlane.f32.xlu0 %v812_v5  ;;  %v3667_v6 = vpop.f32.mrf.mxu0 }
 0x3e2   : > { %851 = vrot.lane.b32.xlu1 %v4139_v26, %s3970_s25 }
 0x3e9   : > { %v805_v7 = vpop.xlane.xlu1 %804 }
 0x3ea   : > { %v815_v9 = vsub.f32 %v799_v45, %v805_v7 }
 0x3ec   : > { %v819_v10 = vmul.f32 1.442695, %v815_v9 }
 0x3ee   : > { %3884 = vpow2.f32 %v819_v10 }
 0x3fb   : > { %v3885_v11 = vpop.eup %3884 }
 0x3fc   : > { %v827_v12 = vsel %vm595_vm2, %v3885_v11, 0.0 }
 0x406   : > { %828 = vadd.xlane.f32.xlu1 %v827_v12 }
 0x456   : > { %v808_v13 = vpop.xlane.xlu0 %807 }
 0x457   : > { %v816_v14 = vsub.f32 %v800_v52, %v808_v13 }
 0x459   : > { %v821_v15 = vmul.f32 1.442695, %v816_v14  ;;  %v3258_v14 = vld [vmem:[%s4878_s5] ss:$0 sm:$0xff] }
 0x45a   : > { %v811_v16 = vpop.xlane.xlu1 %810 }
 0x45b   : > { %3886 = vpow2.f32 %v821_v15  ;;  %v817_v17 = vsub.f32 %v801_v59, %v811_v16 }
 0x45d   : > { %v823_v18 = vmul.f32 1.442695, %v817_v17 }
 0x45e   : > { %v852_v19 = vpop.permute.xlu1 %851  ;;  %v814_v20 = vpop.xlane.xlu0 %813 }
 0x45f   : > { %3888 = vpow2.f32 %v823_v18  ;;  %v858_v21 = vsel %vm856_vm3, %v852_v19, 0  ;;  %v818_v22 = vsub.f32 %v802_v3, %v814_v20 }
 0x460   : > { %3669 = vmatpush3.bf16.msra.mxu1 %v858_v21 }
 0x461   : > { %v825_v23 = vmul.f32 1.442695, %v818_v22  ;;  %3680 = vmatprep.subr.bf16.mxu1 %v3964_v8 }
 0x463   : > { %3890 = vpow2.f32 %v825_v23 }
 0x468   : > { %v3887_v24 = vpop.eup %3886 }
 0x469   : > { %v830_v25 = vsel %vm595_vm2, %v3887_v24, 0.0 }
 0x46a   : > { %831 = vadd.xlane.f32.xlu0 %v830_v25 }
 0x46c   : > { %v3889_v26 = vpop.eup %3888 }
 0x46d   : > { %v833_v27 = vsel %vm595_vm2, %v3889_v26, 0.0 }
 0x46e   : > { %834 = vadd.xlane.f32.xlu1 %v833_v27  ;;  %v1175_v27 = vld [vmem:[%s4883_s10 + $0x80] sm:$0xff] }
 0x470   : > { %v3891_v29 = vpop.eup %3890 }
 0x471   : > { %v836_v31 = vsel %vm595_vm2, %v3891_v29, 0.0 }
 0x472   : > { %837 = vadd.xlane.f32.xlu0 %v836_v31 }
 0x47f   : > { %948 = vrot.lane.b32.xlu1 %v4145_v30, %s3970_s25 }
 0x483   : > { %996 = vrot.lane.b32.xlu1 %v4148_v33, %s3970_s25 }
 0x488   : > { %900 = vrot.lane.b32.xlu0 %v4142_v28, %s3970_s25  ;;  %s3973_s25 = smov 24  }
 0x48f   : > { %v829_v32 = vpop.xlane.xlu1 %828 }
 0x490   : > { %3892 = vrcp.f32 %v829_v32  ;;  %v1184_v32 = vld [vmem:[%s4883_s10 + $0xc8] sm:$0xff] }
 0x49d   : > { %v3893_v34 = vpop.eup %3892 }
 0x49e   : > { %v843_v35 = vmul.f32 %v3893_v34, %v3885_v11 }
 0x4a0   : > { %v847_v36 = vpack.c.bf16 %v843_v35, %v843_v35 }
 0x4a2   : > { %3671 = vmatmul.mubr.msk.bf16.vlgmr.msra.gmra.mxu1 %vm595_vm2, %v847_v36 }
 0x4a3   : > { %3682 = vmatprep.mubr.msk.bf16.mxu1 %vm3965_vm1, %v3964_v8 }
 0x4f3   : > { %v832_v37 = vpop.xlane.xlu0 %831 }
 0x4f4   : > { %3894 = vrcp.f32 %v832_v37  ;;  %v1159_v37 = vld [vmem:[%s4883_s10] sm:$0xff] }
 0x4f7   : > { %v835_v38 = vpop.xlane.xlu1 %834 }
 0x4f8   : > { %3896 = vrcp.f32 %v835_v38  ;;  %v1167_v38 = vld [vmem:[%s4883_s10 + $0x40] sm:$0xff] }
 0x4fb   : > { %v949_v30 = vpop.permute.xlu1 %948  ;;  %v838_v39 = vpop.xlane.xlu0 %837 }
 0x4fc   : > { %v954_v33 = vsel %vm856_vm3, %v949_v30, 0  ;;  %3898 = vrcp.f32 %v838_v39  ;;  %v1160_v30 = vld [vmem:[%s4883_s10 + $0x8] sm:$0xff]  ;;  %v3265_v39 = vcombine.high %v1159_v37, %v1167_v38 }
 0x4fd   : > { %3681 = vmatpush3.bf16.msra.mxu1 %v954_v33  ;;  %v1168_v33 = vld [vmem:[%s4883_s10 + $0x48] sm:$0xff] }
 0x4fe   : > { %3692 = vmatprep.subr.bf16.mxu1 %v3964_v8 }
 0x4ff   : > { %v901_v28 = vpop.permute.xlu0 %900  ;;  %v997_v43 = vpop.permute.xlu1 %996 }
 0x500   : > { %v906_v40 = vsel %vm856_vm3, %v901_v28, 0  ;;  %v1002_v46 = vsel %vm856_vm3, %v997_v43, 0  ;;  %v3264_v28 = vcombine.low %v1159_v37, %v1167_v38  ;;  %v1185_v43 = vld [vmem:[%s4883_s10 + $0xd0] sm:$0xff] }
 0x501   : > { %v3895_v41 = vpop.eup %3894  ;;  %3675 = vmatpush3.bf16.msra.mxu0 %v906_v40  ;;  %v3266_v40 = vcombine.low %v1160_v30, %v1168_v33 }
 0x502   : > { %3686 = vmatprep.subr.bf16.mxu0 %v3964_v8  ;;  %v844_v42 = vmul.f32 %v3895_v41, %v3887_v24  ;;  %v3267_v41 = vcombine.high %v1160_v30, %v1168_v33  ;;  %v3754_v33 = vld [vmem:[%s4885_s12 + $0x78] sm:$0xff]  }
 0x504   : > { %v848_v44 = vpack.c.bf16 %v844_v42, %v844_v42  ;;  %v1177_v42 = vld [vmem:[%s4883_s10 + $0x90] sm:$0xff] }
 0x505   : > { %v3897_v45 = vpop.eup %3896 }
 0x506   : > { %3677 = vmatmul.mubr.msk.bf16.vlgmr.msra.gmra.mxu0 %vm595_vm2, %v848_v44  ;;  %v845_v47 = vmul.f32 %v3897_v45, %v3889_v26  ;;  %v1178_v44 = vld [vmem:[%s4883_s10 + $0x98] sm:$0xff]  ;;  %v3974_v45 = vmov 0  }
 0x507   : > { %3687 = vmatpush3.bf16.msra.mxu0 %v1002_v46  ;;  %3688 = vmatprep.mubr.msk.bf16.mxu0 %vm3965_vm1, %v3964_v8  ;;  %v3285_v46 = vcombine.high %v1177_v42, %v1185_v43 }
 0x508   : > { %v849_v48 = vpack.c.bf16 %v845_v47, %v845_v47  ;;  %v1186_v47 = vld [vmem:[%s4883_s10 + $0xd8] sm:$0xff] }
 0x509   : > { %v3899_v49 = vpop.eup %3898 }
 0x50a   : > { %3683 = vmatmul.mubr.msk.bf16.vlgmr.msra.gmra.mxu1 %vm595_vm2, %v849_v48  ;;  %v846_v50 = vmul.f32 %v3899_v49, %v3891_v29  ;;  %v1176_v29 = vld [vmem:[%s4883_s10 + $0x88] sm:$0xff]  ;;  %v3284_v48 = vcombine.low %v1177_v42, %v1185_v43  ;;  %v3286_v49 = vcombine.low %v1178_v44, %v1186_v47  ;;  %v3758_v42 = vld [vmem:[%s4885_s12 + $0x70] sm:$0xff]  }
 0x50b   : > { %3696 = vmatprep.mubr.msk.bf16.mxu1 %vm3965_vm1, %v3964_v8  ;;  %3693 = vmatpush3.bf16.msra.mxu1 %v3752_v56  ;;  %v3282_v35 = vcombine.low %v1176_v29, %v1184_v32  ;;  %v3283_v36 = vcombine.high %v1176_v29, %v1184_v32  ;;  %v1165_v29 = vld [vmem:[%s4883_s10 + $0x30] sm:$0xff]  ;;  %v1166_v32 = vld [vmem:[%s4883_s10 + $0x38] sm:$0xff] }
 0x50c   : > { %v850_v51 = vpack.c.bf16 %v846_v50, %v846_v50  ;;  %3694 = vmatprep.subr.bf16.mxu1 %v3964_v8  ;;  %v3287_v50 = vcombine.high %v1178_v44, %v1186_v47  ;;  %v3759_v43 = vld [vmem:[%s4885_s12 + $0xf0] sm:$0xff]   ;;  %v3763_v47 = vld [vmem:[%s4885_s12 + $0xe8] sm:$0xff]  }
 0x50d   : > { %v3760_v44 = vld [vmem:[%s4885_s12 + $0x30] sm:$0xff]  }
 0x50e   : > { %3689 = vmatmul.mubr.msk.bf16.vlgmr.msra.gmra.mxu0 %vm595_vm2, %v850_v51 }
 0x50f   : > { %3695 = vmatpush3.bf16.msra.mxu1 %v3753_v57  ;;  %1470 = vmatprep.mubr.bf16.mxu0 %v3974_v45  ;;  %v3263_v57 = vld [vmem:[%s4882_s9] ss:$0 sm:$0xff] }
 0x510   : > { %1491 = vmatprep.subr.bf16.mxu1 %v3283_v36 }
 0x562   : > { %v894_v52 = vpop.f32.mrf.mxu1 }
 0x564   : > { %v3672_v53 = vpop.f32.mrf.mxu1 }
 0x566   : > { %v897_v54 = vpop.f32.mrf.mxu1 }
 0x568   : > { %v3673_v55 = vpop.f32.mrf.mxu1 }
 0x569   : > { %v3262_v55 = vld [vmem:[%s4881_s8] ss:$0 sm:$0xff] }
 0x5c6   : > { %v942_v58 = vpop.f32.mrf.mxu0 }
 0x5c7   : > { %1045 = vrot.lane.b32.xlu0 %v942_v58, %s3971_s27 }
 0x5c8   : > { %v3678_v59 = vpop.f32.mrf.mxu0 }
 0x5c9   : > { %v1161_v59 = vld [vmem:[%s4883_s10 + $0x10] sm:$0xff] }
 0x5ca   : > { %v945_v60 = vpop.f32.mrf.mxu0  ;;  %v990_v61 = vpop.f32.mrf.mxu1 }
 0x5cb   : > { %1049 = vrot.lane.b32.xlu1 %v990_v61, %s3972_s28  ;;  %v1169_v60 = vld [vmem:[%s4883_s10 + $0x50] sm:$0xff]  ;;  %v1162_v61 = vld [vmem:[%s4883_s10 + $0x18] sm:$0xff]  ;;  %s3167_s28 = scalar_lea.hbm %s4887_s14, %s3435_s2 }
 0x5cc   : > { %v3679_v62 = vpop.f32.mrf.mxu0  ;;  %v3684_v63 = vpop.f32.mrf.mxu1 }
 0x5cd   : > { %v1170_v62 = vld [vmem:[%s4883_s10 + $0x58] sm:$0xff] }
 0x5ce   : > { %v993_v1 = vpop.f32.mrf.mxu1  ;;  %v1038_v2 = vpop.f32.mrf.mxu0 }
 0x5cf   : > { %1053 = vrot.lane.b32.xlu0 %v1038_v2, %s3973_s25  ;;  %v3269_v2 = vcombine.high %v1161_v59, %v1169_v60  ;;  %s3156_s25 = scalar_lea.sflag [#allocation3], %s467_s0 }
 0x5d0   : > { %v3685_v8 = vpop.f32.mrf.mxu1  ;;  %v3690_v3 = vpop.f32.mrf.mxu0 }
 0x5d1   : > { %v3271_v8 = vcombine.high %v1162_v61, %v1170_v62  ;;  %v1179_v3 = vld [vmem:[%s4883_s10 + $0xa0] sm:$0xff] }
 0x5d2   : > { %v1041_v4 = vpop.f32.mrf.mxu0 }
 0x5d3   : > { %v1187_v4 = vld [vmem:[%s4883_s10 + $0xe0] sm:$0xff] }
 0x5d4   : > { %v3691_v5 = vpop.f32.mrf.mxu0 }
 0x5d5   : > { %v1180_v5 = vld [vmem:[%s4883_s10 + $0xa8] sm:$0xff] }
 0x639   : > { %v1046_v6 = vpop.permute.xlu0 %1045 }
 0x63a   : > { %v1056_v9 = vsel %vm595_vm2, %v894_v52, %v1046_v6  ;;  %v1188_v6 = vld [vmem:[%s4883_s10 + $0xe8] sm:$0xff] }
 0x63d   : > { %v1050_v7 = vpop.permute.xlu1 %1049 }
 0x63e   : > { %v1058_v10 = vsel %vm1057_vm4, %v1056_v9, %v1050_v7  ;;  %v3268_v7 = vcombine.low %v1161_v59, %v1169_v60  ;;  %v3270_v9 = vcombine.low %v1162_v61, %v1170_v62  ;;  %v3775_v59 = vld [vmem:[%s4885_s12 + $0xd0] sm:$0xff]   ;;  %v3778_v62 = vld [vmem:[%s4885_s12 + $0x48] sm:$0xff]  }
 0x63f   : > { %v3776_v60 = vld [vmem:[%s4885_s12 + $0x10] sm:$0xff]  }
 0x640   : > { %v3777_v61 = vld [vmem:[%s4885_s12 + $0x90] sm:$0xff]  }
 0x641   : > { %v1054_v11 = vpop.permute.xlu0 %1053 }
 0x642   : > { %v1060_v12 = vsel %vm1059_vm5, %v1058_v10, %v1054_v11  ;;  %v3289_v10 = vcombine.high %v1179_v3, %v1187_v4  ;;  %v3291_v11 = vcombine.high %v1180_v5, %v1188_v6 }
 0x643   : > { %v1061_v13 = vpack.c.bf16 %v1060_v12, %v1060_v12  ;;  %v1163_v12 = vld [vmem:[%s4883_s10 + $0x20] sm:$0xff] }
 0x645   : > { %3697 = vmatmul.mubr.msk.bf16.vlgmr.msra.gmra.mxu1 %vm482_vm0, %v1061_v13  ;;  %v1171_v13 = vld [vmem:[%s4883_s10 + $0x60] sm:$0xff] }
 0x646   : > { %1492 = vmatpush1.bf16.msra.mxu1 %v3282_v35  ;;  %1511 = vmatprep.mubr.bf16.mxu1 %v3974_v45 }
 0x647   : > { %1493 = vmatprep.subr.bf16.mxu1 %v3267_v41  ;;  %v3757_v41 = vld [vmem:[%s4885_s12 + $0xb8] sm:$0xff]  }
 0x64a   : > { %1494 = vmatpush1.bf16.msra.mxu1 %v3266_v40  ;;  %v3756_v40 = vld [vmem:[%s4885_s12 + $0x38] sm:$0xff]  }
 0x64b   : > { %1573 = vmatprep.subr.bf16.mxu1 %v3287_v50  ;;  %v3766_v50 = vld [vmem:[%s4885_s12 + $0x60] sm:$0xff]  }
 0x705   : > { %v1122_v15 = vpop.f32.mrf.mxu1 }
 0x706   : > { %v1123_v16 = vadd.f32 %v3258_v14, %v1122_v15  ;;  %v1164_v14 = vld [vmem:[%s4883_s10 + $0x28] sm:$0xff] }
 0x707   : > { %v3698_v17 = vpop.f32.mrf.mxu1  ;;  %v1172_v15 = vld [vmem:[%s4883_s10 + $0x68] sm:$0xff] }
 0x708   : > { %v4225_v18 = vadd.f32 %v1123_v16, %v4107_v0  ;;  %v1183_v0 = vld [vmem:[%s4883_s10 + $0xc0] sm:$0xff]  ;;  %v3288_v16 = vcombine.low %v1179_v3, %v1187_v4  ;;  %v3290_v17 = vcombine.low %v1180_v5, %v1188_v6  ;;  %v3786_v6 = vld [vmem:[%s4885_s12 + $0x178] sm:$0xff]  }
 0x709   : > { %v1125_v19 = vpop.f32.mrf.mxu1  ;;  %v3281_v31 = vcombine.high %v1175_v27, %v1183_v0  ;;  %v3280_v34 = vcombine.low %v1175_v27, %v1183_v0  ;;  %v3783_v3 = vld [vmem:[%s4885_s12 + $0xc0] sm:$0xff]  }
 0x70a   : > { %v1131_v20 = vsel %vm482_vm0, %v4225_v18, 0.0  ;;  %v3273_v19 = vcombine.high %v1163_v12, %v1171_v13  ;;  %v3784_v4 = vld [vmem:[%s4885_s12] sm:$0xff]  }
 0x70b   : > { %1132 = vadd.xlane.f32.xlu1 %v1131_v20  ;;  %v3699_v21 = vpop.f32.mrf.mxu1  ;;  %1450 = vmatprep.subr.bf16.mxu0 %v3281_v31  ;;  %v3275_v20 = vcombine.high %v1164_v14, %v1172_v15  ;;  %v1173_v31 = vld [vmem:[%s4883_s10 + $0x70] sm:$0xff]  ;;  %v3785_v5 = vld [vmem:[%s4885_s12 + $0x80] sm:$0xff]  }
 0x70c   : > { %1451 = vmatpush1.bf16.msra.mxu0 %v3280_v34  ;;  %v1181_v21 = vld [vmem:[%s4883_s10 + $0xb0] sm:$0xff]  ;;  %v1174_v34 = vld [vmem:[%s4883_s10 + $0x78] sm:$0xff]  ;;  %v3277_v37 = vcombine.high %v1165_v29, %v1173_v31  ;;  %v3276_v30 = vcombine.low %v1165_v29, %v1173_v31 }
 0x70d   : > { %1452 = vmatprep.subr.bf16.mxu0 %v3265_v39  ;;  %v3279_v38 = vcombine.high %v1166_v32, %v1174_v34  ;;  %v3278_v39 = vcombine.low %v1166_v32, %v1174_v34 }
 0x710   : > { %1453 = vmatpush1.bf16.msra.mxu0 %v3264_v28  ;;  %v3755_v28 = vld [vmem:[%s4885_s12 + $0xf8] sm:$0xff]  }
 0x711   : > { %1532 = vmatprep.subr.bf16.mxu0 %v3285_v46  ;;  %v3762_v46 = vld [vmem:[%s4885_s12 + $0x68] sm:$0xff]  }
 0x794   : > { %v1133_v22 = vpop.xlane.xlu1 %1132 }
 0x795   : > { %v1134_v23 = vmul.f32 0.03125, %v1133_v22  ;;  %v1189_v22 = vld [vmem:[%s4883_s10 + $0xf0] sm:$0xff] }
 0x796   : > { %v3293_v27 = vcombine.high %v1181_v21, %v1189_v22  ;;  %v3292_v35 = vcombine.low %v1181_v21, %v1189_v22 }
 0x797   : > { %v1135_v24 = vsub.f32 %v4225_v18, %v1134_v23  ;;  %v1182_v23 = vld [vmem:[%s4883_s10 + $0xb8] sm:$0xff] }
 0x799   : > { %v1136_v25 = vmul.f32 %v1135_v24, %v1135_v24 }
 0x79b   : > { %v1137_v26 = vsel %vm482_vm0, %v1136_v25, 0.0  ;;  %v3272_v25 = vcombine.low %v1163_v12, %v1171_v13  ;;  %v4467_v12 = vld [vmem:[%s4884_s11 + $0x8] sm:$0xff] }
 0x79c   : > { %1138 = vadd.xlane.f32.xlu0 %v1137_v26  ;;  %v3274_v26 = vcombine.low %v1164_v14, %v1172_v15 }
 0x825   : > { %v1139_v51 = vpop.xlane.xlu0 %1138 }
 0x826   : > { %v1140_v52 = vmul.f32 0.03125, %v1139_v51  ;;  %v3767_v51 = vld [vmem:[%s4885_s12 + $0xe0] sm:$0xff]  }
 0x828   : > { %v1141_v53 = vadd.f32 1e-05, %v1140_v52  ;;  %v3768_v52 = vld [vmem:[%s4885_s12 + $0x20] sm:$0xff]  }
 0x82a   : > { %3900 = vrsqrt.f32 %v1141_v53  ;;  %v3769_v53 = vld [vmem:[%s4885_s12 + $0xa0] sm:$0xff]  }
 0x837   : > { %v3901_v54 = vpop.eup %3900 }
 0x838   : > { %v1143_v56 = vmul.f32 %v3901_v54, %v1135_v24  ;;  %v1190_v24 = vld [vmem:[%s4883_s10 + $0xf8] sm:$0xff] }
 0x839   : > { %v3295_v0 = vcombine.high %v1182_v23, %v1190_v24  ;;  %v3294_v36 = vcombine.low %v1182_v23, %v1190_v24  ;;  %v3770_v54 = vld [vmem:[%s4885_s12 + $0x58] sm:$0xff]  }
 0x83a   : > { %v1150_v58 = vmul.f32 %v3262_v55, %v1143_v56  ;;  %v3771_v55 = vld [vmem:[%s4885_s12 + $0xd8] sm:$0xff]  }
 0x83b   : > { %v3772_v56 = vld [vmem:[%s4885_s12 + $0x18] sm:$0xff]  }
 0x83c   : > { %v1157_v63 = vadd.f32 %v3263_v57, %v1150_v58  ;;  %v3773_v57 = vld [vmem:[%s4885_s12 + $0x98] sm:$0xff]   ;;  %v3774_v58 = vld [vmem:[%s4885_s12 + $0x50] sm:$0xff]  }
 0x83e   : > { %v4287_v1 = vpack.c.bf16 %v1157_v63, %v1157_v63  ;;  %v3779_v63 = vld [vmem:[%s4885_s12 + $0xc8] sm:$0xff]  }
 0x840   : > { %3296 = vmatmul.mubr.msk.bf16.vlgmr.msra.gmra.mxu0 %vm482_vm0, %v4287_v1  ;;  %3297 = vmatmul.mubr.msk.bf16.vlgmr.msra.gmra.mxu1 %vm482_vm0, %v4287_v1 }
 0x841   : > { %1533 = vmatpush1.bf16.msra.mxu0 %v3284_v48  ;;  %1574 = vmatpush1.bf16.msra.mxu1 %v3286_v49  ;;  %v3764_v48 = vld [vmem:[%s4885_s12 + $0x28] sm:$0xff]  }
 0x842   : > { %1534 = vmatprep.subr.bf16.mxu0 %v3269_v2  ;;  %1575 = vmatprep.subr.bf16.mxu1 %v3271_v8  ;;  %v3765_v49 = vld [vmem:[%s4885_s12 + $0xa8] sm:$0xff]   ;;  %v3782_v8 = vld [vmem:[%s4885_s12 + $0x40] sm:$0xff]  }
 0x843   : > { %1552 = vmatprep.mubr.bf16.mxu0 %v3974_v45  ;;  %1593 = vmatprep.mubr.bf16.mxu1 %v3974_v45  ;;  %v3781_v2 = vld [vmem:[%s4885_s12 + $0x88] sm:$0xff]  }
 0x845   : > { %1535 = vmatpush1.bf16.msra.mxu0 %v3268_v7  ;;  %1576 = vmatpush1.bf16.msra.mxu1 %v3270_v9  ;;  %v3787_v7 = vld [vmem:[%s4885_s12 + $0x1f8] sm:$0xff]   ;;  %v1195_v9 = vlaneseq }
 0x846   : > { %1614 = vmatprep.subr.bf16.mxu0 %v3289_v10  ;;  %1655 = vmatprep.subr.bf16.mxu1 %v3291_v11 }
 0x847   : > { %v4461_v10 = vshrl.u32 %v1195_v9, 7 }
 0x848   : > { %3298 = vmatmul.mubr.msk.bf16.vlgmr.msra.gmra.mxu0 %vm482_vm0, %v4287_v1  ;;  %3299 = vmatmul.mubr.msk.bf16.vlgmr.msra.gmra.mxu1 %vm482_vm0, %v4287_v1 }
 0x849   : > { %1615 = vmatpush1.bf16.msra.mxu0 %v3288_v16  ;;  %1656 = vmatpush1.bf16.msra.mxu1 %v3290_v17  ;;  %v1221_v11 = vsub.s32 6, %v4461_v10  ;;  %v1197_v14 = vsub.s32 0, %v4461_v10  ;;  %v1205_v15 = vsub.s32 2, %v4461_v10  ;;  %v4479_v16 = vld [vmem:[%s4884_s11] sm:$0xff]  ;;  %v1201_v17 = vsub.s32 1, %v4461_v10 }
 0x84a   : > { %1616 = vmatprep.subr.bf16.mxu0 %v3273_v19  ;;  %1657 = vmatprep.subr.bf16.mxu1 %v3275_v20  ;;  %v1209_v19 = vsub.s32 3, %v4461_v10  ;;  %v1217_v34 = vsub.s32 5, %v4461_v10 }
 0x84b   : > { %1634 = vmatprep.mubr.bf16.mxu0 %v3974_v45  ;;  %1675 = vmatprep.mubr.bf16.mxu1 %v3974_v45  ;;  %v4472_v13 = vrot.slane %v4467_v12, %v1221_v11  ;;  %v1198_v20 = vrot.slane %v4479_v16, %v1197_v14  ;;  %v1206_v21 = vrot.slane %v4479_v16, %v1205_v15 }
 0x84c   : > { %v1202_v22 = vrot.slane %v4479_v16, %v1201_v17  ;;  %v1210_v23 = vrot.slane %v4479_v16, %v1209_v19 }
 0x84d   : > { %1617 = vmatpush1.bf16.msra.mxu0 %v3272_v25  ;;  %1658 = vmatpush1.bf16.msra.mxu1 %v3274_v26 }
 0x84e   : > { %1696 = vmatprep.subr.bf16.mxu0 %v3293_v27  ;;  %1737 = vmatprep.subr.bf16.mxu1 %v3295_v0 }
 0x850   : > { %3300 = vmatmul.mubr.msk.bf16.vlgmr.msra.gmra.mxu0 %vm482_vm0, %v4287_v1  ;;  %3301 = vmatmul.mubr.msk.bf16.vlgmr.msra.gmra.mxu1 %vm482_vm0, %v4287_v1 }
 0x851   : > { %1697 = vmatpush1.bf16.msra.mxu0 %v3292_v35  ;;  %1738 = vmatpush1.bf16.msra.mxu1 %v3294_v36  ;;  %v1225_v35 = vsub.s32 7, %v4461_v10 }
 0x852   : > { %1698 = vmatprep.subr.bf16.mxu0 %v3277_v37  ;;  %1739 = vmatprep.subr.bf16.mxu1 %v3279_v38 }
 0x853   : > { %1716 = vmatprep.mubr.bf16.mxu0 %v3974_v45  ;;  %1757 = vmatprep.mubr.bf16.mxu1 %v3974_v45  ;;  %v3761_v45 = vld [vmem:[%s4885_s12 + $0xb0] sm:$0xff]  }
 0x855   : > { %1699 = vmatpush1.bf16.msra.mxu0 %v3276_v30  ;;  %1740 = vmatpush1.bf16.msra.mxu1 %v3278_v39 }
 0x856   : > { %3460 = vmatprep.subr.bf16.mxu0 %v3754_v33  ;;  %3482 = vmatprep.subr.bf16.mxu1 %v3755_v28 }
 0x858   : > { %3302 = vmatmul.mubr.msk.bf16.vlgmr.msra.gmra.mxu0 %vm482_vm0, %v4287_v1  ;;  %3303 = vmatmul.mubr.msk.bf16.vlgmr.msra.gmra.mxu1 %vm482_vm0, %v4287_v1  ;;  %v3780_v1 = vld [vmem:[%s4885_s12 + $0x8] sm:$0xff]  }
 0x859   : > { %3461 = vmatpush3.bf16.msra.mxu0 %v3756_v40  ;;  %3483 = vmatpush3.bf16.msra.mxu1 %v3757_v41 }
 0x85a   : > { %3462 = vmatprep.subr.bf16.mxu0 %v3758_v42  ;;  %3484 = vmatprep.subr.bf16.mxu1 %v3759_v43  ;;  %v1218_v43 = vrot.slane %v4479_v16, %v1217_v34 }
 0x85d   : > { %3463 = vmatpush3.bf16.msra.mxu0 %v3760_v44  ;;  %3485 = vmatpush3.bf16.msra.mxu1 %v3761_v45  ;;  %v1226_v44 = vrot.slane %v4479_v16, %v1225_v35  ;;  %v3788_v45 = vld [vmem:[%s4885_s12 + $0x138] sm:$0xff]  }
 0x85e   : > { %3464 = vmatprep.subr.bf16.mxu0 %v3762_v46  ;;  %3486 = vmatprep.subr.bf16.mxu1 %v3763_v47  ;;  %v3789_v46 = vld [vmem:[%s4885_s12 + $0x1b8] sm:$0xff]  }
 0x861   : > { %3465 = vmatpush3.bf16.msra.mxu0 %v3764_v48  ;;  %3487 = vmatpush3.bf16.msra.mxu1 %v3765_v49 }
 0x862   : > { %3466 = vmatprep.subr.bf16.mxu0 %v3766_v50  ;;  %3488 = vmatprep.subr.bf16.mxu1 %v3767_v51  ;;  %v3790_v51 = vld [vmem:[%s4885_s12 + $0x170] sm:$0xff]  }
 0x865   : > { %3467 = vmatpush3.bf16.msra.mxu0 %v3768_v52  ;;  %3489 = vmatpush3.bf16.msra.mxu1 %v3769_v53  ;;  %v3791_v52 = vld [vmem:[%s4885_s12 + $0x1f0] sm:$0xff]  }
 0x866   : > { %3468 = vmatprep.subr.bf16.mxu0 %v3770_v54  ;;  %3490 = vmatprep.subr.bf16.mxu1 %v3771_v55 }
 0x869   : > { %3469 = vmatpush3.bf16.msra.mxu0 %v3772_v56  ;;  %3491 = vmatpush3.bf16.msra.mxu1 %v3773_v57  ;;  %v3792_v57 = vld [vmem:[%s4885_s12 + $0x130] sm:$0xff]  }
 0x86a   : > { %3470 = vmatprep.subr.bf16.mxu0 %v3774_v58  ;;  %3492 = vmatprep.subr.bf16.mxu1 %v3775_v59  ;;  %v3793_v58 = vld [vmem:[%s4885_s12 + $0x1b0] sm:$0xff]  }
 0x86d   : > { %3471 = vmatpush3.bf16.msra.mxu0 %v3776_v60  ;;  %3493 = vmatpush3.bf16.msra.mxu1 %v3777_v61  ;;  %v3794_v61 = vld [vmem:[%s4885_s12 + $0x168] sm:$0xff]  }
 0x86e   : > { %3472 = vmatprep.subr.bf16.mxu0 %v3778_v62  ;;  %3494 = vmatprep.subr.bf16.mxu1 %v3779_v63  ;;  %v3795_v62 = vld [vmem:[%s4885_s12 + $0x1e8] sm:$0xff]  }
 0x871   : > { %3473 = vmatpush3.bf16.msra.mxu0 %v3780_v1  ;;  %3495 = vmatpush3.bf16.msra.mxu1 %v3781_v2 }
 0x872   : > { %3474 = vmatprep.subr.bf16.mxu0 %v3782_v8  ;;  %3496 = vmatprep.subr.bf16.mxu1 %v3783_v3 }
 0x875   : > { %3475 = vmatpush3.bf16.msra.mxu0 %v3784_v4  ;;  %3497 = vmatpush3.bf16.msra.mxu1 %v3785_v5  ;;  %v3796_v5 = vld [vmem:[%s4885_s12 + $0x128] sm:$0xff]  }
 0x876   : > { %3504 = vmatprep.subr.bf16.mxu0 %v3786_v6  ;;  %3526 = vmatprep.subr.bf16.mxu1 %v3787_v7  ;;  %v3797_v6 = vld [vmem:[%s4885_s12 + $0x1a8] sm:$0xff]  }
 0x900   : > { %v1472_v24 = vpop.f32.mrf.mxu0  ;;  %v1513_v25 = vpop.f32.mrf.mxu1 }
 0x901   : > { %v1473_v26 = vadd.f32 %v1472_v24, %v1198_v20  ;;  %v1514_v27 = vadd.f32 %v1513_v25, %v1206_v21  ;;  %v3798_v20 = vld [vmem:[%s4885_s12 + $0x160] sm:$0xff]   ;;  %v1213_v24 = vsub.s32 4, %v4461_v10 }
 0x902   : > { %v1474_v0 = vpop.f32.mrf.mxu0  ;;  %v1515_v29 = vpop.f32.mrf.mxu1  ;;  %v3799_v21 = vld [vmem:[%s4885_s12 + $0x1e0] sm:$0xff]  }
 0x903   : > { %v1475_v31 = vadd.f32 %v1474_v0, %v1202_v22  ;;  %v1516_v32 = vadd.f32 %v1515_v29, %v1210_v23  ;;  %v1766_v36 = vmax.f32 %v1473_v26, 0.0  ;;  %v1768_v37 = vmax.f32 %v1514_v27, 0.0  ;;  %v3800_v25 = vld [vmem:[%s4885_s12 + $0x120] sm:$0xff]   ;;  %v3802_v29 = vld [vmem:[%s4885_s12 + $0x158] sm:$0xff]  }
 0x904   : > { %v1476_v38 = vpop.f32.mrf.mxu0  ;;  %v1517_v30 = vpop.f32.mrf.mxu1  ;;  %v3801_v26 = vld [vmem:[%s4885_s12 + $0x1a0] sm:$0xff]  }
 0x905   : > { %v1767_v39 = vmax.f32 %v1475_v31, 0.0  ;;  %v1769_v33 = vmax.f32 %v1516_v32, 0.0  ;;  %v1782_v47 = vpack.c.bf16 %v1766_v36, %v1766_v36  ;;  %v1784_v48 = vpack.c.bf16 %v1768_v37, %v1768_v37  ;;  %v3803_v31 = vld [vmem:[%s4885_s12 + $0x1d8] sm:$0xff]  }
 0x906   : > { %v1477_v28 = vpop.f32.mrf.mxu0  ;;  %v1518_v40 = vpop.f32.mrf.mxu1  ;;  %v1246_v32 = vrot.slane %v4467_v12, %v1213_v24  ;;  %v3804_v38 = vld [vmem:[%s4885_s12 + $0x118] sm:$0xff]  }
 0x907   : > { %v1783_v41 = vpack.c.bf16 %v1767_v39, %v1767_v39  ;;  %v1785_v42 = vpack.c.bf16 %v1769_v33, %v1769_v33  ;;  %v3805_v30 = vld [vmem:[%s4885_s12 + $0x198] sm:$0xff]   ;;  %v3806_v28 = vld [vmem:[%s4885_s12 + $0x150] sm:$0xff]  }
 0x908   : > { %v4509_v49 = vpop.f32.mrf.mxu0  ;;  %v4511_v50 = vpop.f32.mrf.mxu1  ;;  %v3807_v40 = vld [vmem:[%s4885_s12 + $0x1d0] sm:$0xff]  }
 0x909   : > { %2861 = vmatprep.mubr.bf16.mxu0 %v1783_v41  ;;  %2901 = vmatprep.mubr.bf16.mxu1 %v1785_v42 }
 0x90a   : > { %v1556_v53 = vpop.f32.mrf.mxu0  ;;  %v1597_v54 = vpop.f32.mrf.mxu1  ;;  %2862 = vmatmul.mubr.bf16.vlgmr.msra.gmra.mxu0 %v1782_v47  ;;  %2902 = vmatmul.mubr.bf16.vlgmr.msra.gmra.mxu1 %v1784_v48  ;;  %v1214_v47 = vrot.slane %v4479_v16, %v1213_v24 }
 0x90b   : > { %v1557_v55 = vadd.f32 %v1556_v53, %v1218_v43  ;;  %v1598_v56 = vadd.f32 %v1597_v54, %v1226_v44  ;;  %3505 = vmatpush3.bf16.msra.mxu0 %v3788_v45  ;;  %3527 = vmatpush3.bf16.msra.mxu1 %v3789_v46  ;;  %v3808_v45 = vld [vmem:[%s4885_s12 + $0x110] sm:$0xff]   ;;  %v3811_v53 = vld [vmem:[%s4885_s12 + $0x1c8] sm:$0xff]   ;;  %v1234_v54 = vrot.slane %v4467_v12, %v1201_v17 }
 0x90c   : > { %v1558_v59 = vpop.f32.mrf.mxu0  ;;  %v1599_v60 = vpop.f32.mrf.mxu1  ;;  %3506 = vmatprep.subr.bf16.mxu0 %v3790_v51  ;;  %3528 = vmatprep.subr.bf16.mxu1 %v3791_v52  ;;  %v3809_v46 = vld [vmem:[%s4885_s12 + $0x190] sm:$0xff]   ;;  %v3810_v52 = vld [vmem:[%s4885_s12 + $0x148] sm:$0xff]  }
 0x90d   : > { %v1771_v63 = vmax.f32 %v1557_v55, 0.0  ;;  %v1773_v1 = vmax.f32 %v1598_v56, 0.0  ;;  %v3812_v56 = vld [vmem:[%s4885_s12 + $0x108] sm:$0xff]   ;;  %v3815_v59 = vld [vmem:[%s4885_s12 + $0x1c0] sm:$0xff]  }
 0x90e   : > { %v1559_v2 = vpop.f32.mrf.mxu0  ;;  %v1600_v8 = vpop.f32.mrf.mxu1 }
 0x90f   : > { %v1787_v3 = vpack.c.bf16 %v1771_v63, %v1771_v63  ;;  %v1789_v4 = vpack.c.bf16 %v1773_v1, %v1773_v1  ;;  %3507 = vmatpush3.bf16.msra.mxu0 %v3792_v57  ;;  %3529 = vmatpush3.bf16.msra.mxu1 %v3793_v58  ;;  %v3813_v57 = vld [vmem:[%s4885_s12 + $0x188] sm:$0xff]   ;;  %v1555_v58 = vadd.f32 %v4509_v49, %v1214_v47  ;;  %v3816_v49 = vld [vmem:[%s4885_s12 + $0x100] sm:$0xff]   ;;  %v3818_v1 = vld [vmem:[%s4885_s12 + $0x278] sm:$0xff]  }
 0x910   : > { %v4537_v7 = vpop.f32.mrf.mxu0  ;;  %v4539_v9 = vpop.f32.mrf.mxu1  ;;  %3508 = vmatprep.subr.bf16.mxu0 %v3794_v61  ;;  %3530 = vmatprep.subr.bf16.mxu1 %v3795_v62  ;;  %v3819_v2 = vld [vmem:[%s4885_s12 + $0x2f8] sm:$0xff]   ;;  %v1230_v47 = vrot.slane %v4467_v12, %v1197_v14  ;;  %v1250_v14 = vrot.slane %v4467_v12, %v1217_v34  ;;  %v3846_v34 = vld [vmem:[%s4885_s12 + $0x240] sm:$0xff]  }
 0x911   : > { %2941 = vmatprep.mubr.bf16.mxu0 %v1787_v3  ;;  %2981 = vmatprep.mubr.bf16.mxu1 %v1789_v4  ;;  %v1770_v62 = vmax.f32 %v1555_v58, 0.0  ;;  %v3820_v4 = vld [vmem:[%s4885_s12 + $0x238] sm:$0xff]  }
 0x912   : > { %v1638_v22 = vpop.f32.mrf.mxu0  ;;  %v1679_v23 = vpop.f32.mrf.mxu1 }
 0x913   : > { %3509 = vmatpush3.bf16.msra.mxu0 %v3796_v5  ;;  %3531 = vmatpush3.bf16.msra.mxu1 %v3797_v6  ;;  %v1639_v60 = vadd.f32 %v1638_v22, %v1234_v54  ;;  %v1786_v5 = vpack.c.bf16 %v1770_v62, %v1770_v62  ;;  %v3822_v22 = vld [vmem:[%s4885_s12 + $0x270] sm:$0xff]   ;;  %v3844_v54 = vld [vmem:[%s4885_s12 + $0x208] sm:$0xff]  }
 0x914   : > { %v1640_v27 = vpop.f32.mrf.mxu0  ;;  %v1681_v0 = vpop.f32.mrf.mxu1  ;;  %3510 = vmatprep.subr.bf16.mxu0 %v3798_v20  ;;  %3532 = vmatprep.subr.bf16.mxu1 %v3799_v21  ;;  %v3821_v20 = vld [vmem:[%s4885_s12 + $0x2b8] sm:$0xff]  }
 0x915   : > { %v1775_v8 = vmax.f32 %v1639_v60, 0.0  ;;  %v3826_v27 = vld [vmem:[%s4885_s12 + $0x268] sm:$0xff]  }
 0x916   : > { %v1641_v36 = vpop.f32.mrf.mxu0  ;;  %v1682_v37 = vpop.f32.mrf.mxu1  ;;  %v3827_v0 = vld [vmem:[%s4885_s12 + $0x2e8] sm:$0xff]  }
 0x917   : > { %3511 = vmatpush3.bf16.msra.mxu0 %v3800_v25  ;;  %3533 = vmatpush3.bf16.msra.mxu1 %v3801_v26  ;;  %v1791_v21 = vpack.c.bf16 %v1775_v8, %v1775_v8  ;;  %v3824_v25 = vld [vmem:[%s4885_s12 + $0x230] sm:$0xff]   ;;  %v3831_v36 = vld [vmem:[%s4885_s12 + $0x2e0] sm:$0xff]   ;;  %v3859_v8 = vld [vmem:[%s4885_s12 + $0x3e8] sm:$0xff]  }
 0x918   : > { %v1718_v39 = vpop.f32.mrf.mxu0  ;;  %v1759_v33 = vpop.f32.mrf.mxu1  ;;  %3512 = vmatprep.subr.bf16.mxu0 %v3802_v29  ;;  %3534 = vmatprep.subr.bf16.mxu1 %v3803_v31  ;;  %v3825_v26 = vld [vmem:[%s4885_s12 + $0x2b0] sm:$0xff]   ;;  %v3828_v29 = vld [vmem:[%s4885_s12 + $0x228] sm:$0xff]   ;;  %v3832_v37 = vld [vmem:[%s4885_s12 + $0x220] sm:$0xff]  }
 0x919   : > { %v4573_v41 = vadd.f32 %v1718_v39, %v1246_v32  ;;  %v4576_v42 = vadd.f32 %v1759_v33, %v4472_v13  ;;  %v1222_v13 = vrot.slane %v4479_v16, %v1221_v11  ;;  %v1242_v11 = vrot.slane %v4467_v12, %v1209_v19  ;;  %v3814_v19 = vld [vmem:[%s4885_s12 + $0x140] sm:$0xff]   ;;  %v3829_v31 = vld [vmem:[%s4885_s12 + $0x2a8] sm:$0xff]   ;;  %v3835_v39 = vld [vmem:[%s4885_s12 + $0x2d8] sm:$0xff]  }
 0x91a   : > { %v4578_v43 = vpop.f32.mrf.mxu0  ;;  %v4580_v44 = vpop.f32.mrf.mxu1  ;;  %v3830_v32 = vld [vmem:[%s4885_s12 + $0x260] sm:$0xff]   ;;  %v3836_v33 = vld [vmem:[%s4885_s12 + $0x218] sm:$0xff]  }
 0x91b   : > { %3513 = vmatpush3.bf16.msra.mxu0 %v3804_v38  ;;  %3535 = vmatpush3.bf16.msra.mxu1 %v3805_v30  ;;  %v1596_v17 = vadd.f32 %v4511_v50, %v1222_v13  ;;  %v1680_v61 = vadd.f32 %v1679_v23, %v1242_v11  ;;  %v3817_v50 = vld [vmem:[%s4885_s12 + $0x180] sm:$0xff]   ;;  %v3823_v23 = vld [vmem:[%s4885_s12 + $0x2f0] sm:$0xff]   ;;  %v3834_v30 = vld [vmem:[%s4885_s12 + $0x258] sm:$0xff]  }
 0x91c   : > { %v1722_v48 = vpop.f32.mrf.mxu0  ;;  %v1763_v51 = vpop.f32.mrf.mxu1  ;;  %3514 = vmatprep.subr.bf16.mxu0 %v3806_v28  ;;  %3536 = vmatprep.subr.bf16.mxu1 %v3807_v40  ;;  %v3833_v38 = vld [vmem:[%s4885_s12 + $0x2a0] sm:$0xff]   ;;  %v3837_v28 = vld [vmem:[%s4885_s12 + $0x298] sm:$0xff]   ;;  %v3838_v40 = vld [vmem:[%s4885_s12 + $0x250] sm:$0xff]  }
 0x91d   : > { %v1772_v63 = vmax.f32 %v1596_v17, 0.0  ;;  %v1777_v3 = vmax.f32 %v1680_v61, 0.0  ;;  %v3841_v13 = vld [vmem:[%s4885_s12 + $0x290] sm:$0xff]   ;;  %v3842_v48 = vld [vmem:[%s4885_s12 + $0x248] sm:$0xff]   ;;  %v1238_v51 = vrot.slane %v4467_v12, %v1205_v15  ;;  %v1637_v15 = vadd.f32 %v4537_v7, %v1230_v47  ;;  %v3852_v17 = vld [vmem:[%s4885_s12 + $0x338] sm:$0xff]  }
 0x91e   : > { %v1723_v16 = vpop.f32.mrf.mxu0  ;;  %v1764_v55 = vpop.f32.mrf.mxu1  ;;  %v3845_v11 = vld [vmem:[%s4885_s12 + $0x288] sm:$0xff]   ;;  %v3854_v61 = vld [vmem:[%s4885_s12 + $0x370] sm:$0xff]  }
 0x91f   : > { %3515 = vmatpush3.bf16.msra.mxu0 %v3808_v45  ;;  %3537 = vmatpush3.bf16.msra.mxu1 %v3809_v46  ;;  %v1788_v6 = vpack.c.bf16 %v1772_v63, %v1772_v63  ;;  %v1793_v24 = vpack.c.bf16 %v1777_v3, %v1777_v3  ;;  %v3839_v45 = vld [vmem:[%s4885_s12 + $0x2d0] sm:$0xff]   ;;  %v1678_v10 = vadd.f32 %v4539_v9, %v1238_v51  ;;  %v3848_v16 = vld [vmem:[%s4885_s12 + $0x200] sm:$0xff]   ;;  %v1774_v55 = vmax.f32 %v1637_v15, 0.0  ;;  %v3860_v3 = vld [vmem:[%s4885_s12 + $0x328] sm:$0xff]  }
 0x920   : > { %3516 = vmatprep.subr.bf16.mxu0 %v3810_v52  ;;  %3538 = vmatprep.subr.bf16.mxu1 %v3811_v53  ;;  %v3840_v46 = vld [vmem:[%s4885_s12 + $0x210] sm:$0xff]   ;;  %v3843_v52 = vld [vmem:[%s4885_s12 + $0x2c8] sm:$0xff]   ;;  %v1258_v53 = vrot.slane %v4467_v12, %v1225_v35  ;;  %v3847_v12 = vld [vmem:[%s4885_s12 + $0x2c0] sm:$0xff]   ;;  %v1721_v35 = vadd.f32 %v4578_v43, %v1250_v14 }
 0x921   : > { %v3849_v9 = vld [vmem:[%s4885_s12 + $0x280] sm:$0xff]   ;;  %v3851_v43 = vld [vmem:[%s4885_s12 + $0x3f8] sm:$0xff]   ;;  %v3856_v63 = vld [vmem:[%s4885_s12 + $0x330] sm:$0xff]  }
 0x922   : > { %v1762_v7 = vadd.f32 %v4580_v44, %v1258_v53  ;;  %v1779_v44 = vmax.f32 %v1721_v35, 0.0 }
 0x923   : > { %3517 = vmatpush3.bf16.msra.mxu0 %v3812_v56  ;;  %3539 = vmatpush3.bf16.msra.mxu1 %v3813_v57  ;;  %v3850_v56 = vld [vmem:[%s4885_s12 + $0x378] sm:$0xff]   ;;  %v1776_v57 = vmax.f32 %v1678_v10, 0.0 }
 0x924   : > { %3518 = vmatprep.subr.bf16.mxu0 %v3814_v19  ;;  %3540 = vmatprep.subr.bf16.mxu1 %v3815_v59  ;;  %v1781_v58 = vmax.f32 %v1762_v7, 0.0  ;;  %v1790_v19 = vpack.c.bf16 %v1774_v55, %v1774_v55  ;;  %v3853_v59 = vld [vmem:[%s4885_s12 + $0x3b8] sm:$0xff]  }
 0x925   : > { %v1792_v60 = vpack.c.bf16 %v1776_v57, %v1776_v57 }
 0x926   : > { %v1797_v62 = vpack.c.bf16 %v1781_v58, %v1781_v58 }
 0x927   : > { %3519 = vmatpush3.bf16.msra.mxu0 %v3816_v49  ;;  %3541 = vmatpush3.bf16.msra.mxu1 %v3817_v50  ;;  %v1795_v49 = vpack.c.bf16 %v1779_v44, %v1779_v44  ;;  %v3855_v50 = vld [vmem:[%s4885_s12 + $0x3f0] sm:$0xff]  }
 0x928   : > { %3548 = vmatprep.subr.bf16.mxu0 %v3818_v1  ;;  %3570 = vmatprep.subr.bf16.mxu1 %v3819_v2  ;;  %v3857_v1 = vld [vmem:[%s4885_s12 + $0x3b0] sm:$0xff]   ;;  %v3858_v2 = vld [vmem:[%s4885_s12 + $0x368] sm:$0xff]  }
 0x92a   : > { %2942 = vmatmul.mubr.bf16.vlgmr.msra.gmra.mxu0 %v1786_v5  ;;  %2982 = vmatmul.mubr.bf16.vlgmr.msra.gmra.mxu1 %v1788_v6  ;;  %v3862_v5 = vld [vmem:[%s4885_s12 + $0x360] sm:$0xff]  }
 0x92b   : > { %3549 = vmatpush3.bf16.msra.mxu0 %v3820_v4  ;;  %3021 = vmatprep.mubr.bf16.mxu0 %v1791_v21  ;;  %v3861_v4 = vld [vmem:[%s4885_s12 + $0x3a8] sm:$0xff]   ;;  %v3863_v6 = vld [vmem:[%s4885_s12 + $0x3e0] sm:$0xff]  }
 0x92c   : > { %3571 = vmatpush3.bf16.msra.mxu1 %v3821_v20  ;;  %3061 = vmatprep.mubr.bf16.mxu1 %v1793_v24  ;;  %v3864_v20 = vld [vmem:[%s4885_s12 + $0x320] sm:$0xff]   ;;  %v3868_v24 = vld [vmem:[%s4885_s12 + $0x318] sm:$0xff]  }
 0x92d   : > { %3550 = vmatprep.subr.bf16.mxu0 %v3822_v22  ;;  %3572 = vmatprep.subr.bf16.mxu1 %v3823_v23  ;;  %v3865_v21 = vld [vmem:[%s4885_s12 + $0x3a0] sm:$0xff]   ;;  %v3866_v22 = vld [vmem:[%s4885_s12 + $0x358] sm:$0xff]  }
 0x92e   : > { %v3867_v23 = vld [vmem:[%s4885_s12 + $0x3d8] sm:$0xff]  }
 0x92f   : > { %3551 = vmatpush3.bf16.msra.mxu0 %v3824_v25  ;;  %v3869_v25 = vld [vmem:[%s4885_s12 + $0x398] sm:$0xff]  }
 0x930   : > { %3573 = vmatpush3.bf16.msra.mxu1 %v3825_v26  ;;  %3552 = vmatprep.subr.bf16.mxu0 %v3826_v27  ;;  %v3870_v26 = vld [vmem:[%s4885_s12 + $0x350] sm:$0xff]  }
 0x931   : > { %3574 = vmatprep.subr.bf16.mxu1 %v3827_v0  ;;  %v3871_v27 = vld [vmem:[%s4885_s12 + $0x3d0] sm:$0xff]  }
 0x932   : > { %v3872_v0 = vld [vmem:[%s4885_s12 + $0x310] sm:$0xff]  }
 0x933   : > { %3553 = vmatpush3.bf16.msra.mxu0 %v3828_v29  ;;  %v3873_v29 = vld [vmem:[%s4885_s12 + $0x390] sm:$0xff]  }
 0x934   : > { %3575 = vmatpush3.bf16.msra.mxu1 %v3829_v31  ;;  %3554 = vmatprep.subr.bf16.mxu0 %v3830_v32  ;;  %v3874_v31 = vld [vmem:[%s4885_s12 + $0x348] sm:$0xff]  }
 0x935   : > { %3576 = vmatprep.subr.bf16.mxu1 %v3831_v36  ;;  %v3875_v32 = vld [vmem:[%s4885_s12 + $0x3c8] sm:$0xff]  }
 0x936   : > { %v3876_v36 = vld [vmem:[%s4885_s12 + $0x308] sm:$0xff]  }
 0x937   : > { %3555 = vmatpush3.bf16.msra.mxu0 %v3832_v37  ;;  %v3877_v37 = vld [vmem:[%s4885_s12 + $0x388] sm:$0xff]  }
 0x938   : > { %3577 = vmatpush3.bf16.msra.mxu1 %v3833_v38  ;;  %3556 = vmatprep.subr.bf16.mxu0 %v3834_v30  ;;  %v3878_v38 = vld [vmem:[%s4885_s12 + $0x340] sm:$0xff]  }
 0x939   : > { %3578 = vmatprep.subr.bf16.mxu1 %v3835_v39  ;;  %v3879_v30 = vld [vmem:[%s4885_s12 + $0x3c0] sm:$0xff]  }
 0x93a   : > { %v3880_v39 = vld [vmem:[%s4885_s12 + $0x300] sm:$0xff]  }
 0x93b   : > { %3557 = vmatpush3.bf16.msra.mxu0 %v3836_v33  ;;  %v1778_v33 = vmax.f32 %v4573_v41, 0.0  ;;  %v3304_v41 = vld [vmem:[%s4886_s13] ss:$0 sm:$0xff] }
 0x93c   : > { %3579 = vmatpush3.bf16.msra.mxu1 %v3837_v28  ;;  %3558 = vmatprep.subr.bf16.mxu0 %v3838_v40  ;;  %v3881_v28 = vld [vmem:[%s4885_s12 + $0x380] sm:$0xff]   ;;  %v1780_v40 = vmax.f32 %v4576_v42, 0.0 }
 0x93d   : > { %3580 = vmatprep.subr.bf16.mxu1 %v3839_v45  ;;  %v1794_v45 = vpack.c.bf16 %v1778_v33, %v1778_v33 }
 0x93f   : > { %3559 = vmatpush3.bf16.msra.mxu0 %v3840_v46  ;;  %v1796_v46 = vpack.c.bf16 %v1780_v40, %v1780_v40 }
 0x940   : > { %3581 = vmatpush3.bf16.msra.mxu1 %v3841_v13  ;;  %3560 = vmatprep.subr.bf16.mxu0 %v3842_v48 }
 0x941   : > { %3582 = vmatprep.subr.bf16.mxu1 %v3843_v52 }
 0x943   : > { %3561 = vmatpush3.bf16.msra.mxu0 %v3844_v54 }
 0x944   : > { %3583 = vmatpush3.bf16.msra.mxu1 %v3845_v11  ;;  %3562 = vmatprep.subr.bf16.mxu0 %v3846_v34 }
 0x945   : > { %3584 = vmatprep.subr.bf16.mxu1 %v3847_v12 }
 0x947   : > { %3563 = vmatpush3.bf16.msra.mxu0 %v3848_v16 }
 0x948   : > { %3585 = vmatpush3.bf16.msra.mxu1 %v3849_v9  ;;  %3592 = vmatprep.subr.bf16.mxu0 %v3850_v56 }
 0x949   : > { %3614 = vmatprep.subr.bf16.mxu1 %v3851_v43 }
 0x94a   : > { %3022 = vmatmul.mubr.bf16.vlgmr.msra.gmra.mxu0 %v1790_v19 }
 0x94b   : > { %3062 = vmatmul.mubr.bf16.vlgmr.msra.gmra.mxu1 %v1792_v60  ;;  %3593 = vmatpush3.bf16.msra.mxu0 %v3852_v17 }
 0x94c   : > { %3101 = vmatprep.mubr.bf16.mxu0 %v1795_v49  ;;  %3615 = vmatpush3.bf16.msra.mxu1 %v3853_v59 }
 0x94d   : > { %3141 = vmatprep.mubr.bf16.mxu1 %v1797_v62  ;;  %3594 = vmatprep.subr.bf16.mxu0 %v3854_v61 }
 0x94e   : > { %3616 = vmatprep.subr.bf16.mxu1 %v3855_v50 }
 0x94f   : > { %3595 = vmatpush3.bf16.msra.mxu0 %v3856_v63 }
 0x950   : > { %3617 = vmatpush3.bf16.msra.mxu1 %v3857_v1  ;;  %3596 = vmatprep.subr.bf16.mxu0 %v3858_v2 }
 0x951   : > { %3618 = vmatprep.subr.bf16.mxu1 %v3859_v8 }
 0x953   : > { %3597 = vmatpush3.bf16.msra.mxu0 %v3860_v3 }
 0x954   : > { %3619 = vmatpush3.bf16.msra.mxu1 %v3861_v4  ;;  %3598 = vmatprep.subr.bf16.mxu0 %v3862_v5 }
 0x955   : > { %3620 = vmatprep.subr.bf16.mxu1 %v3863_v6 }
 0x957   : > { %3599 = vmatpush3.bf16.msra.mxu0 %v3864_v20 }
 0x958   : > { %3621 = vmatpush3.bf16.msra.mxu1 %v3865_v21  ;;  %3600 = vmatprep.subr.bf16.mxu0 %v3866_v22 }
 0x959   : > { %3622 = vmatprep.subr.bf16.mxu1 %v3867_v23 }
 0x95b   : > { %3601 = vmatpush3.bf16.msra.mxu0 %v3868_v24 }
 0x95c   : > { %3623 = vmatpush3.bf16.msra.mxu1 %v3869_v25  ;;  %3602 = vmatprep.subr.bf16.mxu0 %v3870_v26 }
 0x95d   : > { %3624 = vmatprep.subr.bf16.mxu1 %v3871_v27 }
 0x95f   : > { %3603 = vmatpush3.bf16.msra.mxu0 %v3872_v0 }
 0x960   : > { %3625 = vmatpush3.bf16.msra.mxu1 %v3873_v29  ;;  %3604 = vmatprep.subr.bf16.mxu0 %v3874_v31 }
 0x961   : > { %3626 = vmatprep.subr.bf16.mxu1 %v3875_v32 }
 0x963   : > { %3605 = vmatpush3.bf16.msra.mxu0 %v3876_v36 }
 0x964   : > { %3627 = vmatpush3.bf16.msra.mxu1 %v3877_v37  ;;  %3606 = vmatprep.subr.bf16.mxu0 %v3878_v38 }
 0x965   : > { %3628 = vmatprep.subr.bf16.mxu1 %v3879_v30 }
 0x967   : > { %3607 = vmatpush3.bf16.msra.mxu0 %v3880_v39 }
 0x968   : > { %3629 = vmatpush3.bf16.msra.mxu1 %v3881_v28 }
 0x96a   : > { %3102 = vmatmul.mubr.bf16.vlgmr.msra.gmra.mxu0 %v1794_v45 }
 0x96b   : > { %3142 = vmatmul.mubr.bf16.vlgmr.msra.gmra.mxu1 %v1796_v46 }
 0x9ca   : > { %v3476_v47 = vpop.f32.mrf.mxu0  ;;  %v3498_v13 = vpop.f32.mrf.mxu1 }
 0x9cc   : > { %v3477_v48 = vpop.f32.mrf.mxu0  ;;  %v3499_v51 = vpop.f32.mrf.mxu1 }
 0x9cd   : > { %v3478_v52 = vadd.f32 %v3477_v48, %v3476_v47  ;;  %v3500_v14 = vadd.f32 %v3499_v51, %v3498_v13 }
 0x9ce   : > { %v3479_v53 = vpop.f32.mrf.mxu0  ;;  %v3501_v54 = vpop.f32.mrf.mxu1 }
 0x9cf   : > { %v2864_v42 = vadd.f32 %v3478_v52, %v3304_v41 }
 0x9d0   : > { %v3480_v15 = vpop.f32.mrf.mxu0  ;;  %v3502_v11 = vpop.f32.mrf.mxu1 }
 0x9d1   : > { %v2904_v34 = vadd.f32 %v3500_v14, %v2864_v42 }
 0x9ea   : > { %v3520_v10 = vpop.f32.mrf.mxu0  ;;  %v3542_v12 = vpop.f32.mrf.mxu1 }
 0x9ec   : > { %v3521_v35 = vpop.f32.mrf.mxu0  ;;  %v3543_v7 = vpop.f32.mrf.mxu1 }
 0x9ed   : > { %v3522_v61 = vadd.f32 %v3521_v35, %v3520_v10  ;;  %v3544_v50 = vadd.f32 %v3543_v7, %v3542_v12 }
 0x9ee   : > { %v3523_v16 = vpop.f32.mrf.mxu0  ;;  %v3545_v55 = vpop.f32.mrf.mxu1 }
 0x9ef   : > { %v2944_v49 = vadd.f32 %v3522_v61, %v2904_v34 }
 0x9f0   : > { %v3524_v9 = vpop.f32.mrf.mxu0  ;;  %v3546_v56 = vpop.f32.mrf.mxu1 }
 0x9f1   : > { %v2984_v63 = vadd.f32 %v3544_v50, %v2944_v49 }
 0xa0a   : > { %v3564_v57 = vpop.f32.mrf.mxu0 }
 0xa0b   : > { %v3586_v43 = vpop.f32.mrf.mxu1 }
 0xa0c   : > { %v3565_v44 = vpop.f32.mrf.mxu0 }
 0xa0d   : > { %v3587_v58 = vpop.f32.mrf.mxu1  ;;  %v3566_v62 = vadd.f32 %v3565_v44, %v3564_v57 }
 0xa0e   : > { %v3567_v17 = vpop.f32.mrf.mxu0  ;;  %v3588_v8 = vadd.f32 %v3587_v58, %v3586_v43 }
 0xa0f   : > { %v3589_v19 = vpop.f32.mrf.mxu1  ;;  %v3024_v1 = vadd.f32 %v3566_v62, %v2984_v63 }
 0xa10   : > { %v3568_v59 = vpop.f32.mrf.mxu0 }
 0xa11   : > { %v3590_v60 = vpop.f32.mrf.mxu1  ;;  %v3064_v5 = vadd.f32 %v3588_v8, %v3024_v1 }
 0xa2a   : > { %v3608_v2 = vpop.f32.mrf.mxu0 }
 0xa2b   : > { %v3630_v3 = vpop.f32.mrf.mxu1 }
 0xa2c   : > { %v3609_v4 = vpop.f32.mrf.mxu0 }
 0xa2d   : > { %v3610_v6 = vadd.f32 %v3609_v4, %v3608_v2  ;;  %v3631_v20 = vpop.f32.mrf.mxu1 }
 0xa2e   : > { %v3611_v21 = vpop.f32.mrf.mxu0  ;;  %v3632_v23 = vadd.f32 %v3631_v20, %v3630_v3 }
 0xa2f   : > { %v3104_v22 = vadd.f32 %v3610_v6, %v3064_v5  ;;  %v3633_v24 = vpop.f32.mrf.mxu1 }
 0xa30   : > { %v3612_v25 = vpop.f32.mrf.mxu0 }
 0xa31   : > { %v3144_v26 = vadd.f32 %v3632_v23, %v3104_v22  ;;  %v3634_v27 = vpop.f32.mrf.mxu1 }
 0xa33   : > { %v3149_v0 = vadd.f32 %v3144_v26, %v4225_v18 }
 0xa35   : > { %vm3150_vm6 = vcmp.ne.f32.partialorder %v3149_v0, %v3149_v0 }
 0xa36   : > { %v3151_v29 = vsel %vm3150_vm6, 0.0, %v3149_v0 }
 0xa37   : > { %v3433_v31 = vclamps-f32 %v3151_v29, 3.4028235e+38 }
 0xa39   : > { %3154 = vst.msk [vmem:[%s469_s20] sm:$0xff] %vm482_vm0, %v3433_v31 }
 0xa3a   : > { %3915 = shalt.err (!%p3912_p3)
}
 0xa3b   : > { %s3916_s26 = scalar_lea.hbm %s3167_s28, 128  ;;  %s3920_s20 = scalar_lea.hbm %s4887_s14, 256 }
 0xa3c   : > { %p3917_p4 = scmp.ne.s32.totalorder %s3167_s28, %s3916_s26  ;;  %p3921_p9 = scmp.lt.s32.totalorder %s3167_s28, %s4887_s14 }
 0xa3d   : > { %p3922_p10 = scmp.lt.s32.totalorder %s3920_s20, %s3916_s26 }
 0xa3e   : > { %p3918_p7 = pnand %p3917_p4, %p4089_p5 }
 0xa3f   : > { %p3923_p11 = por %p3922_p10, %p3921_p9 }
 0xa40   : > { %p3919_p8 = pneg %p3918_p7 }
 0xa42   : > { %p3924_p12 = pnand %p3923_p11, %p3919_p8 }
 0xa44   : > { %3927 = shalt.err (!%p3924_p12)
}
 0xa45   : > { %3700 = dma.vmem_to_hbm [thread:$0]  (%p4089_p5), %s3170_s21, 128, %s3167_s28, %s3156_s25  }
 0xa46 PF: > { %p3706_p13 = scmp.ge.s32.totalorder %s3962_s16, 2  ;;  %s3181_s3 = sand.u32 1, %s3950_s29  }
 0xa47   : > { %s3182_s18 = scalar_lea.sflag [#allocation3], %s3181_s3 }
 0xa48   : > { %p3703_p0 = pnand %p3706_p13, %p4093_p6 }
 0xa4a   : > { %p3704_p1 = pneg %p3703_p0 }
 0xa4c   : > { %3945 = dma.done.wait (%p3704_p1), %s3182_s18, 128  }
 0xa4d   : > { %3947 = vsyncadd (%p3704_p1), %s3182_s18, 4294967168  ;;  %p24_p2 = scmp.ge.s32.totalorder %s4076_s19, 4   ;;  %s4900_s29 = smov %s3954_s30 }
 0xa4e   : > { %s4901_s30 = smov %s3958_s15  ;;  %s4902_s15 = smov %s4087_s22 }
 0xa4f   : > { %s4903_s16 = smov %s4076_s19  ;;  %26 = sbr.rel (!%p24_p2) target bundleno = 9 (0x9), region = 114 }
 0xa54   :  { %3187 = vsyncpa [#allocation3], 1 }
 0xa55   :  { %3189 = vsyncpa [#allocation3 + $0x1], 1 }

// kernel: tpu_custom_call.1
= control target key start
LH: loop header
LB: loop body
LE: loop exit
PB: predicated region body
PF: predicated region fallthrough
CT: control target
= control target key end

     0   :  { %s4873_s0 = inlined_call_operand.vmem [shape: f32[16,32], index: 0, kind: input, shape index: {}]   ;;  %s4874_s1 = inlined_call_operand.vmem [shape: f32[2,1,8], index: 1, kind: input, shape index: {}]   ;;  %s4875_s2 = inlined_call_operand.vmem [shape: bf16[32,96], index: 2, kind: input, shape index: {}]   ;;  %s4876_s3 = inlined_call_operand.vmem [shape: f32[1,96], index: 3, kind: input, shape index: {}]   ;;  %s4877_s4 = inlined_call_operand.vmem [shape: bf16[32,32], index: 4, kind: input, shape index: {}]   ;;  %s4878_s5 = inlined_call_operand.vmem [shape: f32[1,32], index: 5, kind: input, shape index: {}]   ;;  %s4879_s6 = inlined_call_operand.vmem [shape: f32[1,32], index: 6, kind: input, shape index: {}]   ;;  %s4880_s7 = inlined_call_operand.vmem [shape: f32[1,32], index: 7, kind: input, shape index: {}]   ;;  %s4881_s8 = inlined_call_operand.vmem [shape: f32[1,32], index: 8, kind: input, shape index: {}]   ;;  %s4882_s9 = inlined_call_operand.vmem [shape: f32[1,32], index: 9, kind: input, shape index: {}]   ;;  %s4883_s10 = inlined_call_operand.vmem [shape: bf16[32,2048], index: 10, kind: input, shape index: {}]   ;;  %s4884_s11 = inlined_call_operand.vmem [shape: f32[1,2048], index: 11, kind: input, shape index: {}]   ;;  %s4885_s12 = inlined_call_operand.vmem [shape: bf16[2048,32], index: 12, kind: input, shape index: {}]   ;;  %s4886_s13 = inlined_call_operand.vmem [shape: f32[1,32], index: 13, kind: input, shape index: {}]   ;;  %s4887_s14 = inlined_call_operand.hbm [shape: f32[16,32], index: 14, kind: output, shape index: {}]  }
   0x1   :  { %4888 = sst [smem:[#allocation5_spill]] %s4873_s0 }
   0x2   :  { %4889 = sst [smem:[#allocation6_spill]] %s4874_s1 }
   0x3   :  { %4890 = sst [smem:[#allocation7_spill]] %s4875_s2 }
   0x4   :  { %4891 = sst [smem:[#allocation8_spill]] %s4876_s3 }
   0x5   :  { %4892 = sst [smem:[#allocation9_spill]] %s4877_s4 }
   0x6   :  { %19 = vsyncpa [#allocation3], 0 }
   0x7   :  { %21 = vsyncpa [#allocation3 + $0x1], 0  ;;  %s4051_s29 = smov 0   ;;  %s4053_s30 = smov 0  }
   0x8   :  { %s4055_s15 = smov 0   ;;  %s4057_s16 = smov 0  }
   0x9 LB: > { %s4072_s17 = sadd.s32 4294967295, %s3962_s16   ;;  %s3237_s18 = sadd.s32 4294967294, %s3962_s16   ;;  %s3962_s16 = sphi %s4057_s16, %s4903_s16   ;;  %s3958_s15 = sphi %s4055_s15, %s4902_s15   ;;  %s3954_s30 = sphi %s4053_s30, %s4901_s30   ;;  %s3950_s29 = sphi %s4051_s29, %s4900_s29  }
   0xa   : > { %s4076_s19 = sadd.s32 1, %s3962_s16   ;;  %s338_s20 = sadd.s32 1, %s3958_s15 }
   0xb   : > { %s335_s21 = ssub.s32 %s3962_s16, %s4076_s19  ;;  %p348_p0 = scmp.ne.s32.totalorder %s3958_s15, %s3954_s30 }
   0xc   : > { %p336_p1 = scmp.eq.s32.totalorder %s335_s21, 0  ;;  %p349_p2 = scmp.eq.s32.totalorder %s4072_s17, 1 }
   0xd   : > { %p354_p3 = scmp.ne.s32.totalorder %s3954_s30, %s3950_s29  ;;  %p355_p4 = scmp.eq.s32.totalorder %s3237_s18, 1 }
   0xe   : > { %s4087_s22 = scalar_select %p336_p1, %s3958_s15, %s338_s20  }
   0xf   : > { %p4089_p5 = por %p349_p2, %p348_p0  ;;  %p4093_p6 = por %p355_p4, %p354_p3 }
  0x10   : > { %p3240_p7 = scmp.ge.s32.totalorder %s3962_s16, 1  ;;  %p422_p8 = scmp.lt.s32.totalorder %s3962_s16, 3 }
  0x12   : > { %p423_p9 = pnand %p3240_p7, %p422_p8 }
  0x13   : > { %p470_p10 = scmp.lt.s32.totalorder (!%p423_p9), %s4072_s17, 1  ;;  %s4895_s0 = sld [smem:[#allocation5_spill]] (!%p423_p9) }
  0x14   : > { %426 = sbr.rel (%p423_p9) target bundleno = 2630 (0xa46), region = 76  ;;  %s4896_s2 = sld [smem:[#allocation7_spill]] (!%p423_p9) }
  0x15   : > { %s4897_s3 = sld [smem:[#allocation8_spill]] (!%p423_p9)  ;;  %s3966_s28 = smov (!%p423_p9), 104  }
  0x16   : > { %s3968_s20 = smov (!%p423_p9), 112   ;;  %s3969_s21 = smov (!%p423_p9), 96  }
  0x17   : > { %s4898_s1 = sld [smem:[#allocation6_spill]] (!%p423_p9)  ;;  %s3971_s27 = smov (!%p423_p9), 8  }
  0x18   : > { %s4899_s4 = sld [smem:[#allocation9_spill]] (!%p423_p9) }
  0x19   : > { %s4101_s25 = scalar_select %p470_p10, %s4072_s17, 1  ;;  %vm482_vm0 = vcmask 261120   ;;  %v3964_v8 = vmov 0.0   ;;  %vm3965_vm1 = vmmov 0   ;;  %v3243_v14 = vld [vmem:[%s4879_s6] ss:$0 sm:$0xff] }
  0x1a   : > { %v3750_v7 = vld [vmem:[%s4896_s2 + $0x8] sm:$0xff]   ;;  %3636 = vmatprep.subr.bf16.mxu0 %v3964_v8  ;;  %3640 = vmatprep.mubr.msk.bf16.mxu0 %vm3965_vm1, %v3964_v8  ;;  %v3751_v9 = vld [vmem:[%s4896_s2] sm:$0xff]   ;;  %vm595_vm2 = vcmask 64512   ;;  %vm856_vm3 = vcmask 1043456   ;;  %vm1057_vm4 = vcmask 130048   ;;  %vm1059_vm5 = vcmask 195584  }
  0x1b   : > { %s3242_s26 = sshll.u32 %s4101_s25, 3  ;;  %3637 = vmatpush3.bf16.msra.mxu0 %v3750_v7  ;;  %3644 = vmatprep.subr.bf16.mxu1 %v3964_v8  ;;  %v3244_v16 = vld [vmem:[%s4880_s7] ss:$0 sm:$0xff]  ;;  %s3435_s2 = sshll.u32 %s4072_s17, 7 }
  0x1c   : > { %s473_s18 = scalar_lea.vmem %s4895_s0, %s3242_s26  ;;  %3638 = vmatprep.subr.bf16.mxu0 %v3964_v8  ;;  %3646 = vmatprep.mubr.msk.bf16.mxu1 %vm3965_vm1, %v3964_v8  ;;  %v3245_v20 = vld [vmem:[%s4897_s3] ss:$0 sm:$0xff]  ;;  %s467_s0 = sand.u32 1, %s3954_s30  }
  0x1d   : > { %v4107_v0 = vld [vmem:[%s473_s18] sm:$0xff]  ;;  %s3967_s18 = smov 120   ;;  %s3975_s3 = smov [#allocation2]  }
  0x1e   : > { %v483_v1 = vsel %vm482_vm0, %v4107_v0, 0.0  ;;  %s3906_s17 = sshll.u32 %s3975_s3, 4  ;;  %s3907_s17 = int_to_ptr.vmem [resolvable:$false] %s3906_s17 }
  0x1f   : > { %484 = vadd.xlane.f32.xlu0 %v483_v1  ;;  %3639 = vmatpush3.bf16.msra.mxu0 %v3751_v9 }
  0x20   : > { %3650 = vmatprep.subr.bf16.mxu0 %v3964_v8 }
  0xa8   : > { %v485_v2 = vpop.xlane.xlu0 %484 }
  0xa9   : > { %v487_v3 = vmul.f32 0.03125, %v485_v2 }
  0xab   : > { %v488_v4 = vsub.f32 %v4107_v0, %v487_v3 }
  0xad   : > { %v489_v5 = vmul.f32 %v488_v4, %v488_v4 }
  0xaf   : > { %v490_v6 = vsel %vm482_vm0, %v489_v5, 0.0 }
  0xb0   : > { %491 = vadd.xlane.f32.xlu0 %v490_v6 }
 0x139   : > { %v492_v10 = vpop.xlane.xlu0 %491 }
 0x13a   : > { %v493_v11 = vmul.f32 0.03125, %v492_v10 }
 0x13c   : > { %v494_v12 = vadd.f32 1e-05, %v493_v11 }
 0x13e   : > { %3882 = vrsqrt.f32 %v494_v12 }
 0x14b   : > { %v3883_v13 = vpop.eup %3882 }
 0x14c   : > { %v496_v15 = vmul.f32 %v3883_v13, %v488_v4 }
 0x14e   : > { %v503_v17 = vmul.f32 %v3243_v14, %v496_v15 }
 0x150   : > { %v510_v18 = vadd.f32 %v3244_v16, %v503_v17 }
 0x152   : > { %v511_v19 = vpack.c.bf16 %v510_v18, %v510_v18 }
 0x154   : > { %3641 = vmatmul.mubr.msk.bf16.vlgmr.msra.gmra.mxu0 %vm482_vm0, %v511_v19 }
 0x155   : > { %3652 = vmatprep.mubr.msk.bf16.mxu0 %vm3965_vm1, %v3964_v8 }
 0x214   : > { %v572_v21 = vpop.f32.mrf.mxu0 }
 0x215   : > { %v573_v22 = vadd.f32 %v3245_v20, %v572_v21 }
 0x216   : > { %v3642_v23 = vpop.f32.mrf.mxu0 }
 0x217   : > { %585 = vrot.lane.b32.xlu0 %v573_v22, %s3966_s28  ;;  %579 = vrot.lane.b32.xlu1 %v573_v22, %s3967_s18  ;;  %v4139_v26 = vpack.c.bf16 %v573_v22, %v573_v22  ;;  %s476_s28 = scalar_lea.vmem %s4898_s1, %s4101_s25  ;;  %s3970_s25 = smov 64  }
 0x218   : > { %v575_v24 = vpop.f32.mrf.mxu0  ;;  %v3253_v42 = vld [vmem:[%s476_s28] ss:$0 sm:$0xff]  ;;  %s3972_s28 = smov 16   ;;  %s3241_s1 = sshll.u32 %s467_s0, 3 }
 0x21a   : > { %v3643_v25 = vpop.f32.mrf.mxu0 }
 0x21b   : > { %582 = vrot.lane.b32.xlu1 %v573_v22, %s3968_s20  ;;  %s469_s20 = scalar_lea.vmem [#allocation2], %s3241_s1  ;;  %s3908_s1 = scalar_lea.vmem %s3907_s17, 256 }
 0x21f   : > { %593 = vrot.lane.b32.xlu1 %v4139_v26, %s3969_s21 }
 0x289   : > { %v580_v27 = vpop.permute.xlu1 %579  ;;  %v586_v31 = vpop.permute.xlu0 %585 }
 0x28a   : > { %v4142_v28 = vpack.c.bf16 %v580_v27, %v580_v27  ;;  %v4148_v33 = vpack.c.bf16 %v586_v31, %v586_v31 }
 0x28c   : > { %643 = vrot.lane.b32.xlu1 %v4142_v28, %s3969_s21 }
 0x28d   : > { %v583_v29 = vpop.permute.xlu1 %582 }
 0x28e   : > { %v4145_v30 = vpack.c.bf16 %v583_v29, %v583_v29 }
 0x290   : > { %692 = vrot.lane.b32.xlu1 %v4145_v30, %s3969_s21 }
 0x291   : > { %v594_v32 = vpop.permute.xlu1 %593 }
 0x292   : > { %v600_v34 = vsel %vm595_vm2, %v594_v32, 0 }
 0x293   : > { %3645 = vmatpush3.bf16.xpose.msra.mxu1 %v600_v34 }
 0x294   : > { %741 = vrot.lane.b32.xlu1 %v4148_v33, %s3969_s21  ;;  %3656 = vmatprep.subr.bf16.mxu1 %v3964_v8  ;;  %s3169_s21 = sshll.u32 %s469_s20, 4  ;;  %s3170_s21 = int_to_ptr.vmem [resolvable:$true] %s3169_s21 }
 0x295   : > { %s3902_s18 = scalar_lea.vmem %s3170_s21, 128  ;;  %p3909_p0 = scmp.lt.s32.totalorder %s3170_s21, %s3907_s17 }
 0x296   : > { %p3903_p11 = scmp.ne.s32.totalorder %s3170_s21, %s3902_s18  ;;  %p3910_p1 = scmp.lt.s32.totalorder %s3908_s1, %s3902_s18 }
 0x298   : > { %p3904_p12 = pnand %p3903_p11, %p4089_p5  ;;  %p3911_p2 = por %p3910_p1, %p3909_p0 }
 0x29a   : > { %3647 = vmatmul.mubr.msk.bf16.vlgmr.msra.gmra.mxu1 %vm595_vm2, %v4139_v26  ;;  %p3905_p13 = pneg %p3904_p12 }
 0x29b   : > { %3658 = vmatprep.mubr.msk.bf16.mxu1 %vm3965_vm1, %v3964_v8 }
 0x29c   : > { %p3912_p3 = pnand %p3911_p2, %p3905_p13 }
 0x2fe   : > { %v644_v35 = vpop.permute.xlu1 %643 }
 0x2ff   : > { %v649_v36 = vsel %vm595_vm2, %v644_v35, 0 }
 0x300   : > { %3651 = vmatpush3.bf16.xpose.msra.mxu0 %v649_v36 }
 0x301   : > { %3662 = vmatprep.subr.bf16.mxu0 %v3964_v8 }
 0x302   : > { %v693_v37 = vpop.permute.xlu1 %692 }
 0x303   : > { %v698_v38 = vsel %vm595_vm2, %v693_v37, 0 }
 0x304   : > { %3657 = vmatpush3.bf16.xpose.msra.mxu1 %v698_v38 }
 0x305   : > { %3668 = vmatprep.subr.bf16.mxu1 %v3964_v8 }
 0x306   : > { %v742_v39 = vpop.permute.xlu1 %741 }
 0x307   : > { %v747_v40 = vsel %vm595_vm2, %v742_v39, 0  ;;  %3653 = vmatmul.mubr.msk.bf16.vlgmr.msra.gmra.mxu0 %vm595_vm2, %v4142_v28 }
 0x308   : > { %3663 = vmatpush3.bf16.xpose.msra.mxu0 %v747_v40  ;;  %3664 = vmatprep.mubr.msk.bf16.mxu0 %vm3965_vm1, %v3964_v8 }
 0x309   : > { %3674 = vmatprep.subr.bf16.mxu0 %v3964_v8 }
 0x30b   : > { %3659 = vmatmul.mubr.msk.bf16.vlgmr.msra.gmra.mxu1 %vm595_vm2, %v4145_v30 }
 0x30c   : > { %3670 = vmatprep.mubr.msk.bf16.mxu1 %vm3965_vm1, %v3964_v8 }
 0x30f   : > { %3665 = vmatmul.mubr.msk.bf16.vlgmr.msra.gmra.mxu0 %vm595_vm2, %v4148_v33 }
 0x310   : > { %3676 = vmatprep.mubr.msk.bf16.mxu0 %vm3965_vm1, %v3964_v8 }
 0x35a   : > { %v636_v41 = vpop.f32.mrf.mxu1 }
 0x35b   : > { %v789_v43 = vmul.f32 0.35355338, %v636_v41 }
 0x35c   : > { %v3648_v44 = vpop.f32.mrf.mxu1 }
 0x35d   : > { %v799_v45 = vadd.f32 %v3253_v42, %v789_v43 }
 0x35e   : > { %v639_v46 = vpop.f32.mrf.mxu1 }
 0x35f   : > { %v803_v47 = vsel %vm595_vm2, %v799_v45, -inf }
 0x360   : > { %804 = vmax.xlane.f32.xlu1 %v803_v47  ;;  %v3649_v48 = vpop.f32.mrf.mxu1 }
 0x3c7   : > { %v685_v49 = vpop.f32.mrf.mxu0 }
 0x3c8   : > { %v790_v50 = vmul.f32 0.35355338, %v685_v49 }
 0x3c9   : > { %v3654_v51 = vpop.f32.mrf.mxu0 }
 0x3ca   : > { %v800_v52 = vadd.f32 %v3253_v42, %v790_v50 }
 0x3cb   : > { %v688_v53 = vpop.f32.mrf.mxu0  ;;  %v734_v54 = vpop.f32.mrf.mxu1 }
 0x3cc   : > { %v791_v55 = vmul.f32 0.35355338, %v734_v54  ;;  %v806_v56 = vsel %vm595_vm2, %v800_v52, -inf }
 0x3cd   : > { %v3660_v57 = vpop.f32.mrf.mxu1  ;;  %807 = vmax.xlane.f32.xlu0 %v806_v56  ;;  %v3655_v58 = vpop.f32.mrf.mxu0  ;;  %v3752_v56 = vld [vmem:[%s4899_s4 + $0x8] sm:$0xff]  }
 0x3ce   : > { %v801_v59 = vadd.f32 %v3253_v42, %v791_v55  ;;  %v3753_v57 = vld [vmem:[%s4899_s4] sm:$0xff]  }
 0x3cf   : > { %v737_v60 = vpop.f32.mrf.mxu1  ;;  %v783_v61 = vpop.f32.mrf.mxu0 }
 0x3d0   : > { %v792_v62 = vmul.f32 0.35355338, %v783_v61  ;;  %v809_v63 = vsel %vm595_vm2, %v801_v59, -inf }
 0x3d1   : > { %810 = vmax.xlane.f32.xlu1 %v809_v63  ;;  %v3661_v1 = vpop.f32.mrf.mxu1  ;;  %v3666_v2 = vpop.f32.mrf.mxu0 }
 0x3d2   : > { %v802_v3 = vadd.f32 %v3253_v42, %v792_v62 }
 0x3d3   : > { %v786_v4 = vpop.f32.mrf.mxu0 }
 0x3d4   : > { %v812_v5 = vsel %vm595_vm2, %v802_v3, -inf }
 0x3d5   : > { %813 = vmax.xlane.f32.xlu0 %v812_v5  ;;  %v3667_v6 = vpop.f32.mrf.mxu0 }
 0x3e2   : > { %851 = vrot.lane.b32.xlu1 %v4139_v26, %s3970_s25 }
 0x3e9   : > { %v805_v7 = vpop.xlane.xlu1 %804 }
 0x3ea   : > { %v815_v9 = vsub.f32 %v799_v45, %v805_v7 }
 0x3ec   : > { %v819_v10 = vmul.f32 1.442695, %v815_v9 }
 0x3ee   : > { %3884 = vpow2.f32 %v819_v10 }
 0x3fb   : > { %v3885_v11 = vpop.eup %3884 }
 0x3fc   : > { %v827_v12 = vsel %vm595_vm2, %v3885_v11, 0.0 }
 0x406   : > { %828 = vadd.xlane.f32.xlu1 %v827_v12 }
 0x456   : > { %v808_v13 = vpop.xlane.xlu0 %807 }
 0x457   : > { %v816_v14 = vsub.f32 %v800_v52, %v808_v13 }
 0x459   : > { %v821_v15 = vmul.f32 1.442695, %v816_v14  ;;  %v3258_v14 = vld [vmem:[%s4878_s5] ss:$0 sm:$0xff] }
 0x45a   : > { %v811_v16 = vpop.xlane.xlu1 %810 }
 0x45b   : > { %3886 = vpow2.f32 %v821_v15  ;;  %v817_v17 = vsub.f32 %v801_v59, %v811_v16 }
 0x45d   : > { %v823_v18 = vmul.f32 1.442695, %v817_v17 }
 0x45e   : > { %v852_v19 = vpop.permute.xlu1 %851  ;;  %v814_v20 = vpop.xlane.xlu0 %813 }
 0x45f   : > { %3888 = vpow2.f32 %v823_v18  ;;  %v858_v21 = vsel %vm856_vm3, %v852_v19, 0  ;;  %v818_v22 = vsub.f32 %v802_v3, %v814_v20 }
 0x460   : > { %3669 = vmatpush3.bf16.msra.mxu1 %v858_v21 }
 0x461   : > { %v825_v23 = vmul.f32 1.442695, %v818_v22  ;;  %3680 = vmatprep.subr.bf16.mxu1 %v3964_v8 }
 0x463   : > { %3890 = vpow2.f32 %v825_v23 }
 0x468   : > { %v3887_v24 = vpop.eup %3886 }
 0x469   : > { %v830_v25 = vsel %vm595_vm2, %v3887_v24, 0.0 }
 0x46a   : > { %831 = vadd.xlane.f32.xlu0 %v830_v25 }
 0x46c   : > { %v3889_v26 = vpop.eup %3888 }
 0x46d   : > { %v833_v27 = vsel %vm595_vm2, %v3889_v26, 0.0 }
 0x46e   : > { %834 = vadd.xlane.f32.xlu1 %v833_v27  ;;  %v1175_v27 = vld [vmem:[%s4883_s10 + $0x80] sm:$0xff] }
 0x470   : > { %v3891_v29 = vpop.eup %3890 }
 0x471   : > { %v836_v31 = vsel %vm595_vm2, %v3891_v29, 0.0 }
 0x472   : > { %837 = vadd.xlane.f32.xlu0 %v836_v31 }
 0x47f   : > { %948 = vrot.lane.b32.xlu1 %v4145_v30, %s3970_s25 }
 0x483   : > { %996 = vrot.lane.b32.xlu1 %v4148_v33, %s3970_s25 }
 0x488   : > { %900 = vrot.lane.b32.xlu0 %v4142_v28, %s3970_s25  ;;  %s3973_s25 = smov 24  }
 0x48f   : > { %v829_v32 = vpop.xlane.xlu1 %828 }
 0x490   : > { %3892 = vrcp.f32 %v829_v32  ;;  %v1184_v32 = vld [vmem:[%s4883_s10 + $0xc8] sm:$0xff] }
 0x49d   : > { %v3893_v34 = vpop.eup %3892 }
 0x49e   : > { %v843_v35 = vmul.f32 %v3893_v34, %v3885_v11 }
 0x4a0   : > { %v847_v36 = vpack.c.bf16 %v843_v35, %v843_v35 }
 0x4a2   : > { %3671 = vmatmul.mubr.msk.bf16.vlgmr.msra.gmra.mxu1 %vm595_vm2, %v847_v36 }
 0x4a3   : > { %3682 = vmatprep.mubr.msk.bf16.mxu1 %vm3965_vm1, %v3964_v8 }
 0x4f3   : > { %v832_v37 = vpop.xlane.xlu0 %831 }
 0x4f4   : > { %3894 = vrcp.f32 %v832_v37  ;;  %v1159_v37 = vld [vmem:[%s4883_s10] sm:$0xff] }
 0x4f7   : > { %v835_v38 = vpop.xlane.xlu1 %834 }
 0x4f8   : > { %3896 = vrcp.f32 %v835_v38  ;;  %v1167_v38 = vld [vmem:[%s4883_s10 + $0x40] sm:$0xff] }
 0x4fb   : > { %v949_v30 = vpop.permute.xlu1 %948  ;;  %v838_v39 = vpop.xlane.xlu0 %837 }
 0x4fc   : > { %v954_v33 = vsel %vm856_vm3, %v949_v30, 0  ;;  %3898 = vrcp.f32 %v838_v39  ;;  %v1160_v30 = vld [vmem:[%s4883_s10 + $0x8] sm:$0xff]  ;;  %v3265_v39 = vcombine.high %v1159_v37, %v1167_v38 }
 0x4fd   : > { %3681 = vmatpush3.bf16.msra.mxu1 %v954_v33  ;;  %v1168_v33 = vld [vmem:[%s4883_s10 + $0x48] sm:$0xff] }
 0x4fe   : > { %3692 = vmatprep.subr.bf16.mxu1 %v3964_v8 }
 0x4ff   : > { %v901_v28 = vpop.permute.xlu0 %900  ;;  %v997_v43 = vpop.permute.xlu1 %996 }
 0x500   : > { %v906_v40 = vsel %vm856_vm3, %v901_v28, 0  ;;  %v1002_v46 = vsel %vm856_vm3, %v997_v43, 0  ;;  %v3264_v28 = vcombine.low %v1159_v37, %v1167_v38  ;;  %v1185_v43 = vld [vmem:[%s4883_s10 + $0xd0] sm:$0xff] }
 0x501   : > { %v3895_v41 = vpop.eup %3894  ;;  %3675 = vmatpush3.bf16.msra.mxu0 %v906_v40  ;;  %v3266_v40 = vcombine.low %v1160_v30, %v1168_v33 }
 0x502   : > { %3686 = vmatprep.subr.bf16.mxu0 %v3964_v8  ;;  %v844_v42 = vmul.f32 %v3895_v41, %v3887_v24  ;;  %v3267_v41 = vcombine.high %v1160_v30, %v1168_v33  ;;  %v3754_v33 = vld [vmem:[%s4885_s12 + $0x78] sm:$0xff]  }
 0x504   : > { %v848_v44 = vpack.c.bf16 %v844_v42, %v844_v42  ;;  %v1177_v42 = vld [vmem:[%s4883_s10 + $0x90] sm:$0xff] }
 0x505   : > { %v3897_v45 = vpop.eup %3896 }
 0x506   : > { %3677 = vmatmul.mubr.msk.bf16.vlgmr.msra.gmra.mxu0 %vm595_vm2, %v848_v44  ;;  %v845_v47 = vmul.f32 %v3897_v45, %v3889_v26  ;;  %v1178_v44 = vld [vmem:[%s4883_s10 + $0x98] sm:$0xff]  ;;  %v3974_v45 = vmov 0  }
 0x507   : > { %3687 = vmatpush3.bf16.msra.mxu0 %v1002_v46  ;;  %3688 = vmatprep.mubr.msk.bf16.mxu0 %vm3965_vm1, %v3964_v8  ;;  %v3285_v46 = vcombine.high %v1177_v42, %v1185_v43 }
 0x508   : > { %v849_v48 = vpack.c.bf16 %v845_v47, %v845_v47  ;;  %v1186_v47 = vld [vmem:[%s4883_s10 + $0xd8] sm:$0xff] }
 0x509   : > { %v3899_v49 = vpop.eup %3898 }
 0x50a   : > { %3683 = vmatmul.mubr.msk.bf16.vlgmr.msra.gmra.mxu1 %vm595_vm2, %v849_v48  ;;  %v846_v50 = vmul.f32 %v3899_v49, %v3891_v29  ;;  %v1176_v29 = vld [vmem:[%s4883_s10 + $0x88] sm:$0xff]  ;;  %v3284_v48 = vcombine.low %v1177_v42, %v1185_v43  ;;  %v3286_v49 = vcombine.low %v1178_v44, %v1186_v47  ;;  %v3758_v42 = vld [vmem:[%s4885_s12 + $0x70] sm:$0xff]  }
 0x50b   : > { %3696 = vmatprep.mubr.msk.bf16.mxu1 %vm3965_vm1, %v3964_v8  ;;  %3693 = vmatpush3.bf16.msra.mxu1 %v3752_v56  ;;  %v3282_v35 = vcombine.low %v1176_v29, %v1184_v32  ;;  %v3283_v36 = vcombine.high %v1176_v29, %v1184_v32  ;;  %v1165_v29 = vld [vmem:[%s4883_s10 + $0x30] sm:$0xff]  ;;  %v1166_v32 = vld [vmem:[%s4883_s10 + $0x38] sm:$0xff] }
 0x50c   : > { %v850_v51 = vpack.c.bf16 %v846_v50, %v846_v50  ;;  %3694 = vmatprep.subr.bf16.mxu1 %v3964_v8  ;;  %v3287_v50 = vcombine.high %v1178_v44, %v1186_v47  ;;  %v3759_v43 = vld [vmem:[%s4885_s12 + $0xf0] sm:$0xff]   ;;  %v3763_v47 = vld [vmem:[%s4885_s12 + $0xe8] sm:$0xff]  }
 0x50d   : > { %v3760_v44 = vld [vmem:[%s4885_s12 + $0x30] sm:$0xff]  }
 0x50e   : > { %3689 = vmatmul.mubr.msk.bf16.vlgmr.msra.gmra.mxu0 %vm595_vm2, %v850_v51 }
 0x50f   : > { %3695 = vmatpush3.bf16.msra.mxu1 %v3753_v57  ;;  %1470 = vmatprep.mubr.bf16.mxu0 %v3974_v45  ;;  %v3263_v57 = vld [vmem:[%s4882_s9] ss:$0 sm:$0xff] }
 0x510   : > { %1491 = vmatprep.subr.bf16.mxu1 %v3283_v36 }
 0x562   : > { %v894_v52 = vpop.f32.mrf.mxu1 }
 0x564   : > { %v3672_v53 = vpop.f32.mrf.mxu1 }
 0x566   : > { %v897_v54 = vpop.f32.mrf.mxu1 }
 0x568   : > { %v3673_v55 = vpop.f32.mrf.mxu1 }
 0x569   : > { %v3262_v55 = vld [vmem:[%s4881_s8] ss:$0 sm:$0xff] }
 0x5c6   : > { %v942_v58 = vpop.f32.mrf.mxu0 }
 0x5c7   : > { %1045 = vrot.lane.b32.xlu0 %v942_v58, %s3971_s27 }
 0x5c8   : > { %v3678_v59 = vpop.f32.mrf.mxu0 }
 0x5c9   : > { %v1161_v59 = vld [vmem:[%s4883_s10 + $0x10] sm:$0xff] }
 0x5ca   : > { %v945_v60 = vpop.f32.mrf.mxu0  ;;  %v990_v61 = vpop.f32.mrf.mxu1 }
 0x5cb   : > { %1049 = vrot.lane.b32.xlu1 %v990_v61, %s3972_s28  ;;  %v1169_v60 = vld [vmem:[%s4883_s10 + $0x50] sm:$0xff]  ;;  %v1162_v61 = vld [vmem:[%s4883_s10 + $0x18] sm:$0xff]  ;;  %s3167_s28 = scalar_lea.hbm %s4887_s14, %s3435_s2 }
 0x5cc   : > { %v3679_v62 = vpop.f32.mrf.mxu0  ;;  %v3684_v63 = vpop.f32.mrf.mxu1 }
 0x5cd   : > { %v1170_v62 = vld [vmem:[%s4883_s10 + $0x58] sm:$0xff] }
 0x5ce   : > { %v993_v1 = vpop.f32.mrf.mxu1  ;;  %v1038_v2 = vpop.f32.mrf.mxu0 }
 0x5cf   : > { %1053 = vrot.lane.b32.xlu0 %v1038_v2, %s3973_s25  ;;  %v3269_v2 = vcombine.high %v1161_v59, %v1169_v60  ;;  %s3156_s25 = scalar_lea.sflag [#allocation3], %s467_s0 }
 0x5d0   : > { %v3685_v8 = vpop.f32.mrf.mxu1  ;;  %v3690_v3 = vpop.f32.mrf.mxu0 }
 0x5d1   : > { %v3271_v8 = vcombine.high %v1162_v61, %v1170_v62  ;;  %v1179_v3 = vld [vmem:[%s4883_s10 + $0xa0] sm:$0xff] }
 0x5d2   : > { %v1041_v4 = vpop.f32.mrf.mxu0 }
 0x5d3   : > { %v1187_v4 = vld [vmem:[%s4883_s10 + $0xe0] sm:$0xff] }
 0x5d4   : > { %v3691_v5 = vpop.f32.mrf.mxu0 }
 0x5d5   : > { %v1180_v5 = vld [vmem:[%s4883_s10 + $0xa8] sm:$0xff] }
 0x639   : > { %v1046_v6 = vpop.permute.xlu0 %1045 }
 0x63a   : > { %v1056_v9 = vsel %vm595_vm2, %v894_v52, %v1046_v6  ;;  %v1188_v6 = vld [vmem:[%s4883_s10 + $0xe8] sm:$0xff] }
 0x63d   : > { %v1050_v7 = vpop.permute.xlu1 %1049 }
 0x63e   : > { %v1058_v10 = vsel %vm1057_vm4, %v1056_v9, %v1050_v7  ;;  %v3268_v7 = vcombine.low %v1161_v59, %v1169_v60  ;;  %v3270_v9 = vcombine.low %v1162_v61, %v1170_v62  ;;  %v3775_v59 = vld [vmem:[%s4885_s12 + $0xd0] sm:$0xff]   ;;  %v3778_v62 = vld [vmem:[%s4885_s12 + $0x48] sm:$0xff]  }
 0x63f   : > { %v3776_v60 = vld [vmem:[%s4885_s12 + $0x10] sm:$0xff]  }
 0x640   : > { %v3777_v61 = vld [vmem:[%s4885_s12 + $0x90] sm:$0xff]  }
 0x641   : > { %v1054_v11 = vpop.permute.xlu0 %1053 }
 0x642   : > { %v1060_v12 = vsel %vm1059_vm5, %v1058_v10, %v1054_v11  ;;  %v3289_v10 = vcombine.high %v1179_v3, %v1187_v4  ;;  %v3291_v11 = vcombine.high %v1180_v5, %v1188_v6 }
 0x643   : > { %v1061_v13 = vpack.c.bf16 %v1060_v12, %v1060_v12  ;;  %v1163_v12 = vld [vmem:[%s4883_s10 + $0x20] sm:$0xff] }
 0x645   : > { %3697 = vmatmul.mubr.msk.bf16.vlgmr.msra.gmra.mxu1 %vm482_vm0, %v1061_v13  ;;  %v1171_v13 = vld [vmem:[%s4883_s10 + $0x60] sm:$0xff] }
 0x646   : > { %1492 = vmatpush1.bf16.msra.mxu1 %v3282_v35  ;;  %1511 = vmatprep.mubr.bf16.mxu1 %v3974_v45 }
 0x647   : > { %1493 = vmatprep.subr.bf16.mxu1 %v3267_v41  ;;  %v3757_v41 = vld [vmem:[%s4885_s12 + $0xb8] sm:$0xff]  }
 0x64a   : > { %1494 = vmatpush1.bf16.msra.mxu1 %v3266_v40  ;;  %v3756_v40 = vld [vmem:[%s4885_s12 + $0x38] sm:$0xff]  }
 0x64b   : > { %1573 = vmatprep.subr.bf16.mxu1 %v3287_v50  ;;  %v3766_v50 = vld [vmem:[%s4885_s12 + $0x60] sm:$0xff]  }
 0x705   : > { %v1122_v15 = vpop.f32.mrf.mxu1 }
 0x706   : > { %v1123_v16 = vadd.f32 %v3258_v14, %v1122_v15  ;;  %v1164_v14 = vld [vmem:[%s4883_s10 + $0x28] sm:$0xff] }
 0x707   : > { %v3698_v17 = vpop.f32.mrf.mxu1  ;;  %v1172_v15 = vld [vmem:[%s4883_s10 + $0x68] sm:$0xff] }
 0x708   : > { %v4225_v18 = vadd.f32 %v1123_v16, %v4107_v0  ;;  %v1183_v0 = vld [vmem:[%s4883_s10 + $0xc0] sm:$0xff]  ;;  %v3288_v16 = vcombine.low %v1179_v3, %v1187_v4  ;;  %v3290_v17 = vcombine.low %v1180_v5, %v1188_v6  ;;  %v3786_v6 = vld [vmem:[%s4885_s12 + $0x178] sm:$0xff]  }
 0x709   : > { %v1125_v19 = vpop.f32.mrf.mxu1  ;;  %v3281_v31 = vcombine.high %v1175_v27, %v1183_v0  ;;  %v3280_v34 = vcombine.low %v1175_v27, %v1183_v0  ;;  %v3783_v3 = vld [vmem:[%s4885_s12 + $0xc0] sm:$0xff]  }
 0x70a   : > { %v1131_v20 = vsel %vm482_vm0, %v4225_v18, 0.0  ;;  %v3273_v19 = vcombine.high %v1163_v12, %v1171_v13  ;;  %v3784_v4 = vld [vmem:[%s4885_s12] sm:$0xff]  }
 0x70b   : > { %1132 = vadd.xlane.f32.xlu1 %v1131_v20  ;;  %v3699_v21 = vpop.f32.mrf.mxu1  ;;  %1450 = vmatprep.subr.bf16.mxu0 %v3281_v31  ;;  %v3275_v20 = vcombine.high %v1164_v14, %v1172_v15  ;;  %v1173_v31 = vld [vmem:[%s4883_s10 + $0x70] sm:$0xff]  ;;  %v3785_v5 = vld [vmem:[%s4885_s12 + $0x80] sm:$0xff]  }
 0x70c   : > { %1451 = vmatpush1.bf16.msra.mxu0 %v3280_v34  ;;  %v1181_v21 = vld [vmem:[%s4883_s10 + $0xb0] sm:$0xff]  ;;  %v1174_v34 = vld [vmem:[%s4883_s10 + $0x78] sm:$0xff]  ;;  %v3277_v37 = vcombine.high %v1165_v29, %v1173_v31  ;;  %v3276_v30 = vcombine.low %v1165_v29, %v1173_v31 }
 0x70d   : > { %1452 = vmatprep.subr.bf16.mxu0 %v3265_v39  ;;  %v3279_v38 = vcombine.high %v1166_v32, %v1174_v34  ;;  %v3278_v39 = vcombine.low %v1166_v32, %v1174_v34 }
 0x710   : > { %1453 = vmatpush1.bf16.msra.mxu0 %v3264_v28  ;;  %v3755_v28 = vld [vmem:[%s4885_s12 + $0xf8] sm:$0xff]  }
 0x711   : > { %1532 = vmatprep.subr.bf16.mxu0 %v3285_v46  ;;  %v3762_v46 = vld [vmem:[%s4885_s12 + $0x68] sm:$0xff]  }
 0x794   : > { %v1133_v22 = vpop.xlane.xlu1 %1132 }
 0x795   : > { %v1134_v23 = vmul.f32 0.03125, %v1133_v22  ;;  %v1189_v22 = vld [vmem:[%s4883_s10 + $0xf0] sm:$0xff] }
 0x796   : > { %v3293_v27 = vcombine.high %v1181_v21, %v1189_v22  ;;  %v3292_v35 = vcombine.low %v1181_v21, %v1189_v22 }
 0x797   : > { %v1135_v24 = vsub.f32 %v4225_v18, %v1134_v23  ;;  %v1182_v23 = vld [vmem:[%s4883_s10 + $0xb8] sm:$0xff] }
 0x799   : > { %v1136_v25 = vmul.f32 %v1135_v24, %v1135_v24 }
 0x79b   : > { %v1137_v26 = vsel %vm482_vm0, %v1136_v25, 0.0  ;;  %v3272_v25 = vcombine.low %v1163_v12, %v1171_v13  ;;  %v4467_v12 = vld [vmem:[%s4884_s11 + $0x8] sm:$0xff] }
 0x79c   : > { %1138 = vadd.xlane.f32.xlu0 %v1137_v26  ;;  %v3274_v26 = vcombine.low %v1164_v14, %v1172_v15 }
 0x825   : > { %v1139_v51 = vpop.xlane.xlu0 %1138 }
 0x826   : > { %v1140_v52 = vmul.f32 0.03125, %v1139_v51  ;;  %v3767_v51 = vld [vmem:[%s4885_s12 + $0xe0] sm:$0xff]  }
 0x828   : > { %v1141_v53 = vadd.f32 1e-05, %v1140_v52  ;;  %v3768_v52 = vld [vmem:[%s4885_s12 + $0x20] sm:$0xff]  }
 0x82a   : > { %3900 = vrsqrt.f32 %v1141_v53  ;;  %v3769_v53 = vld [vmem:[%s4885_s12 + $0xa0] sm:$0xff]  }
 0x837   : > { %v3901_v54 = vpop.eup %3900 }
 0x838   : > { %v1143_v56 = vmul.f32 %v3901_v54, %v1135_v24  ;;  %v1190_v24 = vld [vmem:[%s4883_s10 + $0xf8] sm:$0xff] }
 0x839   : > { %v3295_v0 = vcombine.high %v1182_v23, %v1190_v24  ;;  %v3294_v36 = vcombine.low %v1182_v23, %v1190_v24  ;;  %v3770_v54 = vld [vmem:[%s4885_s12 + $0x58] sm:$0xff]  }
 0x83a   : > { %v1150_v58 = vmul.f32 %v3262_v55, %v1143_v56  ;;  %v3771_v55 = vld [vmem:[%s4885_s12 + $0xd8] sm:$0xff]  }
 0x83b   : > { %v3772_v56 = vld [vmem:[%s4885_s12 + $0x18] sm:$0xff]  }
 0x83c   : > { %v1157_v63 = vadd.f32 %v3263_v57, %v1150_v58  ;;  %v3773_v57 = vld [vmem:[%s4885_s12 + $0x98] sm:$0xff]   ;;  %v3774_v58 = vld [vmem:[%s4885_s12 + $0x50] sm:$0xff]  }
 0x83e   : > { %v4287_v1 = vpack.c.bf16 %v1157_v63, %v1157_v63  ;;  %v3779_v63 = vld [vmem:[%s4885_s12 + $0xc8] sm:$0xff]  }
 0x840   : > { %3296 = vmatmul.mubr.msk.bf16.vlgmr.msra.gmra.mxu0 %vm482_vm0, %v4287_v1  ;;  %3297 = vmatmul.mubr.msk.bf16.vlgmr.msra.gmra.mxu1 %vm482_vm0, %v4287_v1 }
 0x841   : > { %1533 = vmatpush1.bf16.msra.mxu0 %v3284_v48  ;;  %1574 = vmatpush1.bf16.msra.mxu1 %v3286_v49  ;;  %v3764_v48 = vld [vmem:[%s4885_s12 + $0x28] sm:$0xff]  }
 0x842   : > { %1534 = vmatprep.subr.bf16.mxu0 %v3269_v2  ;;  %1575 = vmatprep.subr.bf16.mxu1 %v3271_v8  ;;  %v3765_v49 = vld [vmem:[%s4885_s12 + $0xa8] sm:$0xff]   ;;  %v3782_v8 = vld [vmem:[%s4885_s12 + $0x40] sm:$0xff]  }
 0x843   : > { %1552 = vmatprep.mubr.bf16.mxu0 %v3974_v45  ;;  %1593 = vmatprep.mubr.bf16.mxu1 %v3974_v45  ;;  %v3781_v2 = vld [vmem:[%s4885_s12 + $0x88] sm:$0xff]  }
 0x845   : > { %1535 = vmatpush1.bf16.msra.mxu0 %v3268_v7  ;;  %1576 = vmatpush1.bf16.msra.mxu1 %v3270_v9  ;;  %v3787_v7 = vld [vmem:[%s4885_s12 + $0x1f8] sm:$0xff]   ;;  %v1195_v9 = vlaneseq }
 0x846   : > { %1614 = vmatprep.subr.bf16.mxu0 %v3289_v10  ;;  %1655 = vmatprep.subr.bf16.mxu1 %v3291_v11 }
 0x847   : > { %v4461_v10 = vshrl.u32 %v1195_v9, 7 }
 0x848   : > { %3298 = vmatmul.mubr.msk.bf16.vlgmr.msra.gmra.mxu0 %vm482_vm0, %v4287_v1  ;;  %3299 = vmatmul.mubr.msk.bf16.vlgmr.msra.gmra.mxu1 %vm482_vm0, %v4287_v1 }
 0x849   : > { %1615 = vmatpush1.bf16.msra.mxu0 %v3288_v16  ;;  %1656 = vmatpush1.bf16.msra.mxu1 %v3290_v17  ;;  %v1221_v11 = vsub.s32 6, %v4461_v10  ;;  %v1197_v14 = vsub.s32 0, %v4461_v10  ;;  %v1205_v15 = vsub.s32 2, %v4461_v10  ;;  %v4479_v16 = vld [vmem:[%s4884_s11] sm:$0xff]  ;;  %v1201_v17 = vsub.s32 1, %v4461_v10 }
 0x84a   : > { %1616 = vmatprep.subr.bf16.mxu0 %v3273_v19  ;;  %1657 = vmatprep.subr.bf16.mxu1 %v3275_v20  ;;  %v1209_v19 = vsub.s32 3, %v4461_v10  ;;  %v1217_v34 = vsub.s32 5, %v4461_v10 }
 0x84b   : > { %1634 = vmatprep.mubr.bf16.mxu0 %v3974_v45  ;;  %1675 = vmatprep.mubr.bf16.mxu1 %v3974_v45  ;;  %v4472_v13 = vrot.slane %v4467_v12, %v1221_v11  ;;  %v1198_v20 = vrot.slane %v4479_v16, %v1197_v14  ;;  %v1206_v21 = vrot.slane %v4479_v16, %v1205_v15 }
 0x84c   : > { %v1202_v22 = vrot.slane %v4479_v16, %v1201_v17  ;;  %v1210_v23 = vrot.slane %v4479_v16, %v1209_v19 }
 0x84d   : > { %1617 = vmatpush1.bf16.msra.mxu0 %v3272_v25  ;;  %1658 = vmatpush1.bf16.msra.mxu1 %v3274_v26 }
 0x84e   : > { %1696 = vmatprep.subr.bf16.mxu0 %v3293_v27  ;;  %1737 = vmatprep.subr.bf16.mxu1 %v3295_v0 }
 0x850   : > { %3300 = vmatmul.mubr.msk.bf16.vlgmr.msra.gmra.mxu0 %vm482_vm0, %v4287_v1  ;;  %3301 = vmatmul.mubr.msk.bf16.vlgmr.msra.gmra.mxu1 %vm482_vm0, %v4287_v1 }
 0x851   : > { %1697 = vmatpush1.bf16.msra.mxu0 %v3292_v35  ;;  %1738 = vmatpush1.bf16.msra.mxu1 %v3294_v36  ;;  %v1225_v35 = vsub.s32 7, %v4461_v10 }
 0x852   : > { %1698 = vmatprep.subr.bf16.mxu0 %v3277_v37  ;;  %1739 = vmatprep.subr.bf16.mxu1 %v3279_v38 }
 0x853   : > { %1716 = vmatprep.mubr.bf16.mxu0 %v3974_v45  ;;  %1757 = vmatprep.mubr.bf16.mxu1 %v3974_v45  ;;  %v3761_v45 = vld [vmem:[%s4885_s12 + $0xb0] sm:$0xff]  }
 0x855   : > { %1699 = vmatpush1.bf16.msra.mxu0 %v3276_v30  ;;  %1740 = vmatpush1.bf16.msra.mxu1 %v3278_v39 }
 0x856   : > { %3460 = vmatprep.subr.bf16.mxu0 %v3754_v33  ;;  %3482 = vmatprep.subr.bf16.mxu1 %v3755_v28 }
 0x858   : > { %3302 = vmatmul.mubr.msk.bf16.vlgmr.msra.gmra.mxu0 %vm482_vm0, %v4287_v1  ;;  %3303 = vmatmul.mubr.msk.bf16.vlgmr.msra.gmra.mxu1 %vm482_vm0, %v4287_v1  ;;  %v3780_v1 = vld [vmem:[%s4885_s12 + $0x8] sm:$0xff]  }
 0x859   : > { %3461 = vmatpush3.bf16.msra.mxu0 %v3756_v40  ;;  %3483 = vmatpush3.bf16.msra.mxu1 %v3757_v41 }
 0x85a   : > { %3462 = vmatprep.subr.bf16.mxu0 %v3758_v42  ;;  %3484 = vmatprep.subr.bf16.mxu1 %v3759_v43  ;;  %v1218_v43 = vrot.slane %v4479_v16, %v1217_v34 }
 0x85d   : > { %3463 = vmatpush3.bf16.msra.mxu0 %v3760_v44  ;;  %3485 = vmatpush3.bf16.msra.mxu1 %v3761_v45  ;;  %v1226_v44 = vrot.slane %v4479_v16, %v1225_v35  ;;  %v3788_v45 = vld [vmem:[%s4885_s12 + $0x138] sm:$0xff]  }
 0x85e   : > { %3464 = vmatprep.subr.bf16.mxu0 %v3762_v46  ;;  %3486 = vmatprep.subr.bf16.mxu1 %v3763_v47  ;;  %v3789_v46 = vld [vmem:[%s4885_s12 + $0x1b8] sm:$0xff]  }
 0x861   : > { %3465 = vmatpush3.bf16.msra.mxu0 %v3764_v48  ;;  %3487 = vmatpush3.bf16.msra.mxu1 %v3765_v49 }
 0x862   : > { %3466 = vmatprep.subr.bf16.mxu0 %v3766_v50  ;;  %3488 = vmatprep.subr.bf16.mxu1 %v3767_v51  ;;  %v3790_v51 = vld [vmem:[%s4885_s12 + $0x170] sm:$0xff]  }
 0x865   : > { %3467 = vmatpush3.bf16.msra.mxu0 %v3768_v52  ;;  %3489 = vmatpush3.bf16.msra.mxu1 %v3769_v53  ;;  %v3791_v52 = vld [vmem:[%s4885_s12 + $0x1f0] sm:$0xff]  }
 0x866   : > { %3468 = vmatprep.subr.bf16.mxu0 %v3770_v54  ;;  %3490 = vmatprep.subr.bf16.mxu1 %v3771_v55 }
 0x869   : > { %3469 = vmatpush3.bf16.msra.mxu0 %v3772_v56  ;;  %3491 = vmatpush3.bf16.msra.mxu1 %v3773_v57  ;;  %v3792_v57 = vld [vmem:[%s4885_s12 + $0x130] sm:$0xff]  }
 0x86a   : > { %3470 = vmatprep.subr.bf16.mxu0 %v3774_v58  ;;  %3492 = vmatprep.subr.bf16.mxu1 %v3775_v59  ;;  %v3793_v58 = vld [vmem:[%s4885_s12 + $0x1b0] sm:$0xff]  }
 0x86d   : > { %3471 = vmatpush3.bf16.msra.mxu0 %v3776_v60  ;;  %3493 = vmatpush3.bf16.msra.mxu1 %v3777_v61  ;;  %v3794_v61 = vld [vmem:[%s4885_s12 + $0x168] sm:$0xff]  }
 0x86e   : > { %3472 = vmatprep.subr.bf16.mxu0 %v3778_v62  ;;  %3494 = vmatprep.subr.bf16.mxu1 %v3779_v63  ;;  %v3795_v62 = vld [vmem:[%s4885_s12 + $0x1e8] sm:$0xff]  }
 0x871   : > { %3473 = vmatpush3.bf16.msra.mxu0 %v3780_v1  ;;  %3495 = vmatpush3.bf16.msra.mxu1 %v3781_v2 }
 0x872   : > { %3474 = vmatprep.subr.bf16.mxu0 %v3782_v8  ;;  %3496 = vmatprep.subr.bf16.mxu1 %v3783_v3 }
 0x875   : > { %3475 = vmatpush3.bf16.msra.mxu0 %v3784_v4  ;;  %3497 = vmatpush3.bf16.msra.mxu1 %v3785_v5  ;;  %v3796_v5 = vld [vmem:[%s4885_s12 + $0x128] sm:$0xff]  }
 0x876   : > { %3504 = vmatprep.subr.bf16.mxu0 %v3786_v6  ;;  %3526 = vmatprep.subr.bf16.mxu1 %v3787_v7  ;;  %v3797_v6 = vld [vmem:[%s4885_s12 + $0x1a8] sm:$0xff]  }
 0x900   : > { %v1472_v24 = vpop.f32.mrf.mxu0  ;;  %v1513_v25 = vpop.f32.mrf.mxu1 }
 0x901   : > { %v1473_v26 = vadd.f32 %v1472_v24, %v1198_v20  ;;  %v1514_v27 = vadd.f32 %v1513_v25, %v1206_v21  ;;  %v3798_v20 = vld [vmem:[%s4885_s12 + $0x160] sm:$0xff]   ;;  %v1213_v24 = vsub.s32 4, %v4461_v10 }
 0x902   : > { %v1474_v0 = vpop.f32.mrf.mxu0  ;;  %v1515_v29 = vpop.f32.mrf.mxu1  ;;  %v3799_v21 = vld [vmem:[%s4885_s12 + $0x1e0] sm:$0xff]  }
 0x903   : > { %v1475_v31 = vadd.f32 %v1474_v0, %v1202_v22  ;;  %v1516_v32 = vadd.f32 %v1515_v29, %v1210_v23  ;;  %v1766_v36 = vmax.f32 %v1473_v26, 0.0  ;;  %v1768_v37 = vmax.f32 %v1514_v27, 0.0  ;;  %v3800_v25 = vld [vmem:[%s4885_s12 + $0x120] sm:$0xff]   ;;  %v3802_v29 = vld [vmem:[%s4885_s12 + $0x158] sm:$0xff]  }
 0x904   : > { %v1476_v38 = vpop.f32.mrf.mxu0  ;;  %v1517_v30 = vpop.f32.mrf.mxu1  ;;  %v3801_v26 = vld [vmem:[%s4885_s12 + $0x1a0] sm:$0xff]  }
 0x905   : > { %v1767_v39 = vmax.f32 %v1475_v31, 0.0  ;;  %v1769_v33 = vmax.f32 %v1516_v32, 0.0  ;;  %v1782_v47 = vpack.c.bf16 %v1766_v36, %v1766_v36  ;;  %v1784_v48 = vpack.c.bf16 %v1768_v37, %v1768_v37  ;;  %v3803_v31 = vld [vmem:[%s4885_s12 + $0x1d8] sm:$0xff]  }
 0x906   : > { %v1477_v28 = vpop.f32.mrf.mxu0  ;;  %v1518_v40 = vpop.f32.mrf.mxu1  ;;  %v1246_v32 = vrot.slane %v4467_v12, %v1213_v24  ;;  %v3804_v38 = vld [vmem:[%s4885_s12 + $0x118] sm:$0xff]  }
 0x907   : > { %v1783_v41 = vpack.c.bf16 %v1767_v39, %v1767_v39  ;;  %v1785_v42 = vpack.c.bf16 %v1769_v33, %v1769_v33  ;;  %v3805_v30 = vld [vmem:[%s4885_s12 + $0x198] sm:$0xff]   ;;  %v3806_v28 = vld [vmem:[%s4885_s12 + $0x150] sm:$0xff]  }
 0x908   : > { %v4509_v49 = vpop.f32.mrf.mxu0  ;;  %v4511_v50 = vpop.f32.mrf.mxu1  ;;  %v3807_v40 = vld [vmem:[%s4885_s12 + $0x1d0] sm:$0xff]  }
 0x909   : > { %2861 = vmatprep.mubr.bf16.mxu0 %v1783_v41  ;;  %2901 = vmatprep.mubr.bf16.mxu1 %v1785_v42 }
 0x90a   : > { %v1556_v53 = vpop.f32.mrf.mxu0  ;;  %v1597_v54 = vpop.f32.mrf.mxu1  ;;  %2862 = vmatmul.mubr.bf16.vlgmr.msra.gmra.mxu0 %v1782_v47  ;;  %2902 = vmatmul.mubr.bf16.vlgmr.msra.gmra.mxu1 %v1784_v48  ;;  %v1214_v47 = vrot.slane %v4479_v16, %v1213_v24 }
 0x90b   : > { %v1557_v55 = vadd.f32 %v1556_v53, %v1218_v43  ;;  %v1598_v56 = vadd.f32 %v1597_v54, %v1226_v44  ;;  %3505 = vmatpush3.bf16.msra.mxu0 %v3788_v45  ;;  %3527 = vmatpush3.bf16.msra.mxu1 %v3789_v46  ;;  %v3808_v45 = vld [vmem:[%s4885_s12 + $0x110] sm:$0xff]   ;;  %v3811_v53 = vld [vmem:[%s4885_s12 + $0x1c8] sm:$0xff]   ;;  %v1234_v54 = vrot.slane %v4467_v12, %v1201_v17 }
 0x90c   : > { %v1558_v59 = vpop.f32.mrf.mxu0  ;;  %v1599_v60 = vpop.f32.mrf.mxu1  ;;  %3506 = vmatprep.subr.bf16.mxu0 %v3790_v51  ;;  %3528 = vmatprep.subr.bf16.mxu1 %v3791_v52  ;;  %v3809_v46 = vld [vmem:[%s4885_s12 + $0x190] sm:$0xff]   ;;  %v3810_v52 = vld [vmem:[%s4885_s12 + $0x148] sm:$0xff]  }
 0x90d   : > { %v1771_v63 = vmax.f32 %v1557_v55, 0.0  ;;  %v1773_v1 = vmax.f32 %v1598_v56, 0.0  ;;  %v3812_v56 = vld [vmem:[%s4885_s12 + $0x108] sm:$0xff]   ;;  %v3815_v59 = vld [vmem:[%s4885_s12 + $0x1c0] sm:$0xff]  }
 0x90e   : > { %v1559_v2 = vpop.f32.mrf.mxu0  ;;  %v1600_v8 = vpop.f32.mrf.mxu1 }
 0x90f   : > { %v1787_v3 = vpack.c.bf16 %v1771_v63, %v1771_v63  ;;  %v1789_v4 = vpack.c.bf16 %v1773_v1, %v1773_v1  ;;  %3507 = vmatpush3.bf16.msra.mxu0 %v3792_v57  ;;  %3529 = vmatpush3.bf16.msra.mxu1 %v3793_v58  ;;  %v3813_v57 = vld [vmem:[%s4885_s12 + $0x188] sm:$0xff]   ;;  %v1555_v58 = vadd.f32 %v4509_v49, %v1214_v47  ;;  %v3816_v49 = vld [vmem:[%s4885_s12 + $0x100] sm:$0xff]   ;;  %v3818_v1 = vld [vmem:[%s4885_s12 + $0x278] sm:$0xff]  }
 0x910   : > { %v4537_v7 = vpop.f32.mrf.mxu0  ;;  %v4539_v9 = vpop.f32.mrf.mxu1  ;;  %3508 = vmatprep.subr.bf16.mxu0 %v3794_v61  ;;  %3530 = vmatprep.subr.bf16.mxu1 %v3795_v62  ;;  %v3819_v2 = vld [vmem:[%s4885_s12 + $0x2f8] sm:$0xff]   ;;  %v1230_v47 = vrot.slane %v4467_v12, %v1197_v14  ;;  %v1250_v14 = vrot.slane %v4467_v12, %v1217_v34  ;;  %v3846_v34 = vld [vmem:[%s4885_s12 + $0x240] sm:$0xff]  }
 0x911   : > { %2941 = vmatprep.mubr.bf16.mxu0 %v1787_v3  ;;  %2981 = vmatprep.mubr.bf16.mxu1 %v1789_v4  ;;  %v1770_v62 = vmax.f32 %v1555_v58, 0.0  ;;  %v3820_v4 = vld [vmem:[%s4885_s12 + $0x238] sm:$0xff]  }
 0x912   : > { %v1638_v22 = vpop.f32.mrf.mxu0  ;;  %v1679_v23 = vpop.f32.mrf.mxu1 }
 0x913   : > { %3509 = vmatpush3.bf16.msra.mxu0 %v3796_v5  ;;  %3531 = vmatpush3.bf16.msra.mxu1 %v3797_v6  ;;  %v1639_v60 = vadd.f32 %v1638_v22, %v1234_v54  ;;  %v1786_v5 = vpack.c.bf16 %v1770_v62, %v1770_v62  ;;  %v3822_v22 = vld [vmem:[%s4885_s12 + $0x270] sm:$0xff]   ;;  %v3844_v54 = vld [vmem:[%s4885_s12 + $0x208] sm:$0xff]  }
 0x914   : > { %v1640_v27 = vpop.f32.mrf.mxu0  ;;  %v1681_v0 = vpop.f32.mrf.mxu1  ;;  %3510 = vmatprep.subr.bf16.mxu0 %v3798_v20  ;;  %3532 = vmatprep.subr.bf16.mxu1 %v3799_v21  ;;  %v3821_v20 = vld [vmem:[%s4885_s12 + $0x2b8] sm:$0xff]  }
 0x915   : > { %v1775_v8 = vmax.f32 %v1639_v60, 0.0  ;;  %v3826_v27 = vld [vmem:[%s4885_s12 + $0x268] sm:$0xff]  }
 0x916   : > { %v1641_v36 = vpop.f32.mrf.mxu0  ;;  %v1682_v37 = vpop.f32.mrf.mxu1  ;;  %v3827_v0 = vld [vmem:[%s4885_s12 + $0x2e8] sm:$0xff]  }
 0x917   : > { %3511 = vmatpush3.bf16.msra.mxu0 %v3800_v25  ;;  %3533 = vmatpush3.bf16.msra.mxu1 %v3801_v26  ;;  %v1791_v21 = vpack.c.bf16 %v1775_v8, %v1775_v8  ;;  %v3824_v25 = vld [vmem:[%s4885_s12 + $0x230] sm:$0xff]   ;;  %v3831_v36 = vld [vmem:[%s4885_s12 + $0x2e0] sm:$0xff]   ;;  %v3859_v8 = vld [vmem:[%s4885_s12 + $0x3e8] sm:$0xff]  }
 0x918   : > { %v1718_v39 = vpop.f32.mrf.mxu0  ;;  %v1759_v33 = vpop.f32.mrf.mxu1  ;;  %3512 = vmatprep.subr.bf16.mxu0 %v3802_v29  ;;  %3534 = vmatprep.subr.bf16.mxu1 %v3803_v31  ;;  %v3825_v26 = vld [vmem:[%s4885_s12 + $0x2b0] sm:$0xff]   ;;  %v3828_v29 = vld [vmem:[%s4885_s12 + $0x228] sm:$0xff]   ;;  %v3832_v37 = vld [vmem:[%s4885_s12 + $0x220] sm:$0xff]  }
 0x919   : > { %v4573_v41 = vadd.f32 %v1718_v39, %v1246_v32  ;;  %v4576_v42 = vadd.f32 %v1759_v33, %v4472_v13  ;;  %v1222_v13 = vrot.slane %v4479_v16, %v1221_v11  ;;  %v1242_v11 = vrot.slane %v4467_v12, %v1209_v19  ;;  %v3814_v19 = vld [vmem:[%s4885_s12 + $0x140] sm:$0xff]   ;;  %v3829_v31 = vld [vmem:[%s4885_s12 + $0x2a8] sm:$0xff]   ;;  %v3835_v39 = vld [vmem:[%s4885_s12 + $0x2d8] sm:$0xff]  }
 0x91a   : > { %v4578_v43 = vpop.f32.mrf.mxu0  ;;  %v4580_v44 = vpop.f32.mrf.mxu1  ;;  %v3830_v32 = vld [vmem:[%s4885_s12 + $0x260] sm:$0xff]   ;;  %v3836_v33 = vld [vmem:[%s4885_s12 + $0x218] sm:$0xff]  }
 0x91b   : > { %3513 = vmatpush3.bf16.msra.mxu0 %v3804_v38  ;;  %3535 = vmatpush3.bf16.msra.mxu1 %v3805_v30  ;;  %v1596_v17 = vadd.f32 %v4511_v50, %v1222_v13  ;;  %v1680_v61 = vadd.f32 %v1679_v23, %v1242_v11  ;;  %v3817_v50 = vld [vmem:[%s4885_s12 + $0x180] sm:$0xff]   ;;  %v3823_v23 = vld [vmem:[%s4885_s12 + $0x2f0] sm:$0xff]   ;;  %v3834_v30 = vld [vmem:[%s4885_s12 + $0x258] sm:$0xff]  }
 0x91c   : > { %v1722_v48 = vpop.f32.mrf.mxu0  ;;  %v1763_v51 = vpop.f32.mrf.mxu1  ;;  %3514 = vmatprep.subr.bf16.mxu0 %v3806_v28  ;;  %3536 = vmatprep.subr.bf16.mxu1 %v3807_v40  ;;  %v3833_v38 = vld [vmem:[%s4885_s12 + $0x2a0] sm:$0xff]   ;;  %v3837_v28 = vld [vmem:[%s4885_s12 + $0x298] sm:$0xff]   ;;  %v3838_v40 = vld [vmem:[%s4885_s12 + $0x250] sm:$0xff]  }
 0x91d   : > { %v1772_v63 = vmax.f32 %v1596_v17, 0.0  ;;  %v1777_v3 = vmax.f32 %v1680_v61, 0.0  ;;  %v3841_v13 = vld [vmem:[%s4885_s12 + $0x290] sm:$0xff]   ;;  %v3842_v48 = vld [vmem:[%s4885_s12 + $0x248] sm:$0xff]   ;;  %v1238_v51 = vrot.slane %v4467_v12, %v1205_v15  ;;  %v1637_v15 = vadd.f32 %v4537_v7, %v1230_v47  ;;  %v3852_v17 = vld [vmem:[%s4885_s12 + $0x338] sm:$0xff]  }
 0x91e   : > { %v1723_v16 = vpop.f32.mrf.mxu0  ;;  %v1764_v55 = vpop.f32.mrf.mxu1  ;;  %v3845_v11 = vld [vmem:[%s4885_s12 + $0x288] sm:$0xff]   ;;  %v3854_v61 = vld [vmem:[%s4885_s12 + $0x370] sm:$0xff]  }
 0x91f   : > { %3515 = vmatpush3.bf16.msra.mxu0 %v3808_v45  ;;  %3537 = vmatpush3.bf16.msra.mxu1 %v3809_v46  ;;  %v1788_v6 = vpack.c.bf16 %v1772_v63, %v1772_v63  ;;  %v1793_v24 = vpack.c.bf16 %v1777_v3, %v1777_v3  ;;  %v3839_v45 = vld [vmem:[%s4885_s12 + $0x2d0] sm:$0xff]   ;;  %v1678_v10 = vadd.f32 %v4539_v9, %v1238_v51  ;;  %v3848_v16 = vld [vmem:[%s4885_s12 + $0x200] sm:$0xff]   ;;  %v1774_v55 = vmax.f32 %v1637_v15, 0.0  ;;  %v3860_v3 = vld [vmem:[%s4885_s12 + $0x328] sm:$0xff]  }
 0x920   : > { %3516 = vmatprep.subr.bf16.mxu0 %v3810_v52  ;;  %3538 = vmatprep.subr.bf16.mxu1 %v3811_v53  ;;  %v3840_v46 = vld [vmem:[%s4885_s12 + $0x210] sm:$0xff]   ;;  %v3843_v52 = vld [vmem:[%s4885_s12 + $0x2c8] sm:$0xff]   ;;  %v1258_v53 = vrot.slane %v4467_v12, %v1225_v35  ;;  %v3847_v12 = vld [vmem:[%s4885_s12 + $0x2c0] sm:$0xff]   ;;  %v1721_v35 = vadd.f32 %v4578_v43, %v1250_v14 }
 0x921   : > { %v3849_v9 = vld [vmem:[%s4885_s12 + $0x280] sm:$0xff]   ;;  %v3851_v43 = vld [vmem:[%s4885_s12 + $0x3f8] sm:$0xff]   ;;  %v3856_v63 = vld [vmem:[%s4885_s12 + $0x330] sm:$0xff]  }
 0x922   : > { %v1762_v7 = vadd.f32 %v4580_v44, %v1258_v53  ;;  %v1779_v44 = vmax.f32 %v1721_v35, 0.0 }
 0x923   : > { %3517 = vmatpush3.bf16.msra.mxu0 %v3812_v56  ;;  %3539 = vmatpush3.bf16.msra.mxu1 %v3813_v57  ;;  %v3850_v56 = vld [vmem:[%s4885_s12 + $0x378] sm:$0xff]   ;;  %v1776_v57 = vmax.f32 %v1678_v10, 0.0 }
 0x924   : > { %3518 = vmatprep.subr.bf16.mxu0 %v3814_v19  ;;  %3540 = vmatprep.subr.bf16.mxu1 %v3815_v59  ;;  %v1781_v58 = vmax.f32 %v1762_v7, 0.0  ;;  %v1790_v19 = vpack.c.bf16 %v1774_v55, %v1774_v55  ;;  %v3853_v59 = vld [vmem:[%s4885_s12 + $0x3b8] sm:$0xff]  }
 0x925   : > { %v1792_v60 = vpack.c.bf16 %v1776_v57, %v1776_v57 }
 0x926   : > { %v1797_v62 = vpack.c.bf16 %v1781_v58, %v1781_v58 }
 0x927   : > { %3519 = vmatpush3.bf16.msra.mxu0 %v3816_v49  ;;  %3541 = vmatpush3.bf16.msra.mxu1 %v3817_v50  ;;  %v1795_v49 = vpack.c.bf16 %v1779_v44, %v1779_v44  ;;  %v3855_v50 = vld [vmem:[%s4885_s12 + $0x3f0] sm:$0xff]  }
 0x928   : > { %3548 = vmatprep.subr.bf16.mxu0 %v3818_v1  ;;  %3570 = vmatprep.subr.bf16.mxu1 %v3819_v2  ;;  %v3857_v1 = vld [vmem:[%s4885_s12 + $0x3b0] sm:$0xff]   ;;  %v3858_v2 = vld [vmem:[%s4885_s12 + $0x368] sm:$0xff]  }
 0x92a   : > { %2942 = vmatmul.mubr.bf16.vlgmr.msra.gmra.mxu0 %v1786_v5  ;;  %2982 = vmatmul.mubr.bf16.vlgmr.msra.gmra.mxu1 %v1788_v6  ;;  %v3862_v5 = vld [vmem:[%s4885_s12 + $0x360] sm:$0xff]  }
 0x92b   : > { %3549 = vmatpush3.bf16.msra.mxu0 %v3820_v4  ;;  %3021 = vmatprep.mubr.bf16.mxu0 %v1791_v21  ;;  %v3861_v4 = vld [vmem:[%s4885_s12 + $0x3a8] sm:$0xff]   ;;  %v3863_v6 = vld [vmem:[%s4885_s12 + $0x3e0] sm:$0xff]  }
 0x92c   : > { %3571 = vmatpush3.bf16.msra.mxu1 %v3821_v20  ;;  %3061 = vmatprep.mubr.bf16.mxu1 %v1793_v24  ;;  %v3864_v20 = vld [vmem:[%s4885_s12 + $0x320] sm:$0xff]   ;;  %v3868_v24 = vld [vmem:[%s4885_s12 + $0x318] sm:$0xff]  }
 0x92d   : > { %3550 = vmatprep.subr.bf16.mxu0 %v3822_v22  ;;  %3572 = vmatprep.subr.bf16.mxu1 %v3823_v23  ;;  %v3865_v21 = vld [vmem:[%s4885_s12 + $0x3a0] sm:$0xff]   ;;  %v3866_v22 = vld [vmem:[%s4885_s12 + $0x358] sm:$0xff]  }
 0x92e   : > { %v3867_v23 = vld [vmem:[%s4885_s12 + $0x3d8] sm:$0xff]  }
 0x92f   : > { %3551 = vmatpush3.bf16.msra.mxu0 %v3824_v25  ;;  %v3869_v25 = vld [vmem:[%s4885_s12 + $0x398] sm:$0xff]  }
 0x930   : > { %3573 = vmatpush3.bf16.msra.mxu1 %v3825_v26  ;;  %3552 = vmatprep.subr.bf16.mxu0 %v3826_v27  ;;  %v3870_v26 = vld [vmem:[%s4885_s12 + $0x350] sm:$0xff]  }
 0x931   : > { %3574 = vmatprep.subr.bf16.mxu1 %v3827_v0  ;;  %v3871_v27 = vld [vmem:[%s4885_s12 + $0x3d0] sm:$0xff]  }
 0x932   : > { %v3872_v0 = vld [vmem:[%s4885_s12 + $0x310] sm:$0xff]  }
 0x933   : > { %3553 = vmatpush3.bf16.msra.mxu0 %v3828_v29  ;;  %v3873_v29 = vld [vmem:[%s4885_s12 + $0x390] sm:$0xff]  }
 0x934   : > { %3575 = vmatpush3.bf16.msra.mxu1 %v3829_v31  ;;  %3554 = vmatprep.subr.bf16.mxu0 %v3830_v32  ;;  %v3874_v31 = vld [vmem:[%s4885_s12 + $0x348] sm:$0xff]  }
 0x935   : > { %3576 = vmatprep.subr.bf16.mxu1 %v3831_v36  ;;  %v3875_v32 = vld [vmem:[%s4885_s12 + $0x3c8] sm:$0xff]  }
 0x936   : > { %v3876_v36 = vld [vmem:[%s4885_s12 + $0x308] sm:$0xff]  }
 0x937   : > { %3555 = vmatpush3.bf16.msra.mxu0 %v3832_v37  ;;  %v3877_v37 = vld [vmem:[%s4885_s12 + $0x388] sm:$0xff]  }
 0x938   : > { %3577 = vmatpush3.bf16.msra.mxu1 %v3833_v38  ;;  %3556 = vmatprep.subr.bf16.mxu0 %v3834_v30  ;;  %v3878_v38 = vld [vmem:[%s4885_s12 + $0x340] sm:$0xff]  }
 0x939   : > { %3578 = vmatprep.subr.bf16.mxu1 %v3835_v39  ;;  %v3879_v30 = vld [vmem:[%s4885_s12 + $0x3c0] sm:$0xff]  }
 0x93a   : > { %v3880_v39 = vld [vmem:[%s4885_s12 + $0x300] sm:$0xff]  }
 0x93b   : > { %3557 = vmatpush3.bf16.msra.mxu0 %v3836_v33  ;;  %v1778_v33 = vmax.f32 %v4573_v41, 0.0  ;;  %v3304_v41 = vld [vmem:[%s4886_s13] ss:$0 sm:$0xff] }
 0x93c   : > { %3579 = vmatpush3.bf16.msra.mxu1 %v3837_v28  ;;  %3558 = vmatprep.subr.bf16.mxu0 %v3838_v40  ;;  %v3881_v28 = vld [vmem:[%s4885_s12 + $0x380] sm:$0xff]   ;;  %v1780_v40 = vmax.f32 %v4576_v42, 0.0 }
 0x93d   : > { %3580 = vmatprep.subr.bf16.mxu1 %v3839_v45  ;;  %v1794_v45 = vpack.c.bf16 %v1778_v33, %v1778_v33 }
 0x93f   : > { %3559 = vmatpush3.bf16.msra.mxu0 %v3840_v46  ;;  %v1796_v46 = vpack.c.bf16 %v1780_v40, %v1780_v40 }
 0x940   : > { %3581 = vmatpush3.bf16.msra.mxu1 %v3841_v13  ;;  %3560 = vmatprep.subr.bf16.mxu0 %v3842_v48 }
 0x941   : > { %3582 = vmatprep.subr.bf16.mxu1 %v3843_v52 }
 0x943   : > { %3561 = vmatpush3.bf16.msra.mxu0 %v3844_v54 }
 0x944   : > { %3583 = vmatpush3.bf16.msra.mxu1 %v3845_v11  ;;  %3562 = vmatprep.subr.bf16.mxu0 %v3846_v34 }
 0x945   : > { %3584 = vmatprep.subr.bf16.mxu1 %v3847_v12 }
 0x947   : > { %3563 = vmatpush3.bf16.msra.mxu0 %v3848_v16 }
 0x948   : > { %3585 = vmatpush3.bf16.msra.mxu1 %v3849_v9  ;;  %3592 = vmatprep.subr.bf16.mxu0 %v3850_v56 }
 0x949   : > { %3614 = vmatprep.subr.bf16.mxu1 %v3851_v43 }
 0x94a   : > { %3022 = vmatmul.mubr.bf16.vlgmr.msra.gmra.mxu0 %v1790_v19 }
 0x94b   : > { %3062 = vmatmul.mubr.bf16.vlgmr.msra.gmra.mxu1 %v1792_v60  ;;  %3593 = vmatpush3.bf16.msra.mxu0 %v3852_v17 }
 0x94c   : > { %3101 = vmatprep.mubr.bf16.mxu0 %v1795_v49  ;;  %3615 = vmatpush3.bf16.msra.mxu1 %v3853_v59 }
 0x94d   : > { %3141 = vmatprep.mubr.bf16.mxu1 %v1797_v62  ;;  %3594 = vmatprep.subr.bf16.mxu0 %v3854_v61 }
 0x94e   : > { %3616 = vmatprep.subr.bf16.mxu1 %v3855_v50 }
 0x94f   : > { %3595 = vmatpush3.bf16.msra.mxu0 %v3856_v63 }
 0x950   : > { %3617 = vmatpush3.bf16.msra.mxu1 %v3857_v1  ;;  %3596 = vmatprep.subr.bf16.mxu0 %v3858_v2 }
 0x951   : > { %3618 = vmatprep.subr.bf16.mxu1 %v3859_v8 }
 0x953   : > { %3597 = vmatpush3.bf16.msra.mxu0 %v3860_v3 }
 0x954   : > { %3619 = vmatpush3.bf16.msra.mxu1 %v3861_v4  ;;  %3598 = vmatprep.subr.bf16.mxu0 %v3862_v5 }
 0x955   : > { %3620 = vmatprep.subr.bf16.mxu1 %v3863_v6 }
 0x957   : > { %3599 = vmatpush3.bf16.msra.mxu0 %v3864_v20 }
 0x958   : > { %3621 = vmatpush3.bf16.msra.mxu1 %v3865_v21  ;;  %3600 = vmatprep.subr.bf16.mxu0 %v3866_v22 }
 0x959   : > { %3622 = vmatprep.subr.bf16.mxu1 %v3867_v23 }
 0x95b   : > { %3601 = vmatpush3.bf16.msra.mxu0 %v3868_v24 }
 0x95c   : > { %3623 = vmatpush3.bf16.msra.mxu1 %v3869_v25  ;;  %3602 = vmatprep.subr.bf16.mxu0 %v3870_v26 }
 0x95d   : > { %3624 = vmatprep.subr.bf16.mxu1 %v3871_v27 }
 0x95f   : > { %3603 = vmatpush3.bf16.msra.mxu0 %v3872_v0 }
 0x960   : > { %3625 = vmatpush3.bf16.msra.mxu1 %v3873_v29  ;;  %3604 = vmatprep.subr.bf16.mxu0 %v3874_v31 }
 0x961   : > { %3626 = vmatprep.subr.bf16.mxu1 %v3875_v32 }
 0x963   : > { %3605 = vmatpush3.bf16.msra.mxu0 %v3876_v36 }
 0x964   : > { %3627 = vmatpush3.bf16.msra.mxu1 %v3877_v37  ;;  %3606 = vmatprep.subr.bf16.mxu0 %v3878_v38 }
 0x965   : > { %3628 = vmatprep.subr.bf16.mxu1 %v3879_v30 }
 0x967   : > { %3607 = vmatpush3.bf16.msra.mxu0 %v3880_v39 }
 0x968   : > { %3629 = vmatpush3.bf16.msra.mxu1 %v3881_v28 }
 0x96a   : > { %3102 = vmatmul.mubr.bf16.vlgmr.msra.gmra.mxu0 %v1794_v45 }
 0x96b   : > { %3142 = vmatmul.mubr.bf16.vlgmr.msra.gmra.mxu1 %v1796_v46 }
 0x9ca   : > { %v3476_v47 = vpop.f32.mrf.mxu0  ;;  %v3498_v13 = vpop.f32.mrf.mxu1 }
 0x9cc   : > { %v3477_v48 = vpop.f32.mrf.mxu0  ;;  %v3499_v51 = vpop.f32.mrf.mxu1 }
 0x9cd   : > { %v3478_v52 = vadd.f32 %v3477_v48, %v3476_v47  ;;  %v3500_v14 = vadd.f32 %v3499_v51, %v3498_v13 }
 0x9ce   : > { %v3479_v53 = vpop.f32.mrf.mxu0  ;;  %v3501_v54 = vpop.f32.mrf.mxu1 }
 0x9cf   : > { %v2864_v42 = vadd.f32 %v3478_v52, %v3304_v41 }
 0x9d0   : > { %v3480_v15 = vpop.f32.mrf.mxu0  ;;  %v3502_v11 = vpop.f32.mrf.mxu1 }
 0x9d1   : > { %v2904_v34 = vadd.f32 %v3500_v14, %v2864_v42 }
 0x9ea   : > { %v3520_v10 = vpop.f32.mrf.mxu0  ;;  %v3542_v12 = vpop.f32.mrf.mxu1 }
 0x9ec   : > { %v3521_v35 = vpop.f32.mrf.mxu0  ;;  %v3543_v7 = vpop.f32.mrf.mxu1 }
 0x9ed   : > { %v3522_v61 = vadd.f32 %v3521_v35, %v3520_v10  ;;  %v3544_v50 = vadd.f32 %v3543_v7, %v3542_v12 }
 0x9ee   : > { %v3523_v16 = vpop.f32.mrf.mxu0  ;;  %v3545_v55 = vpop.f32.mrf.mxu1 }
 0x9ef   : > { %v2944_v49 = vadd.f32 %v3522_v61, %v2904_v34 }
 0x9f0   : > { %v3524_v9 = vpop.f32.mrf.mxu0  ;;  %v3546_v56 = vpop.f32.mrf.mxu1 }
 0x9f1   : > { %v2984_v63 = vadd.f32 %v3544_v50, %v2944_v49 }
 0xa0a   : > { %v3564_v57 = vpop.f32.mrf.mxu0 }
 0xa0b   : > { %v3586_v43 = vpop.f32.mrf.mxu1 }
 0xa0c   : > { %v3565_v44 = vpop.f32.mrf.mxu0 }
 0xa0d   : > { %v3587_v58 = vpop.f32.mrf.mxu1  ;;  %v3566_v62 = vadd.f32 %v3565_v44, %v3564_v57 }
 0xa0e   : > { %v3567_v17 = vpop.f32.mrf.mxu0  ;;  %v3588_v8 = vadd.f32 %v3587_v58, %v3586_v43 }
 0xa0f   : > { %v3589_v19 = vpop.f32.mrf.mxu1  ;;  %v3024_v1 = vadd.f32 %v3566_v62, %v2984_v63 }
 0xa10   : > { %v3568_v59 = vpop.f32.mrf.mxu0 }
 0xa11   : > { %v3590_v60 = vpop.f32.mrf.mxu1  ;;  %v3064_v5 = vadd.f32 %v3588_v8, %v3024_v1 }
 0xa2a   : > { %v3608_v2 = vpop.f32.mrf.mxu0 }
 0xa2b   : > { %v3630_v3 = vpop.f32.mrf.mxu1 }
 0xa2c   : > { %v3609_v4 = vpop.f32.mrf.mxu0 }
 0xa2d   : > { %v3610_v6 = vadd.f32 %v3609_v4, %v3608_v2  ;;  %v3631_v20 = vpop.f32.mrf.mxu1 }
 0xa2e   : > { %v3611_v21 = vpop.f32.mrf.mxu0  ;;  %v3632_v23 = vadd.f32 %v3631_v20, %v3630_v3 }
 0xa2f   : > { %v3104_v22 = vadd.f32 %v3610_v6, %v3064_v5  ;;  %v3633_v24 = vpop.f32.mrf.mxu1 }
 0xa30   : > { %v3612_v25 = vpop.f32.mrf.mxu0 }
 0xa31   : > { %v3144_v26 = vadd.f32 %v3632_v23, %v3104_v22  ;;  %v3634_v27 = vpop.f32.mrf.mxu1 }
 0xa33   : > { %v3149_v0 = vadd.f32 %v3144_v26, %v4225_v18 }
 0xa35   : > { %vm3150_vm6 = vcmp.ne.f32.partialorder %v3149_v0, %v3149_v0 }
 0xa36   : > { %v3151_v29 = vsel %vm3150_vm6, 0.0, %v3149_v0 }
 0xa37   : > { %v3433_v31 = vclamps-f32 %v3151_v29, 3.4028235e+38 }
 0xa39   : > { %3154 = vst.msk [vmem:[%s469_s20] sm:$0xff] %vm482_vm0, %v3433_v31 }
 0xa3a   : > { %3915 = shalt.err (!%p3912_p3)
}
 0xa3b   : > { %s3916_s26 = scalar_lea.hbm %s3167_s28, 128  ;;  %s3920_s20 = scalar_lea.hbm %s4887_s14, 256 }
 0xa3c   : > { %p3917_p4 = scmp.ne.s32.totalorder %s3167_s28, %s3916_s26  ;;  %p3921_p9 = scmp.lt.s32.totalorder %s3167_s28, %s4887_s14 }
 0xa3d   : > { %p3922_p10 = scmp.lt.s32.totalorder %s3920_s20, %s3916_s26 }
 0xa3e   : > { %p3918_p7 = pnand %p3917_p4, %p4089_p5 }
 0xa3f   : > { %p3923_p11 = por %p3922_p10, %p3921_p9 }
 0xa40   : > { %p3919_p8 = pneg %p3918_p7 }
 0xa42   : > { %p3924_p12 = pnand %p3923_p11, %p3919_p8 }
 0xa44   : > { %3927 = shalt.err (!%p3924_p12)
}
 0xa45   : > { %3700 = dma.vmem_to_hbm [thread:$0]  (%p4089_p5), %s3170_s21, 128, %s3167_s28, %s3156_s25  }
 0xa46 PF: > { %p3706_p13 = scmp.ge.s32.totalorder %s3962_s16, 2  ;;  %s3181_s3 = sand.u32 1, %s3950_s29  }
 0xa47   : > { %s3182_s18 = scalar_lea.sflag [#allocation3], %s3181_s3 }
 0xa48   : > { %p3703_p0 = pnand %p3706_p13, %p4093_p6 }
 0xa4a   : > { %p3704_p1 = pneg %p3703_p0 }
 0xa4c   : > { %3945 = dma.done.wait (%p3704_p1), %s3182_s18, 128  }
 0xa4d   : > { %3947 = vsyncadd (%p3704_p1), %s3182_s18, 4294967168  ;;  %p24_p2 = scmp.ge.s32.totalorder %s4076_s19, 4   ;;  %s4900_s29 = smov %s3954_s30 }
 0xa4e   : > { %s4901_s30 = smov %s3958_s15  ;;  %s4902_s15 = smov %s4087_s22 }
 0xa4f   : > { %s4903_s16 = smov %s4076_s19  ;;  %26 = sbr.rel (!%p24_p2) target bundleno = 9 (0x9), region = 114 }
 0xa54   :  { %3187 = vsyncpa [#allocation3], 1 }
 0xa55   :  { %3189 = vsyncpa [#allocation3 + $0x1], 1 }

// kernel: tpu_custom_call.1
= control target key start
LH: loop header
LB: loop body
LE: loop exit
PB: predicated region body
PF: predicated region fallthrough
CT: control target
= control target key end

     0   :  { %s4865_s0 = inlined_call_operand.vmem [shape: f32[16,32], index: 0, kind: input, shape index: {}]   ;;  %s4866_s1 = inlined_call_operand.vmem [shape: f32[2,1,8], index: 1, kind: input, shape index: {}]   ;;  %s4867_s2 = inlined_call_operand.vmem [shape: bf16[32,96], index: 2, kind: input, shape index: {}]   ;;  %s4868_s3 = inlined_call_operand.vmem [shape: f32[1,96], index: 3, kind: input, shape index: {}]   ;;  %s4869_s4 = inlined_call_operand.vmem [shape: bf16[32,32], index: 4, kind: input, shape index: {}]   ;;  %s4870_s5 = inlined_call_operand.vmem [shape: f32[1,32], index: 5, kind: input, shape index: {}]   ;;  %s4871_s6 = inlined_call_operand.vmem [shape: f32[1,32], index: 6, kind: input, shape index: {}]   ;;  %s4872_s7 = inlined_call_operand.vmem [shape: f32[1,32], index: 7, kind: input, shape index: {}]   ;;  %s4873_s8 = inlined_call_operand.vmem [shape: f32[1,32], index: 8, kind: input, shape index: {}]   ;;  %s4874_s9 = inlined_call_operand.vmem [shape: f32[1,32], index: 9, kind: input, shape index: {}]   ;;  %s4875_s10 = inlined_call_operand.vmem [shape: bf16[32,2048], index: 10, kind: input, shape index: {}]   ;;  %s4876_s11 = inlined_call_operand.vmem [shape: f32[1,2048], index: 11, kind: input, shape index: {}]   ;;  %s4877_s12 = inlined_call_operand.vmem [shape: bf16[2048,32], index: 12, kind: input, shape index: {}]   ;;  %s4878_s13 = inlined_call_operand.vmem [shape: f32[1,32], index: 13, kind: input, shape index: {}]   ;;  %s4879_s14 = inlined_call_operand.hbm [shape: f32[16,32], index: 14, kind: output, shape index: {}]  }
   0x1   :  { %4880 = sst [smem:[#allocation5_spill]] %s4865_s0 }
   0x2   :  { %4881 = sst [smem:[#allocation6_spill]] %s4866_s1 }
   0x3   :  { %4882 = sst [smem:[#allocation7_spill]] %s4867_s2 }
   0x4   :  { %4883 = sst [smem:[#allocation8_spill]] %s4868_s3 }
   0x5   :  { %4884 = sst [smem:[#allocation9_spill]] %s4869_s4 }
   0x6   :  { %19 = vsyncpa [#allocation3], 0 }
   0x7   :  { %21 = vsyncpa [#allocation3 + $0x1], 0  ;;  %s4053_s29 = smov 0   ;;  %s4055_s30 = smov 0  }
   0x8   :  { %s4057_s15 = smov 0   ;;  %s4059_s16 = smov 0  }
   0x9 LB: > { %s4074_s17 = sadd.s32 4294967295, %s3958_s16   ;;  %s3227_s18 = sadd.s32 4294967294, %s3958_s16   ;;  %s3958_s16 = sphi %s4059_s16, %s4895_s16   ;;  %s3954_s15 = sphi %s4057_s15, %s4894_s15   ;;  %s3950_s30 = sphi %s4055_s30, %s4893_s30   ;;  %s3946_s29 = sphi %s4053_s29, %s4892_s29  }
   0xa   : > { %s4078_s19 = sadd.s32 1, %s3958_s16   ;;  %s338_s20 = sadd.s32 1, %s3954_s15 }
   0xb   : > { %s335_s21 = ssub.s32 %s3958_s16, %s4078_s19  ;;  %p348_p0 = scmp.ne.s32.totalorder %s3954_s15, %s3950_s30 }
   0xc   : > { %p336_p1 = scmp.eq.s32.totalorder %s335_s21, 0  ;;  %p349_p2 = scmp.eq.s32.totalorder %s4074_s17, 1 }
   0xd   : > { %p354_p3 = scmp.ne.s32.totalorder %s3950_s30, %s3946_s29  ;;  %p355_p4 = scmp.eq.s32.totalorder %s3227_s18, 1 }
   0xe   : > { %s4089_s22 = scalar_select %p336_p1, %s3954_s15, %s338_s20  }
   0xf   : > { %p4091_p5 = por %p349_p2, %p348_p0  ;;  %p4095_p6 = por %p355_p4, %p354_p3 }
  0x10   : > { %p3230_p7 = scmp.ge.s32.totalorder %s3958_s16, 1  ;;  %p422_p8 = scmp.lt.s32.totalorder %s3958_s16, 3 }
  0x12   : > { %p423_p9 = pnand %p3230_p7, %p422_p8 }
  0x13   : > { %p470_p10 = scmp.lt.s32.totalorder (!%p423_p9), %s4074_s17, 1  ;;  %s4887_s0 = sld [smem:[#allocation5_spill]] (!%p423_p9) }
  0x14   : > { %426 = sbr.rel (%p423_p9) target bundleno = 2568 (0xa08), region = 76  ;;  %s4888_s2 = sld [smem:[#allocation7_spill]] (!%p423_p9) }
  0x15   : > { %s4889_s3 = sld [smem:[#allocation8_spill]] (!%p423_p9)  ;;  %s3962_s28 = smov (!%p423_p9), 120  }
  0x16   : > { %s3964_s20 = smov (!%p423_p9), 88   ;;  %s3965_s21 = smov (!%p423_p9), 80  }
  0x17   : > { %s3967_s27 = smov (!%p423_p9), 72   ;;  %s4890_s1 = sld [smem:[#allocation6_spill]] (!%p423_p9) }
  0x18   : > { %s4891_s4 = sld [smem:[#allocation9_spill]] (!%p423_p9) }
  0x19   : > { %s4103_s25 = scalar_select %p470_p10, %s4074_s17, 1  ;;  %vm482_vm0 = vcmask 261120   ;;  %v3960_v8 = vmov 0.0   ;;  %vm3961_vm1 = vmmov 0   ;;  %v3233_v14 = vld [vmem:[%s4871_s6] ss:$0 sm:$0xff] }
  0x1a   : > { %v3746_v7 = vld [vmem:[%s4888_s2 + $0x8] sm:$0xff]   ;;  %3626 = vmatprep.subr.bf16.mxu0 %v3960_v8  ;;  %3630 = vmatprep.mubr.msk.bf16.mxu0 %vm3961_vm1, %v3960_v8  ;;  %v3747_v9 = vld [vmem:[%s4888_s2] sm:$0xff]   ;;  %vm582_vm2 = vcmask 64512   ;;  %vm654_vm3 = vcmask 1043456   ;;  %vm1047_vm4 = vcmask 130048   ;;  %vm1049_vm5 = vcmask 195584  }
  0x1b   : > { %s3232_s26 = sshll.u32 %s4103_s25, 3  ;;  %3627 = vmatpush3.bf16.msra.mxu0 %v3746_v7  ;;  %3634 = vmatprep.subr.bf16.mxu1 %v3960_v8  ;;  %v3234_v16 = vld [vmem:[%s4872_s7] ss:$0 sm:$0xff]  ;;  %s3425_s2 = sshll.u32 %s4074_s17, 7 }
  0x1c   : > { %s473_s18 = scalar_lea.vmem %s4887_s0, %s3232_s26  ;;  %3628 = vmatprep.subr.bf16.mxu0 %v3960_v8  ;;  %3636 = vmatprep.mubr.msk.bf16.mxu1 %vm3961_vm1, %v3960_v8  ;;  %v3235_v20 = vld [vmem:[%s4889_s3] ss:$0 sm:$0xff]  ;;  %s3966_s26 = smov 112  }
  0x1d   : > { %v4109_v0 = vld [vmem:[%s473_s18] sm:$0xff]  ;;  %s3963_s18 = smov 96   ;;  %s3968_s0 = smov 104  }
  0x1e   : > { %v483_v1 = vsel %vm482_vm0, %v4109_v0, 0.0  ;;  %s3977_s3 = smov [#allocation2]  }
  0x1f   : > { %484 = vadd.xlane.f32.xlu0 %v483_v1  ;;  %3629 = vmatpush3.bf16.msra.mxu0 %v3747_v9  ;;  %s3902_s17 = sshll.u32 %s3977_s3, 4  ;;  %s3903_s17 = int_to_ptr.vmem [resolvable:$false] %s3902_s17 }
  0x20   : > { %3640 = vmatprep.subr.bf16.mxu0 %v3960_v8 }
  0xa8   : > { %v485_v2 = vpop.xlane.xlu0 %484 }
  0xa9   : > { %v487_v3 = vmul.f32 0.03125, %v485_v2 }
  0xab   : > { %v488_v4 = vsub.f32 %v4109_v0, %v487_v3 }
  0xad   : > { %v489_v5 = vmul.f32 %v488_v4, %v488_v4 }
  0xaf   : > { %v490_v6 = vsel %vm482_vm0, %v489_v5, 0.0 }
  0xb0   : > { %491 = vadd.xlane.f32.xlu0 %v490_v6 }
 0x139   : > { %v492_v10 = vpop.xlane.xlu0 %491 }
 0x13a   : > { %v493_v11 = vmul.f32 0.03125, %v492_v10 }
 0x13c   : > { %v494_v12 = vadd.f32 1e-05, %v493_v11 }
 0x13e   : > { %3878 = vrsqrt.f32 %v494_v12 }
 0x14b   : > { %v3879_v13 = vpop.eup %3878 }
 0x14c   : > { %v496_v15 = vmul.f32 %v3879_v13, %v488_v4 }
 0x14e   : > { %v503_v17 = vmul.f32 %v3233_v14, %v496_v15 }
 0x150   : > { %v510_v18 = vadd.f32 %v3234_v16, %v503_v17 }
 0x152   : > { %v511_v19 = vpack.c.bf16 %v510_v18, %v510_v18 }
 0x154   : > { %3631 = vmatmul.mubr.msk.bf16.vlgmr.msra.gmra.mxu0 %vm482_vm0, %v511_v19 }
 0x155   : > { %3642 = vmatprep.mubr.msk.bf16.mxu0 %vm3961_vm1, %v3960_v8 }
 0x214   : > { %v572_v21 = vpop.f32.mrf.mxu0 }
 0x215   : > { %v573_v22 = vadd.f32 %v3235_v20, %v572_v21 }
 0x216   : > { %v3632_v23 = vpop.f32.mrf.mxu0 }
 0x217   : > { %v4141_v24 = vpack.c.bf16 %v573_v22, %v573_v22 }
 0x218   : > { %v575_v25 = vpop.f32.mrf.mxu0 }
 0x219   : > { %698 = vrot.lane.b32.xlu0 %v4141_v24, %s3962_s28  ;;  %580 = vrot.lane.b32.xlu1 %v4141_v24, %s3963_s18  ;;  %s476_s18 = scalar_lea.vmem %s4890_s1, %s4103_s25  ;;  %s3969_s25 = smov 64  }
 0x21a   : > { %v3633_v26 = vpop.f32.mrf.mxu0  ;;  %v3240_v39 = vld [vmem:[%s476_s18] ss:$0 sm:$0xff] }
 0x21d   : > { %700 = vrot.lane.b32.xlu1 %v4141_v24, %s3964_s20  ;;  %s3970_s20 = smov 56  }
 0x221   : > { %812 = vrot.lane.b32.xlu1 %v4141_v24, %s3965_s21  ;;  %s3971_s21 = smov 48  }
 0x225   : > { %810 = vrot.lane.b32.xlu1 %v4141_v24, %s3966_s26  ;;  %s3972_s26 = smov 40  }
 0x229   : > { %924 = vrot.lane.b32.xlu1 %v4141_v24, %s3967_s27  ;;  %s3973_s27 = smov 8  }
 0x22d   : > { %922 = vrot.lane.b32.xlu1 %v4141_v24, %s3968_s0 }
 0x28b   : > { %v581_v27 = vpop.permute.xlu1 %580  ;;  %v699_v32 = vpop.permute.xlu0 %698 }
 0x28c   : > { %v587_v28 = vsel %vm582_vm2, %v581_v27, 0 }
 0x28d   : > { %3635 = vmatpush3.bf16.xpose.msra.mxu1 %v587_v28 }
 0x28e   : > { %3646 = vmatprep.subr.bf16.mxu1 %v3960_v8 }
 0x28f   : > { %v701_v29 = vpop.permute.xlu1 %700 }
 0x290   : > { %v706_v30 = vsel %vm582_vm2, %v701_v29, 0 }
 0x293   : > { %v813_v31 = vpop.permute.xlu1 %812 }
 0x294   : > { %3637 = vmatmul.mubr.msk.bf16.vlgmr.msra.gmra.mxu1 %vm582_vm2, %v4141_v24  ;;  %v818_v34 = vsel %vm582_vm2, %v813_v31, 0 }
 0x295   : > { %3647 = vmatpush3.bf16.xpose.msra.mxu1 %v706_v30  ;;  %3648 = vmatprep.mubr.msk.bf16.mxu1 %vm3961_vm1, %v3960_v8 }
 0x296   : > { %3658 = vmatprep.subr.bf16.mxu1 %v3960_v8 }
 0x297   : > { %v811_v33 = vpop.permute.xlu1 %810 }
 0x29b   : > { %v925_v35 = vpop.permute.xlu1 %924 }
 0x29c   : > { %3649 = vmatmul.mubr.msk.bf16.vlgmr.msra.gmra.mxu1 %vm582_vm2, %v699_v32  ;;  %v930_v36 = vsel %vm582_vm2, %v925_v35, 0 }
 0x29d   : > { %3659 = vmatpush3.bf16.xpose.msra.mxu1 %v818_v34  ;;  %3660 = vmatprep.mubr.msk.bf16.mxu1 %vm3961_vm1, %v3960_v8 }
 0x29e   : > { %3670 = vmatprep.subr.bf16.mxu1 %v3960_v8 }
 0x29f   : > { %v923_v37 = vpop.permute.xlu1 %922 }
 0x2a4   : > { %3661 = vmatmul.mubr.msk.bf16.vlgmr.msra.gmra.mxu1 %vm582_vm2, %v811_v33 }
 0x2a5   : > { %3671 = vmatpush3.bf16.xpose.msra.mxu1 %v930_v36  ;;  %3672 = vmatprep.mubr.msk.bf16.mxu1 %vm3961_vm1, %v3960_v8 }
 0x2a6   : > { %3682 = vmatprep.subr.bf16.mxu1 %v3960_v8 }
 0x2ac   : > { %3673 = vmatmul.mubr.msk.bf16.vlgmr.msra.gmra.mxu1 %vm582_vm2, %v923_v37 }
 0x2ad   : > { %3686 = vmatprep.mubr.msk.bf16.mxu1 %vm3961_vm1, %v3960_v8 }
 0x354   : > { %v623_v38 = vpop.f32.mrf.mxu1 }
 0x355   : > { %v629_v40 = vmul.f32 0.35355338, %v623_v38 }
 0x356   : > { %v3638_v41 = vpop.f32.mrf.mxu1 }
 0x357   : > { %v636_v42 = vadd.f32 %v3240_v39, %v629_v40 }
 0x358   : > { %v626_v43 = vpop.f32.mrf.mxu1 }
 0x359   : > { %v637_v44 = vsel %vm582_vm2, %v636_v42, -inf }
 0x35a   : > { %638 = vmax.xlane.f32.xlu1 %v637_v44  ;;  %v3639_v45 = vpop.f32.mrf.mxu1 }
 0x35c   : > { %v742_v46 = vpop.f32.mrf.mxu1 }
 0x35d   : > { %v748_v47 = vmul.f32 0.35355338, %v742_v46 }
 0x35e   : > { %v3650_v48 = vpop.f32.mrf.mxu1 }
 0x35f   : > { %v749_v49 = vadd.f32 %v3240_v39, %v748_v47 }
 0x360   : > { %v745_v50 = vpop.f32.mrf.mxu1 }
 0x361   : > { %v750_v51 = vsel %vm582_vm2, %v749_v49, -inf }
 0x362   : > { %751 = vmax.xlane.f32.xlu0 %v750_v51  ;;  %v3651_v52 = vpop.f32.mrf.mxu1 }
 0x364   : > { %v854_v53 = vpop.f32.mrf.mxu1 }
 0x365   : > { %v860_v54 = vmul.f32 0.35355338, %v854_v53 }
 0x366   : > { %v3662_v55 = vpop.f32.mrf.mxu1 }
 0x367   : > { %v861_v56 = vadd.f32 %v3240_v39, %v860_v54 }
 0x368   : > { %v857_v57 = vpop.f32.mrf.mxu1 }
 0x369   : > { %v862_v58 = vsel %vm582_vm2, %v861_v56, -inf  ;;  %v3748_v57 = vld [vmem:[%s4891_s4 + $0x8] sm:$0xff]  }
 0x36a   : > { %863 = vmax.xlane.f32.xlu1 %v862_v58  ;;  %v3663_v59 = vpop.f32.mrf.mxu1  ;;  %3683 = vmatpush3.bf16.msra.mxu1 %v3748_v57  ;;  %v3749_v58 = vld [vmem:[%s4891_s4] sm:$0xff]   ;;  %v1159_v57 = vld [vmem:[%s4875_s10 + $0x50] sm:$0xff] }
 0x36b   : > { %3684 = vmatprep.subr.bf16.mxu1 %v3960_v8 }
 0x36c   : > { %v966_v60 = vpop.f32.mrf.mxu1 }
 0x36d   : > { %v972_v61 = vmul.f32 0.35355338, %v966_v60 }
 0x36e   : > { %v3674_v62 = vpop.f32.mrf.mxu1  ;;  %3685 = vmatpush3.bf16.msra.mxu1 %v3749_v58  ;;  %v1152_v58 = vld [vmem:[%s4875_s10 + $0x18] sm:$0xff] }
 0x36f   : > { %v973_v63 = vadd.f32 %v3240_v39, %v972_v61 }
 0x370   : > { %v969_v1 = vpop.f32.mrf.mxu1 }
 0x371   : > { %v974_v2 = vsel %vm582_vm2, %v973_v63, -inf }
 0x372   : > { %975 = vmax.xlane.f32.xlu0 %v974_v2  ;;  %v3675_v3 = vpop.f32.mrf.mxu1 }
 0x3e3   : > { %v639_v4 = vpop.xlane.xlu1 %638 }
 0x3e4   : > { %v640_v5 = vsub.f32 %v636_v42, %v639_v4 }
 0x3e6   : > { %v641_v6 = vmul.f32 1.442695, %v640_v5 }
 0x3e8   : > { %3880 = vpow2.f32 %v641_v6 }
 0x3eb   : > { %v752_v7 = vpop.xlane.xlu0 %751 }
 0x3ec   : > { %v753_v9 = vsub.f32 %v749_v49, %v752_v7 }
 0x3ee   : > { %v754_v10 = vmul.f32 1.442695, %v753_v9 }
 0x3f0   : > { %3882 = vpow2.f32 %v754_v10 }
 0x3f3   : > { %v864_v20 = vpop.xlane.xlu1 %863 }
 0x3f4   : > { %v865_v21 = vsub.f32 %v861_v56, %v864_v20 }
 0x3f5   : > { %v3881_v11 = vpop.eup %3880 }
 0x3f6   : > { %v643_v12 = vsel %vm582_vm2, %v3881_v11, 0.0  ;;  %v866_v22 = vmul.f32 1.442695, %v865_v21 }
 0x3f7   : > { %644 = vadd.xlane.f32.xlu1 %v643_v12 }
 0x3fb   : > { %v976_v13 = vpop.xlane.xlu0 %975 }
 0x3fc   : > { %v977_v14 = vsub.f32 %v973_v63, %v976_v13 }
 0x3fd   : > { %v3883_v15 = vpop.eup %3882 }
 0x3fe   : > { %v978_v16 = vmul.f32 1.442695, %v977_v14  ;;  %v756_v17 = vsel %vm582_vm2, %v3883_v15, 0.0 }
 0x3ff   : > { %757 = vadd.xlane.f32.xlu0 %v756_v17 }
 0x400   : > { %3884 = vpow2.f32 %v978_v16 }
 0x401   : > { %3886 = vpow2.f32 %v866_v22 }
 0x408   : > { %649 = vrot.lane.b32.xlu1 %v4141_v24, %s3969_s25  ;;  %s3157_s25 = scalar_lea.hbm %s4879_s14, %s3425_s2 }
 0x40d   : > { %v3885_v18 = vpop.eup %3884 }
 0x40e   : > { %v980_v19 = vsel %vm582_vm2, %v3885_v18, 0.0  ;;  %v3887_v23 = vpop.eup %3886 }
 0x40f   : > { %981 = vadd.xlane.f32.xlu0 %v980_v19  ;;  %v868_v25 = vsel %vm582_vm2, %v3887_v23, 0.0 }
 0x425   : > { %762 = vrot.lane.b32.xlu0 %v4141_v24, %s3970_s20  ;;  %s3974_s20 = smov 16  }
 0x42c   : > { %869 = vadd.xlane.f32.xlu1 %v868_v25  ;;  %v1165_v25 = vld [vmem:[%s4875_s10 + $0x80] sm:$0xff] }
 0x43d   : > { %874 = vrot.lane.b32.xlu1 %v4141_v24, %s3971_s21  ;;  %s3975_s21 = smov 24  }
 0x441   : > { %986 = vrot.lane.b32.xlu1 %v4141_v24, %s3972_s26  ;;  %s467_s26 = sand.u32 1, %s3950_s30  }
 0x442   : > { %s3231_s1 = sshll.u32 %s467_s26, 3 }
 0x480   : > { %v645_v26 = vpop.xlane.xlu1 %644 }
 0x481   : > { %3888 = vrcp.f32 %v645_v26  ;;  %v1166_v26 = vld [vmem:[%s4875_s10 + $0x88] sm:$0xff] }
 0x484   : > { %v650_v27 = vpop.permute.xlu1 %649 }
 0x485   : > { %v656_v28 = vsel %vm654_vm3, %v650_v27, 0 }
 0x486   : > { %3641 = vmatpush3.bf16.msra.mxu0 %v656_v28  ;;  %v1174_v28 = vld [vmem:[%s4875_s10 + $0xc8] sm:$0xff] }
 0x487   : > { %3652 = vmatprep.subr.bf16.mxu0 %v3960_v8 }
 0x488   : > { %v758_v29 = vpop.xlane.xlu0 %757 }
 0x489   : > { %3890 = vrcp.f32 %v758_v29 }
 0x48e   : > { %v3889_v30 = vpop.eup %3888 }
 0x48f   : > { %v647_v31 = vmul.f32 %v3889_v30, %v3881_v11  ;;  %v3248_v11 = vld [vmem:[%s4870_s5] ss:$0 sm:$0xff]  ;;  %v3272_v30 = vcombine.low %v1166_v26, %v1174_v28 }
 0x491   : > { %v648_v32 = vpack.c.bf16 %v647_v31, %v647_v31  ;;  %v3273_v31 = vcombine.high %v1166_v26, %v1174_v28  ;;  %v1155_v26 = vld [vmem:[%s4875_s10 + $0x30] sm:$0xff]  ;;  %v1156_v28 = vld [vmem:[%s4875_s10 + $0x38] sm:$0xff] }
 0x493   : > { %3643 = vmatmul.mubr.msk.bf16.vlgmr.msra.gmra.mxu0 %vm582_vm2, %v648_v32  ;;  %1481 = vmatprep.subr.bf16.mxu1 %v3273_v31  ;;  %v1149_v32 = vld [vmem:[%s4875_s10] sm:$0xff] }
 0x494   : > { %3654 = vmatprep.mubr.msk.bf16.mxu0 %vm3961_vm1, %v3960_v8 }
 0x496   : > { %v3891_v24 = vpop.eup %3890 }
 0x497   : > { %v760_v34 = vmul.f32 %v3891_v24, %v3883_v15  ;;  %v1157_v24 = vld [vmem:[%s4875_s10 + $0x40] sm:$0xff] }
 0x498   : > { %v982_v33 = vpop.xlane.xlu0 %981 }
 0x499   : > { %v761_v37 = vpack.c.bf16 %v760_v34, %v760_v34  ;;  %v3255_v34 = vcombine.high %v1149_v32, %v1157_v24 }
 0x49c   : > { %v763_v35 = vpop.permute.xlu0 %762 }
 0x49d   : > { %v768_v36 = vsel %vm654_vm3, %v763_v35, 0  ;;  %v1158_v35 = vld [vmem:[%s4875_s10 + $0x48] sm:$0xff] }
 0x49e   : > { %3653 = vmatpush3.bf16.msra.mxu0 %v768_v36  ;;  %v3254_v36 = vcombine.low %v1149_v32, %v1157_v24 }
 0x49f   : > { %3664 = vmatprep.subr.bf16.mxu0 %v3960_v8 }
 0x4a1   : > { %3655 = vmatmul.mubr.msk.bf16.vlgmr.msra.gmra.mxu0 %vm582_vm2, %v761_v37 }
 0x4a2   : > { %3666 = vmatprep.mubr.msk.bf16.mxu0 %vm3961_vm1, %v3960_v8 }
 0x4b5   : > { %v870_v38 = vpop.xlane.xlu1 %869 }
 0x4b6   : > { %3892 = vrcp.f32 %v870_v38 }
 0x4b7   : > { %3894 = vrcp.f32 %v982_v33  ;;  %v1150_v33 = vld [vmem:[%s4875_s10 + $0x8] sm:$0xff] }
 0x4b8   : > { %v3256_v37 = vcombine.low %v1150_v33, %v1158_v35  ;;  %v3257_v38 = vcombine.high %v1150_v33, %v1158_v35  ;;  %v3750_v35 = vld [vmem:[%s4877_s12 + $0x78] sm:$0xff]  }
 0x4b9   : > { %v875_v39 = vpop.permute.xlu1 %874 }
 0x4ba   : > { %v880_v40 = vsel %vm654_vm3, %v875_v39, 0  ;;  %v1167_v39 = vld [vmem:[%s4875_s10 + $0x90] sm:$0xff] }
 0x4bb   : > { %3665 = vmatpush3.bf16.msra.mxu0 %v880_v40  ;;  %v1175_v40 = vld [vmem:[%s4875_s10 + $0xd0] sm:$0xff] }
 0x4bc   : > { %3676 = vmatprep.subr.bf16.mxu0 %v3960_v8 }
 0x4bd   : > { %v987_v43 = vpop.permute.xlu1 %986 }
 0x4be   : > { %v992_v46 = vsel %vm654_vm3, %v987_v43, 0  ;;  %v3275_v43 = vcombine.high %v1167_v39, %v1175_v40 }
 0x4c3   : > { %v3893_v41 = vpop.eup %3892 }
 0x4c4   : > { %v872_v42 = vmul.f32 %v3893_v41, %v3887_v23  ;;  %v3895_v45 = vpop.eup %3894  ;;  %v1168_v41 = vld [vmem:[%s4875_s10 + $0x98] sm:$0xff] }
 0x4c5   : > { %v984_v47 = vmul.f32 %v3895_v45, %v3885_v18  ;;  %v3274_v45 = vcombine.low %v1167_v39, %v1175_v40  ;;  %v3754_v39 = vld [vmem:[%s4877_s12 + $0x70] sm:$0xff]  }
 0x4c6   : > { %v873_v44 = vpack.c.bf16 %v872_v42, %v872_v42  ;;  %v3976_v42 = vmov 0   ;;  %v3755_v40 = vld [vmem:[%s4877_s12 + $0xf0] sm:$0xff]  }
 0x4c7   : > { %v985_v48 = vpack.c.bf16 %v984_v47, %v984_v47 }
 0x4c8   : > { %3667 = vmatmul.mubr.msk.bf16.vlgmr.msra.gmra.mxu0 %vm582_vm2, %v873_v44  ;;  %v1176_v44 = vld [vmem:[%s4875_s10 + $0xd8] sm:$0xff] }
 0x4c9   : > { %3677 = vmatpush3.bf16.msra.mxu0 %v992_v46  ;;  %3678 = vmatprep.mubr.msk.bf16.mxu0 %vm3961_vm1, %v3960_v8  ;;  %v3276_v46 = vcombine.low %v1168_v41, %v1176_v44  ;;  %v3277_v47 = vcombine.high %v1168_v41, %v1176_v44  ;;  %v3756_v41 = vld [vmem:[%s4877_s12 + $0x30] sm:$0xff]   ;;  %v3759_v44 = vld [vmem:[%s4877_s12 + $0xe8] sm:$0xff]  }
 0x4d0   : > { %3679 = vmatmul.mubr.msk.bf16.vlgmr.msra.gmra.mxu0 %vm582_vm2, %v985_v48 }
 0x4d1   : > { %1460 = vmatprep.mubr.bf16.mxu0 %v3976_v42 }
 0x553   : > { %v692_v49 = vpop.f32.mrf.mxu0 }
 0x555   : > { %v3644_v50 = vpop.f32.mrf.mxu0 }
 0x557   : > { %v695_v51 = vpop.f32.mrf.mxu0 }
 0x559   : > { %v3645_v52 = vpop.f32.mrf.mxu0 }
 0x55a   : > { %v3252_v52 = vld [vmem:[%s4873_s8] ss:$0 sm:$0xff] }
 0x561   : > { %v804_v53 = vpop.f32.mrf.mxu0 }
 0x562   : > { %1035 = vrot.lane.b32.xlu0 %v804_v53, %s3973_s27  ;;  %s469_s27 = scalar_lea.vmem [#allocation2], %s3231_s1  ;;  %s3904_s1 = scalar_lea.vmem %s3903_s17, 256 }
 0x563   : > { %v3656_v54 = vpop.f32.mrf.mxu0  ;;  %s3159_s0 = sshll.u32 %s469_s27, 4  ;;  %s3160_s0 = int_to_ptr.vmem [resolvable:$true] %s3159_s0 }
 0x564   : > { %v3253_v54 = vld [vmem:[%s4874_s9] ss:$0 sm:$0xff]  ;;  %p3905_p0 = scmp.lt.s32.totalorder %s3160_s0, %s3903_s17 }
 0x565   : > { %v807_v55 = vpop.f32.mrf.mxu0 }
 0x567   : > { %v3657_v56 = vpop.f32.mrf.mxu0 }
 0x568   : > { %v1151_v56 = vld [vmem:[%s4875_s10 + $0x10] sm:$0xff] }
 0x588   : > { %v916_v59 = vpop.f32.mrf.mxu0 }
 0x589   : > { %1039 = vrot.lane.b32.xlu1 %v916_v59, %s3974_s20  ;;  %v1160_v59 = vld [vmem:[%s4875_s10 + $0x58] sm:$0xff]  ;;  %s3146_s20 = scalar_lea.sflag [#allocation3], %s467_s26 }
 0x58a   : > { %v3668_v60 = vpop.f32.mrf.mxu0 }
 0x58c   : > { %v919_v61 = vpop.f32.mrf.mxu0 }
 0x58e   : > { %v3669_v62 = vpop.f32.mrf.mxu0 }
 0x58f   : > { %v3259_v62 = vcombine.high %v1151_v56, %v1159_v57 }
 0x590   : > { %v1028_v63 = vpop.f32.mrf.mxu0 }
 0x591   : > { %1043 = vrot.lane.b32.xlu0 %v1028_v63, %s3975_s21  ;;  %v3261_v63 = vcombine.high %v1152_v58, %v1160_v59  ;;  %s3898_s21 = scalar_lea.vmem %s3160_s0, 128 }
 0x592   : > { %v3680_v1 = vpop.f32.mrf.mxu0  ;;  %p3899_p11 = scmp.ne.s32.totalorder %s3160_s0, %s3898_s21  ;;  %p3906_p1 = scmp.lt.s32.totalorder %s3904_s1, %s3898_s21 }
 0x593   : > { %v1169_v1 = vld [vmem:[%s4875_s10 + $0xa0] sm:$0xff] }
 0x594   : > { %v1031_v2 = vpop.f32.mrf.mxu0  ;;  %p3900_p12 = pnand %p3899_p11, %p4091_p5  ;;  %p3907_p2 = por %p3906_p1, %p3905_p0 }
 0x595   : > { %v1177_v2 = vld [vmem:[%s4875_s10 + $0xe0] sm:$0xff] }
 0x596   : > { %v3681_v3 = vpop.f32.mrf.mxu0  ;;  %p3901_p13 = pneg %p3900_p12 }
 0x597   : > { %v1170_v3 = vld [vmem:[%s4875_s10 + $0xa8] sm:$0xff] }
 0x598   : > { %p3908_p3 = pnand %p3907_p2, %p3901_p13 }
 0x5d4   : > { %v1036_v4 = vpop.permute.xlu0 %1035 }
 0x5d5   : > { %v1046_v6 = vsel %vm582_vm2, %v692_v49, %v1036_v4  ;;  %v1178_v4 = vld [vmem:[%s4875_s10 + $0xe8] sm:$0xff] }
 0x5fb   : > { %v1040_v5 = vpop.permute.xlu1 %1039 }
 0x5fc   : > { %v1048_v8 = vsel %vm1047_vm4, %v1046_v6, %v1040_v5  ;;  %v3258_v5 = vcombine.low %v1151_v56, %v1159_v57  ;;  %v3260_v6 = vcombine.low %v1152_v58, %v1160_v59  ;;  %v3771_v56 = vld [vmem:[%s4877_s12 + $0xd0] sm:$0xff]   ;;  %v3774_v59 = vld [vmem:[%s4877_s12 + $0x48] sm:$0xff]  }
 0x5fd   : > { %v3772_v57 = vld [vmem:[%s4877_s12 + $0x10] sm:$0xff]  }
 0x5fe   : > { %v3773_v58 = vld [vmem:[%s4877_s12 + $0x90] sm:$0xff]  }
 0x603   : > { %v1044_v7 = vpop.permute.xlu0 %1043 }
 0x604   : > { %v1050_v9 = vsel %vm1049_vm5, %v1048_v8, %v1044_v7  ;;  %v3279_v8 = vcombine.high %v1169_v1, %v1177_v2  ;;  %v3281_v7 = vcombine.high %v1170_v3, %v1178_v4 }
 0x605   : > { %v1051_v10 = vpack.c.bf16 %v1050_v9, %v1050_v9  ;;  %v1153_v9 = vld [vmem:[%s4875_s10 + $0x20] sm:$0xff] }
 0x607   : > { %3687 = vmatmul.mubr.msk.bf16.vlgmr.msra.gmra.mxu1 %vm482_vm0, %v1051_v10  ;;  %v1161_v10 = vld [vmem:[%s4875_s10 + $0x60] sm:$0xff] }
 0x608   : > { %1482 = vmatpush1.bf16.msra.mxu1 %v3272_v30  ;;  %1501 = vmatprep.mubr.bf16.mxu1 %v3976_v42 }
 0x609   : > { %1483 = vmatprep.subr.bf16.mxu1 %v3257_v38  ;;  %v3753_v38 = vld [vmem:[%s4877_s12 + $0xb8] sm:$0xff]  }
 0x60c   : > { %1484 = vmatpush1.bf16.msra.mxu1 %v3256_v37  ;;  %v3752_v37 = vld [vmem:[%s4877_s12 + $0x38] sm:$0xff]  }
 0x60d   : > { %1563 = vmatprep.subr.bf16.mxu1 %v3277_v47  ;;  %v3762_v47 = vld [vmem:[%s4877_s12 + $0x60] sm:$0xff]  }
 0x6c7   : > { %v1112_v12 = vpop.f32.mrf.mxu1 }
 0x6c8   : > { %v1113_v13 = vadd.f32 %v3248_v11, %v1112_v12  ;;  %v1154_v11 = vld [vmem:[%s4875_s10 + $0x28] sm:$0xff] }
 0x6c9   : > { %v3688_v14 = vpop.f32.mrf.mxu1  ;;  %v1162_v12 = vld [vmem:[%s4875_s10 + $0x68] sm:$0xff] }
 0x6ca   : > { %v4217_v15 = vadd.f32 %v1113_v13, %v4109_v0  ;;  %v1173_v0 = vld [vmem:[%s4875_s10 + $0xc0] sm:$0xff]  ;;  %v3278_v13 = vcombine.low %v1169_v1, %v1177_v2  ;;  %v3280_v14 = vcombine.low %v1170_v3, %v1178_v4  ;;  %v3782_v4 = vld [vmem:[%s4877_s12 + $0x178] sm:$0xff]  }
 0x6cb   : > { %v1115_v16 = vpop.f32.mrf.mxu1  ;;  %v3271_v27 = vcombine.high %v1165_v25, %v1173_v0  ;;  %v3270_v29 = vcombine.low %v1165_v25, %v1173_v0  ;;  %v3779_v1 = vld [vmem:[%s4877_s12 + $0xc0] sm:$0xff]  }
 0x6cc   : > { %v1121_v17 = vsel %vm482_vm0, %v4217_v15, 0.0  ;;  %v3263_v16 = vcombine.high %v1153_v9, %v1161_v10  ;;  %v3780_v2 = vld [vmem:[%s4877_s12] sm:$0xff]  }
 0x6cd   : > { %1122 = vadd.xlane.f32.xlu1 %v1121_v17  ;;  %v3689_v18 = vpop.f32.mrf.mxu1  ;;  %1440 = vmatprep.subr.bf16.mxu0 %v3271_v27  ;;  %v3265_v17 = vcombine.high %v1154_v11, %v1162_v12  ;;  %v1163_v27 = vld [vmem:[%s4875_s10 + $0x70] sm:$0xff]  ;;  %v3781_v3 = vld [vmem:[%s4877_s12 + $0x80] sm:$0xff]  }
 0x6ce   : > { %1441 = vmatpush1.bf16.msra.mxu0 %v3270_v29  ;;  %v1171_v18 = vld [vmem:[%s4875_s10 + $0xb0] sm:$0xff]  ;;  %v1164_v29 = vld [vmem:[%s4875_s10 + $0x78] sm:$0xff]  ;;  %v3267_v32 = vcombine.high %v1155_v26, %v1163_v27  ;;  %v3266_v33 = vcombine.low %v1155_v26, %v1163_v27 }
 0x6cf   : > { %1442 = vmatprep.subr.bf16.mxu0 %v3255_v34  ;;  %v3269_v24 = vcombine.high %v1156_v28, %v1164_v29  ;;  %v3268_v34 = vcombine.low %v1156_v28, %v1164_v29 }
 0x6d2   : > { %1443 = vmatpush1.bf16.msra.mxu0 %v3254_v36  ;;  %v3751_v36 = vld [vmem:[%s4877_s12 + $0xf8] sm:$0xff]  }
 0x6d3   : > { %1522 = vmatprep.subr.bf16.mxu0 %v3275_v43  ;;  %v3758_v43 = vld [vmem:[%s4877_s12 + $0x68] sm:$0xff]  }
 0x756   : > { %v1123_v19 = vpop.xlane.xlu1 %1122 }
 0x757   : > { %v1124_v20 = vmul.f32 0.03125, %v1123_v19  ;;  %v1179_v19 = vld [vmem:[%s4875_s10 + $0xf0] sm:$0xff] }
 0x758   : > { %v3283_v25 = vcombine.high %v1171_v18, %v1179_v19  ;;  %v3282_v30 = vcombine.low %v1171_v18, %v1179_v19 }
 0x759   : > { %v1125_v21 = vsub.f32 %v4217_v15, %v1124_v20  ;;  %v1172_v20 = vld [vmem:[%s4875_s10 + $0xb8] sm:$0xff] }
 0x75b   : > { %v1126_v22 = vmul.f32 %v1125_v21, %v1125_v21 }
 0x75d   : > { %v1127_v23 = vsel %vm482_vm0, %v1126_v22, 0.0  ;;  %v3262_v22 = vcombine.low %v1153_v9, %v1161_v10  ;;  %v4459_v9 = vld [vmem:[%s4876_s11 + $0x8] sm:$0xff] }
 0x75e   : > { %1128 = vadd.xlane.f32.xlu0 %v1127_v23  ;;  %v3264_v23 = vcombine.low %v1154_v11, %v1162_v12 }
 0x7e7   : > { %v1129_v48 = vpop.xlane.xlu0 %1128 }
 0x7e8   : > { %v1130_v49 = vmul.f32 0.03125, %v1129_v48  ;;  %v3763_v48 = vld [vmem:[%s4877_s12 + $0xe0] sm:$0xff]  }
 0x7ea   : > { %v1131_v50 = vadd.f32 1e-05, %v1130_v49  ;;  %v3764_v49 = vld [vmem:[%s4877_s12 + $0x20] sm:$0xff]  }
 0x7ec   : > { %3896 = vrsqrt.f32 %v1131_v50  ;;  %v3765_v50 = vld [vmem:[%s4877_s12 + $0xa0] sm:$0xff]  }
 0x7f9   : > { %v3897_v51 = vpop.eup %3896 }
 0x7fa   : > { %v1133_v53 = vmul.f32 %v3897_v51, %v1125_v21  ;;  %v1180_v21 = vld [vmem:[%s4875_s10 + $0xf8] sm:$0xff] }
 0x7fb   : > { %v3285_v0 = vcombine.high %v1172_v20, %v1180_v21  ;;  %v3284_v31 = vcombine.low %v1172_v20, %v1180_v21  ;;  %v3766_v51 = vld [vmem:[%s4877_s12 + $0x58] sm:$0xff]  }
 0x7fc   : > { %v1140_v55 = vmul.f32 %v3252_v52, %v1133_v53  ;;  %v3767_v52 = vld [vmem:[%s4877_s12 + $0xd8] sm:$0xff]  }
 0x7fd   : > { %v3768_v53 = vld [vmem:[%s4877_s12 + $0x18] sm:$0xff]  }
 0x7fe   : > { %v1147_v60 = vadd.f32 %v3253_v54, %v1140_v55  ;;  %v3769_v54 = vld [vmem:[%s4877_s12 + $0x98] sm:$0xff]   ;;  %v3770_v55 = vld [vmem:[%s4877_s12 + $0x50] sm:$0xff]  }
 0x800   : > { %v4279_v61 = vpack.c.bf16 %v1147_v60, %v1147_v60  ;;  %v3775_v60 = vld [vmem:[%s4877_s12 + $0xc8] sm:$0xff]  }
 0x802   : > { %3286 = vmatmul.mubr.msk.bf16.vlgmr.msra.gmra.mxu0 %vm482_vm0, %v4279_v61  ;;  %3287 = vmatmul.mubr.msk.bf16.vlgmr.msra.gmra.mxu1 %vm482_vm0, %v4279_v61 }
 0x803   : > { %1523 = vmatpush1.bf16.msra.mxu0 %v3274_v45  ;;  %1564 = vmatpush1.bf16.msra.mxu1 %v3276_v46  ;;  %v3760_v45 = vld [vmem:[%s4877_s12 + $0x28] sm:$0xff]  }
 0x804   : > { %1524 = vmatprep.subr.bf16.mxu0 %v3259_v62  ;;  %1565 = vmatprep.subr.bf16.mxu1 %v3261_v63  ;;  %v3761_v46 = vld [vmem:[%s4877_s12 + $0xa8] sm:$0xff]   ;;  %v3778_v63 = vld [vmem:[%s4877_s12 + $0x40] sm:$0xff]  }
 0x805   : > { %1542 = vmatprep.mubr.bf16.mxu0 %v3976_v42  ;;  %1583 = vmatprep.mubr.bf16.mxu1 %v3976_v42  ;;  %v3777_v62 = vld [vmem:[%s4877_s12 + $0x88] sm:$0xff]  }
 0x807   : > { %1525 = vmatpush1.bf16.msra.mxu0 %v3258_v5  ;;  %1566 = vmatpush1.bf16.msra.mxu1 %v3260_v6  ;;  %v3783_v5 = vld [vmem:[%s4877_s12 + $0x1f8] sm:$0xff]   ;;  %v1185_v6 = vlaneseq }
 0x808   : > { %1604 = vmatprep.subr.bf16.mxu0 %v3279_v8  ;;  %1645 = vmatprep.subr.bf16.mxu1 %v3281_v7 }
 0x809   : > { %v4453_v8 = vshrl.u32 %v1185_v6, 7 }
 0x80a   : > { %3288 = vmatmul.mubr.msk.bf16.vlgmr.msra.gmra.mxu0 %vm482_vm0, %v4279_v61  ;;  %3289 = vmatmul.mubr.msk.bf16.vlgmr.msra.gmra.mxu1 %vm482_vm0, %v4279_v61 }
 0x80b   : > { %1605 = vmatpush1.bf16.msra.mxu0 %v3278_v13  ;;  %1646 = vmatpush1.bf16.msra.mxu1 %v3280_v14  ;;  %v1211_v7 = vsub.s32 6, %v4453_v8  ;;  %v1187_v11 = vsub.s32 0, %v4453_v8  ;;  %v1195_v12 = vsub.s32 2, %v4453_v8  ;;  %v4471_v13 = vld [vmem:[%s4876_s11] sm:$0xff]  ;;  %v1191_v14 = vsub.s32 1, %v4453_v8 }
 0x80c   : > { %1606 = vmatprep.subr.bf16.mxu0 %v3263_v16  ;;  %1647 = vmatprep.subr.bf16.mxu1 %v3265_v17  ;;  %v1199_v16 = vsub.s32 3, %v4453_v8  ;;  %v1207_v29 = vsub.s32 5, %v4453_v8 }
 0x80d   : > { %1624 = vmatprep.mubr.bf16.mxu0 %v3976_v42  ;;  %1665 = vmatprep.mubr.bf16.mxu1 %v3976_v42  ;;  %v4464_v10 = vrot.slane %v4459_v9, %v1211_v7  ;;  %v1188_v17 = vrot.slane %v4471_v13, %v1187_v11  ;;  %v1196_v18 = vrot.slane %v4471_v13, %v1195_v12 }
 0x80e   : > { %v1192_v19 = vrot.slane %v4471_v13, %v1191_v14  ;;  %v1200_v20 = vrot.slane %v4471_v13, %v1199_v16 }
 0x80f   : > { %1607 = vmatpush1.bf16.msra.mxu0 %v3262_v22  ;;  %1648 = vmatpush1.bf16.msra.mxu1 %v3264_v23 }
 0x810   : > { %1686 = vmatprep.subr.bf16.mxu0 %v3283_v25  ;;  %1727 = vmatprep.subr.bf16.mxu1 %v3285_v0 }
 0x812   : > { %3290 = vmatmul.mubr.msk.bf16.vlgmr.msra.gmra.mxu0 %vm482_vm0, %v4279_v61  ;;  %3291 = vmatmul.mubr.msk.bf16.vlgmr.msra.gmra.mxu1 %vm482_vm0, %v4279_v61 }
 0x813   : > { %1687 = vmatpush1.bf16.msra.mxu0 %v3282_v30  ;;  %1728 = vmatpush1.bf16.msra.mxu1 %v3284_v31  ;;  %v1215_v30 = vsub.s32 7, %v4453_v8 }
 0x814   : > { %1688 = vmatprep.subr.bf16.mxu0 %v3267_v32  ;;  %1729 = vmatprep.subr.bf16.mxu1 %v3269_v24 }
 0x815   : > { %1706 = vmatprep.mubr.bf16.mxu0 %v3976_v42  ;;  %1747 = vmatprep.mubr.bf16.mxu1 %v3976_v42  ;;  %v3757_v42 = vld [vmem:[%s4877_s12 + $0xb0] sm:$0xff]  }
 0x817   : > { %1689 = vmatpush1.bf16.msra.mxu0 %v3266_v33  ;;  %1730 = vmatpush1.bf16.msra.mxu1 %v3268_v34 }
 0x818   : > { %3450 = vmatprep.subr.bf16.mxu0 %v3750_v35  ;;  %3472 = vmatprep.subr.bf16.mxu1 %v3751_v36 }
 0x81a   : > { %3292 = vmatmul.mubr.msk.bf16.vlgmr.msra.gmra.mxu0 %vm482_vm0, %v4279_v61  ;;  %3293 = vmatmul.mubr.msk.bf16.vlgmr.msra.gmra.mxu1 %vm482_vm0, %v4279_v61  ;;  %v3776_v61 = vld [vmem:[%s4877_s12 + $0x8] sm:$0xff]  }
 0x81b   : > { %3451 = vmatpush3.bf16.msra.mxu0 %v3752_v37  ;;  %3473 = vmatpush3.bf16.msra.mxu1 %v3753_v38 }
 0x81c   : > { %3452 = vmatprep.subr.bf16.mxu0 %v3754_v39  ;;  %3474 = vmatprep.subr.bf16.mxu1 %v3755_v40  ;;  %v1208_v40 = vrot.slane %v4471_v13, %v1207_v29 }
 0x81f   : > { %3453 = vmatpush3.bf16.msra.mxu0 %v3756_v41  ;;  %3475 = vmatpush3.bf16.msra.mxu1 %v3757_v42  ;;  %v1216_v41 = vrot.slane %v4471_v13, %v1215_v30  ;;  %v3784_v42 = vld [vmem:[%s4877_s12 + $0x138] sm:$0xff]  }
 0x820   : > { %3454 = vmatprep.subr.bf16.mxu0 %v3758_v43  ;;  %3476 = vmatprep.subr.bf16.mxu1 %v3759_v44  ;;  %v3785_v43 = vld [vmem:[%s4877_s12 + $0x1b8] sm:$0xff]  }
 0x823   : > { %3455 = vmatpush3.bf16.msra.mxu0 %v3760_v45  ;;  %3477 = vmatpush3.bf16.msra.mxu1 %v3761_v46 }
 0x824   : > { %3456 = vmatprep.subr.bf16.mxu0 %v3762_v47  ;;  %3478 = vmatprep.subr.bf16.mxu1 %v3763_v48  ;;  %v3786_v48 = vld [vmem:[%s4877_s12 + $0x170] sm:$0xff]  }
 0x827   : > { %3457 = vmatpush3.bf16.msra.mxu0 %v3764_v49  ;;  %3479 = vmatpush3.bf16.msra.mxu1 %v3765_v50  ;;  %v3787_v49 = vld [vmem:[%s4877_s12 + $0x1f0] sm:$0xff]  }
 0x828   : > { %3458 = vmatprep.subr.bf16.mxu0 %v3766_v51  ;;  %3480 = vmatprep.subr.bf16.mxu1 %v3767_v52 }
 0x82b   : > { %3459 = vmatpush3.bf16.msra.mxu0 %v3768_v53  ;;  %3481 = vmatpush3.bf16.msra.mxu1 %v3769_v54  ;;  %v3788_v54 = vld [vmem:[%s4877_s12 + $0x130] sm:$0xff]  }
 0x82c   : > { %3460 = vmatprep.subr.bf16.mxu0 %v3770_v55  ;;  %3482 = vmatprep.subr.bf16.mxu1 %v3771_v56  ;;  %v3789_v55 = vld [vmem:[%s4877_s12 + $0x1b0] sm:$0xff]  }
 0x82f   : > { %3461 = vmatpush3.bf16.msra.mxu0 %v3772_v57  ;;  %3483 = vmatpush3.bf16.msra.mxu1 %v3773_v58  ;;  %v3790_v58 = vld [vmem:[%s4877_s12 + $0x168] sm:$0xff]  }
 0x830   : > { %3462 = vmatprep.subr.bf16.mxu0 %v3774_v59  ;;  %3484 = vmatprep.subr.bf16.mxu1 %v3775_v60  ;;  %v3791_v59 = vld [vmem:[%s4877_s12 + $0x1e8] sm:$0xff]  }
 0x833   : > { %3463 = vmatpush3.bf16.msra.mxu0 %v3776_v61  ;;  %3485 = vmatpush3.bf16.msra.mxu1 %v3777_v62 }
 0x834   : > { %3464 = vmatprep.subr.bf16.mxu0 %v3778_v63  ;;  %3486 = vmatprep.subr.bf16.mxu1 %v3779_v1 }
 0x837   : > { %3465 = vmatpush3.bf16.msra.mxu0 %v3780_v2  ;;  %3487 = vmatpush3.bf16.msra.mxu1 %v3781_v3  ;;  %v3792_v3 = vld [vmem:[%s4877_s12 + $0x128] sm:$0xff]  }
 0x838   : > { %3494 = vmatprep.subr.bf16.mxu0 %v3782_v4  ;;  %3516 = vmatprep.subr.bf16.mxu1 %v3783_v5  ;;  %v3793_v4 = vld [vmem:[%s4877_s12 + $0x1a8] sm:$0xff]  }
 0x8c2   : > { %v1462_v21 = vpop.f32.mrf.mxu0  ;;  %v1503_v22 = vpop.f32.mrf.mxu1 }
 0x8c3   : > { %v1463_v23 = vadd.f32 %v1462_v21, %v1188_v17  ;;  %v1504_v25 = vadd.f32 %v1503_v22, %v1196_v18  ;;  %v3794_v17 = vld [vmem:[%s4877_s12 + $0x160] sm:$0xff]   ;;  %v1203_v21 = vsub.s32 4, %v4453_v8 }
 0x8c4   : > { %v1464_v0 = vpop.f32.mrf.mxu0  ;;  %v1505_v26 = vpop.f32.mrf.mxu1  ;;  %v3795_v18 = vld [vmem:[%s4877_s12 + $0x1e0] sm:$0xff]  }
 0x8c5   : > { %v1465_v27 = vadd.f32 %v1464_v0, %v1192_v19  ;;  %v1506_v28 = vadd.f32 %v1505_v26, %v1200_v20  ;;  %v1756_v31 = vmax.f32 %v1463_v23, 0.0  ;;  %v1758_v32 = vmax.f32 %v1504_v25, 0.0  ;;  %v3796_v22 = vld [vmem:[%s4877_s12 + $0x120] sm:$0xff]   ;;  %v3798_v26 = vld [vmem:[%s4877_s12 + $0x158] sm:$0xff]  }
 0x8c6   : > { %v1466_v24 = vpop.f32.mrf.mxu0  ;;  %v1507_v33 = vpop.f32.mrf.mxu1  ;;  %v3797_v23 = vld [vmem:[%s4877_s12 + $0x1a0] sm:$0xff]  }
 0x8c7   : > { %v1757_v34 = vmax.f32 %v1465_v27, 0.0  ;;  %v1759_v35 = vmax.f32 %v1506_v28, 0.0  ;;  %v1772_v44 = vpack.c.bf16 %v1756_v31, %v1756_v31  ;;  %v1774_v45 = vpack.c.bf16 %v1758_v32, %v1758_v32  ;;  %v3799_v27 = vld [vmem:[%s4877_s12 + $0x1d8] sm:$0xff]  }
 0x8c8   : > { %v1467_v36 = vpop.f32.mrf.mxu0  ;;  %v1508_v37 = vpop.f32.mrf.mxu1  ;;  %v1236_v28 = vrot.slane %v4459_v9, %v1203_v21  ;;  %v3800_v24 = vld [vmem:[%s4877_s12 + $0x118] sm:$0xff]  }
 0x8c9   : > { %v1773_v38 = vpack.c.bf16 %v1757_v34, %v1757_v34  ;;  %v1775_v39 = vpack.c.bf16 %v1759_v35, %v1759_v35  ;;  %v3801_v33 = vld [vmem:[%s4877_s12 + $0x198] sm:$0xff]   ;;  %v3802_v36 = vld [vmem:[%s4877_s12 + $0x150] sm:$0xff]  }
 0x8ca   : > { %v4501_v46 = vpop.f32.mrf.mxu0  ;;  %v4503_v47 = vpop.f32.mrf.mxu1  ;;  %v3803_v37 = vld [vmem:[%s4877_s12 + $0x1d0] sm:$0xff]  }
 0x8cb   : > { %2851 = vmatprep.mubr.bf16.mxu0 %v1773_v38  ;;  %2891 = vmatprep.mubr.bf16.mxu1 %v1775_v39 }
 0x8cc   : > { %v1546_v50 = vpop.f32.mrf.mxu0  ;;  %v1587_v51 = vpop.f32.mrf.mxu1  ;;  %2852 = vmatmul.mubr.bf16.vlgmr.msra.gmra.mxu0 %v1772_v44  ;;  %2892 = vmatmul.mubr.bf16.vlgmr.msra.gmra.mxu1 %v1774_v45  ;;  %v1204_v44 = vrot.slane %v4471_v13, %v1203_v21 }
 0x8cd   : > { %v1547_v52 = vadd.f32 %v1546_v50, %v1208_v40  ;;  %v1588_v53 = vadd.f32 %v1587_v51, %v1216_v41  ;;  %3495 = vmatpush3.bf16.msra.mxu0 %v3784_v42  ;;  %3517 = vmatpush3.bf16.msra.mxu1 %v3785_v43  ;;  %v3804_v42 = vld [vmem:[%s4877_s12 + $0x110] sm:$0xff]   ;;  %v3807_v50 = vld [vmem:[%s4877_s12 + $0x1c8] sm:$0xff]   ;;  %v1224_v51 = vrot.slane %v4459_v9, %v1191_v14 }
 0x8ce   : > { %v1548_v56 = vpop.f32.mrf.mxu0  ;;  %v1589_v57 = vpop.f32.mrf.mxu1  ;;  %3496 = vmatprep.subr.bf16.mxu0 %v3786_v48  ;;  %3518 = vmatprep.subr.bf16.mxu1 %v3787_v49  ;;  %v3805_v43 = vld [vmem:[%s4877_s12 + $0x190] sm:$0xff]   ;;  %v3806_v49 = vld [vmem:[%s4877_s12 + $0x148] sm:$0xff]  }
 0x8cf   : > { %v1761_v60 = vmax.f32 %v1547_v52, 0.0  ;;  %v1763_v61 = vmax.f32 %v1588_v53, 0.0  ;;  %v3808_v53 = vld [vmem:[%s4877_s12 + $0x108] sm:$0xff]   ;;  %v3811_v56 = vld [vmem:[%s4877_s12 + $0x1c0] sm:$0xff]  }
 0x8d0   : > { %v1549_v62 = vpop.f32.mrf.mxu0  ;;  %v1590_v63 = vpop.f32.mrf.mxu1 }
 0x8d1   : > { %v1777_v1 = vpack.c.bf16 %v1761_v60, %v1761_v60  ;;  %v1779_v2 = vpack.c.bf16 %v1763_v61, %v1763_v61  ;;  %3497 = vmatpush3.bf16.msra.mxu0 %v3788_v54  ;;  %3519 = vmatpush3.bf16.msra.mxu1 %v3789_v55  ;;  %v3809_v54 = vld [vmem:[%s4877_s12 + $0x188] sm:$0xff]   ;;  %v1545_v55 = vadd.f32 %v4501_v46, %v1204_v44  ;;  %v3812_v46 = vld [vmem:[%s4877_s12 + $0x100] sm:$0xff]   ;;  %v3814_v61 = vld [vmem:[%s4877_s12 + $0x278] sm:$0xff]  }
 0x8d2   : > { %v4529_v5 = vpop.f32.mrf.mxu0  ;;  %v4531_v6 = vpop.f32.mrf.mxu1  ;;  %3498 = vmatprep.subr.bf16.mxu0 %v3790_v58  ;;  %3520 = vmatprep.subr.bf16.mxu1 %v3791_v59  ;;  %v3815_v62 = vld [vmem:[%s4877_s12 + $0x2f8] sm:$0xff]   ;;  %v1220_v44 = vrot.slane %v4459_v9, %v1187_v11  ;;  %v1240_v11 = vrot.slane %v4459_v9, %v1207_v29  ;;  %v3842_v29 = vld [vmem:[%s4877_s12 + $0x240] sm:$0xff]  }
 0x8d3   : > { %2931 = vmatprep.mubr.bf16.mxu0 %v1777_v1  ;;  %2971 = vmatprep.mubr.bf16.mxu1 %v1779_v2  ;;  %v1760_v59 = vmax.f32 %v1545_v55, 0.0  ;;  %v3816_v2 = vld [vmem:[%s4877_s12 + $0x238] sm:$0xff]  }
 0x8d4   : > { %v1628_v19 = vpop.f32.mrf.mxu0  ;;  %v1669_v20 = vpop.f32.mrf.mxu1 }
 0x8d5   : > { %3499 = vmatpush3.bf16.msra.mxu0 %v3792_v3  ;;  %3521 = vmatpush3.bf16.msra.mxu1 %v3793_v4  ;;  %v1629_v57 = vadd.f32 %v1628_v19, %v1224_v51  ;;  %v1776_v3 = vpack.c.bf16 %v1760_v59, %v1760_v59  ;;  %v3818_v19 = vld [vmem:[%s4877_s12 + $0x270] sm:$0xff]   ;;  %v3840_v51 = vld [vmem:[%s4877_s12 + $0x208] sm:$0xff]  }
 0x8d6   : > { %v1630_v25 = vpop.f32.mrf.mxu0  ;;  %v1671_v0 = vpop.f32.mrf.mxu1  ;;  %3500 = vmatprep.subr.bf16.mxu0 %v3794_v17  ;;  %3522 = vmatprep.subr.bf16.mxu1 %v3795_v18  ;;  %v3817_v17 = vld [vmem:[%s4877_s12 + $0x2b8] sm:$0xff]  }
 0x8d7   : > { %v1765_v63 = vmax.f32 %v1629_v57, 0.0  ;;  %v3822_v25 = vld [vmem:[%s4877_s12 + $0x268] sm:$0xff]  }
 0x8d8   : > { %v1631_v31 = vpop.f32.mrf.mxu0  ;;  %v1672_v32 = vpop.f32.mrf.mxu1  ;;  %v3823_v0 = vld [vmem:[%s4877_s12 + $0x2e8] sm:$0xff]  }
 0x8d9   : > { %3501 = vmatpush3.bf16.msra.mxu0 %v3796_v22  ;;  %3523 = vmatpush3.bf16.msra.mxu1 %v3797_v23  ;;  %v1781_v18 = vpack.c.bf16 %v1765_v63, %v1765_v63  ;;  %v3820_v22 = vld [vmem:[%s4877_s12 + $0x230] sm:$0xff]   ;;  %v3827_v31 = vld [vmem:[%s4877_s12 + $0x2e0] sm:$0xff]   ;;  %v3855_v63 = vld [vmem:[%s4877_s12 + $0x3e8] sm:$0xff]  }
 0x8da   : > { %v1708_v34 = vpop.f32.mrf.mxu0  ;;  %v1749_v35 = vpop.f32.mrf.mxu1  ;;  %3502 = vmatprep.subr.bf16.mxu0 %v3798_v26  ;;  %3524 = vmatprep.subr.bf16.mxu1 %v3799_v27  ;;  %v3821_v23 = vld [vmem:[%s4877_s12 + $0x2b0] sm:$0xff]   ;;  %v3824_v26 = vld [vmem:[%s4877_s12 + $0x228] sm:$0xff]   ;;  %v3828_v32 = vld [vmem:[%s4877_s12 + $0x220] sm:$0xff]  }
 0x8db   : > { %v4565_v38 = vadd.f32 %v1708_v34, %v1236_v28  ;;  %v4568_v39 = vadd.f32 %v1749_v35, %v4464_v10  ;;  %v1212_v10 = vrot.slane %v4471_v13, %v1211_v7  ;;  %v1232_v7 = vrot.slane %v4459_v9, %v1199_v16  ;;  %v3810_v16 = vld [vmem:[%s4877_s12 + $0x140] sm:$0xff]   ;;  %v3825_v27 = vld [vmem:[%s4877_s12 + $0x2a8] sm:$0xff]   ;;  %v3831_v34 = vld [vmem:[%s4877_s12 + $0x2d8] sm:$0xff]  }
 0x8dc   : > { %v4570_v40 = vpop.f32.mrf.mxu0  ;;  %v4572_v41 = vpop.f32.mrf.mxu1  ;;  %v3826_v28 = vld [vmem:[%s4877_s12 + $0x260] sm:$0xff]   ;;  %v3832_v35 = vld [vmem:[%s4877_s12 + $0x218] sm:$0xff]  }
 0x8dd   : > { %3503 = vmatpush3.bf16.msra.mxu0 %v3800_v24  ;;  %3525 = vmatpush3.bf16.msra.mxu1 %v3801_v33  ;;  %v1586_v14 = vadd.f32 %v4503_v47, %v1212_v10  ;;  %v1670_v58 = vadd.f32 %v1669_v20, %v1232_v7  ;;  %v3813_v47 = vld [vmem:[%s4877_s12 + $0x180] sm:$0xff]   ;;  %v3819_v20 = vld [vmem:[%s4877_s12 + $0x2f0] sm:$0xff]   ;;  %v3830_v33 = vld [vmem:[%s4877_s12 + $0x258] sm:$0xff]  }
 0x8de   : > { %v1712_v45 = vpop.f32.mrf.mxu0  ;;  %v1753_v48 = vpop.f32.mrf.mxu1  ;;  %3504 = vmatprep.subr.bf16.mxu0 %v3802_v36  ;;  %3526 = vmatprep.subr.bf16.mxu1 %v3803_v37  ;;  %v3829_v24 = vld [vmem:[%s4877_s12 + $0x2a0] sm:$0xff]   ;;  %v3833_v36 = vld [vmem:[%s4877_s12 + $0x298] sm:$0xff]   ;;  %v3834_v37 = vld [vmem:[%s4877_s12 + $0x250] sm:$0xff]  }
 0x8df   : > { %v1762_v60 = vmax.f32 %v1586_v14, 0.0  ;;  %v1767_v1 = vmax.f32 %v1670_v58, 0.0  ;;  %v3837_v10 = vld [vmem:[%s4877_s12 + $0x290] sm:$0xff]   ;;  %v3838_v45 = vld [vmem:[%s4877_s12 + $0x248] sm:$0xff]   ;;  %v1228_v48 = vrot.slane %v4459_v9, %v1195_v12  ;;  %v1627_v12 = vadd.f32 %v4529_v5, %v1220_v44  ;;  %v3848_v14 = vld [vmem:[%s4877_s12 + $0x338] sm:$0xff]  }
 0x8e0   : > { %v1713_v13 = vpop.f32.mrf.mxu0  ;;  %v1754_v52 = vpop.f32.mrf.mxu1  ;;  %v3841_v7 = vld [vmem:[%s4877_s12 + $0x288] sm:$0xff]   ;;  %v3850_v58 = vld [vmem:[%s4877_s12 + $0x370] sm:$0xff]  }
 0x8e1   : > { %3505 = vmatpush3.bf16.msra.mxu0 %v3804_v42  ;;  %3527 = vmatpush3.bf16.msra.mxu1 %v3805_v43  ;;  %v1778_v4 = vpack.c.bf16 %v1762_v60, %v1762_v60  ;;  %v1783_v21 = vpack.c.bf16 %v1767_v1, %v1767_v1  ;;  %v3835_v42 = vld [vmem:[%s4877_s12 + $0x2d0] sm:$0xff]   ;;  %v1668_v8 = vadd.f32 %v4531_v6, %v1228_v48  ;;  %v3844_v13 = vld [vmem:[%s4877_s12 + $0x200] sm:$0xff]   ;;  %v1764_v52 = vmax.f32 %v1627_v12, 0.0  ;;  %v3856_v1 = vld [vmem:[%s4877_s12 + $0x328] sm:$0xff]  }
 0x8e2   : > { %3506 = vmatprep.subr.bf16.mxu0 %v3806_v49  ;;  %3528 = vmatprep.subr.bf16.mxu1 %v3807_v50  ;;  %v3836_v43 = vld [vmem:[%s4877_s12 + $0x210] sm:$0xff]   ;;  %v3839_v49 = vld [vmem:[%s4877_s12 + $0x2c8] sm:$0xff]   ;;  %v1248_v50 = vrot.slane %v4459_v9, %v1215_v30  ;;  %v3843_v9 = vld [vmem:[%s4877_s12 + $0x2c0] sm:$0xff]   ;;  %v1711_v30 = vadd.f32 %v4570_v40, %v1240_v11 }
 0x8e3   : > { %v3845_v6 = vld [vmem:[%s4877_s12 + $0x280] sm:$0xff]   ;;  %v3847_v40 = vld [vmem:[%s4877_s12 + $0x3f8] sm:$0xff]   ;;  %v3852_v60 = vld [vmem:[%s4877_s12 + $0x330] sm:$0xff]  }
 0x8e4   : > { %v1752_v5 = vadd.f32 %v4572_v41, %v1248_v50  ;;  %v1769_v41 = vmax.f32 %v1711_v30, 0.0 }
 0x8e5   : > { %3507 = vmatpush3.bf16.msra.mxu0 %v3808_v53  ;;  %3529 = vmatpush3.bf16.msra.mxu1 %v3809_v54  ;;  %v3846_v53 = vld [vmem:[%s4877_s12 + $0x378] sm:$0xff]   ;;  %v1766_v54 = vmax.f32 %v1668_v8, 0.0 }
 0x8e6   : > { %3508 = vmatprep.subr.bf16.mxu0 %v3810_v16  ;;  %3530 = vmatprep.subr.bf16.mxu1 %v3811_v56  ;;  %v1771_v55 = vmax.f32 %v1752_v5, 0.0  ;;  %v1780_v16 = vpack.c.bf16 %v1764_v52, %v1764_v52  ;;  %v3849_v56 = vld [vmem:[%s4877_s12 + $0x3b8] sm:$0xff]  }
 0x8e7   : > { %v1782_v57 = vpack.c.bf16 %v1766_v54, %v1766_v54 }
 0x8e8   : > { %v1787_v59 = vpack.c.bf16 %v1771_v55, %v1771_v55 }
 0x8e9   : > { %3509 = vmatpush3.bf16.msra.mxu0 %v3812_v46  ;;  %3531 = vmatpush3.bf16.msra.mxu1 %v3813_v47  ;;  %v1785_v46 = vpack.c.bf16 %v1769_v41, %v1769_v41  ;;  %v3851_v47 = vld [vmem:[%s4877_s12 + $0x3f0] sm:$0xff]  }
 0x8ea   : > { %3538 = vmatprep.subr.bf16.mxu0 %v3814_v61  ;;  %3560 = vmatprep.subr.bf16.mxu1 %v3815_v62  ;;  %v3853_v61 = vld [vmem:[%s4877_s12 + $0x3b0] sm:$0xff]   ;;  %v3854_v62 = vld [vmem:[%s4877_s12 + $0x368] sm:$0xff]  }
 0x8ec   : > { %2932 = vmatmul.mubr.bf16.vlgmr.msra.gmra.mxu0 %v1776_v3  ;;  %2972 = vmatmul.mubr.bf16.vlgmr.msra.gmra.mxu1 %v1778_v4  ;;  %v3858_v3 = vld [vmem:[%s4877_s12 + $0x360] sm:$0xff]  }
 0x8ed   : > { %3539 = vmatpush3.bf16.msra.mxu0 %v3816_v2  ;;  %3011 = vmatprep.mubr.bf16.mxu0 %v1781_v18  ;;  %v3857_v2 = vld [vmem:[%s4877_s12 + $0x3a8] sm:$0xff]   ;;  %v3859_v4 = vld [vmem:[%s4877_s12 + $0x3e0] sm:$0xff]  }
 0x8ee   : > { %3561 = vmatpush3.bf16.msra.mxu1 %v3817_v17  ;;  %3051 = vmatprep.mubr.bf16.mxu1 %v1783_v21  ;;  %v3860_v17 = vld [vmem:[%s4877_s12 + $0x320] sm:$0xff]   ;;  %v3864_v21 = vld [vmem:[%s4877_s12 + $0x318] sm:$0xff]  }
 0x8ef   : > { %3540 = vmatprep.subr.bf16.mxu0 %v3818_v19  ;;  %3562 = vmatprep.subr.bf16.mxu1 %v3819_v20  ;;  %v3861_v18 = vld [vmem:[%s4877_s12 + $0x3a0] sm:$0xff]   ;;  %v3862_v19 = vld [vmem:[%s4877_s12 + $0x358] sm:$0xff]  }
 0x8f0   : > { %v3863_v20 = vld [vmem:[%s4877_s12 + $0x3d8] sm:$0xff]  }
 0x8f1   : > { %3541 = vmatpush3.bf16.msra.mxu0 %v3820_v22  ;;  %v3865_v22 = vld [vmem:[%s4877_s12 + $0x398] sm:$0xff]  }
 0x8f2   : > { %3563 = vmatpush3.bf16.msra.mxu1 %v3821_v23  ;;  %3542 = vmatprep.subr.bf16.mxu0 %v3822_v25  ;;  %v3866_v23 = vld [vmem:[%s4877_s12 + $0x350] sm:$0xff]  }
 0x8f3   : > { %3564 = vmatprep.subr.bf16.mxu1 %v3823_v0  ;;  %v3867_v25 = vld [vmem:[%s4877_s12 + $0x3d0] sm:$0xff]  }
 0x8f4   : > { %v3868_v0 = vld [vmem:[%s4877_s12 + $0x310] sm:$0xff]  }
 0x8f5   : > { %3543 = vmatpush3.bf16.msra.mxu0 %v3824_v26  ;;  %v3869_v26 = vld [vmem:[%s4877_s12 + $0x390] sm:$0xff]  }
 0x8f6   : > { %3565 = vmatpush3.bf16.msra.mxu1 %v3825_v27  ;;  %3544 = vmatprep.subr.bf16.mxu0 %v3826_v28  ;;  %v3870_v27 = vld [vmem:[%s4877_s12 + $0x348] sm:$0xff]  }
 0x8f7   : > { %3566 = vmatprep.subr.bf16.mxu1 %v3827_v31  ;;  %v3871_v28 = vld [vmem:[%s4877_s12 + $0x3c8] sm:$0xff]  }
 0x8f8   : > { %v3872_v31 = vld [vmem:[%s4877_s12 + $0x308] sm:$0xff]  }
 0x8f9   : > { %3545 = vmatpush3.bf16.msra.mxu0 %v3828_v32  ;;  %v3873_v32 = vld [vmem:[%s4877_s12 + $0x388] sm:$0xff]  }
 0x8fa   : > { %3567 = vmatpush3.bf16.msra.mxu1 %v3829_v24  ;;  %3546 = vmatprep.subr.bf16.mxu0 %v3830_v33  ;;  %v3874_v24 = vld [vmem:[%s4877_s12 + $0x340] sm:$0xff]  }
 0x8fb   : > { %3568 = vmatprep.subr.bf16.mxu1 %v3831_v34  ;;  %v3875_v33 = vld [vmem:[%s4877_s12 + $0x3c0] sm:$0xff]  }
 0x8fc   : > { %v3876_v34 = vld [vmem:[%s4877_s12 + $0x300] sm:$0xff]  }
 0x8fd   : > { %3547 = vmatpush3.bf16.msra.mxu0 %v3832_v35  ;;  %v1768_v35 = vmax.f32 %v4565_v38, 0.0  ;;  %v3294_v38 = vld [vmem:[%s4878_s13] ss:$0 sm:$0xff] }
 0x8fe   : > { %3569 = vmatpush3.bf16.msra.mxu1 %v3833_v36  ;;  %3548 = vmatprep.subr.bf16.mxu0 %v3834_v37  ;;  %v3877_v36 = vld [vmem:[%s4877_s12 + $0x380] sm:$0xff]   ;;  %v1770_v37 = vmax.f32 %v4568_v39, 0.0 }
 0x8ff   : > { %3570 = vmatprep.subr.bf16.mxu1 %v3835_v42  ;;  %v1784_v42 = vpack.c.bf16 %v1768_v35, %v1768_v35 }
 0x901   : > { %3549 = vmatpush3.bf16.msra.mxu0 %v3836_v43  ;;  %v1786_v43 = vpack.c.bf16 %v1770_v37, %v1770_v37 }
 0x902   : > { %3571 = vmatpush3.bf16.msra.mxu1 %v3837_v10  ;;  %3550 = vmatprep.subr.bf16.mxu0 %v3838_v45 }
 0x903   : > { %3572 = vmatprep.subr.bf16.mxu1 %v3839_v49 }
 0x905   : > { %3551 = vmatpush3.bf16.msra.mxu0 %v3840_v51 }
 0x906   : > { %3573 = vmatpush3.bf16.msra.mxu1 %v3841_v7  ;;  %3552 = vmatprep.subr.bf16.mxu0 %v3842_v29 }
 0x907   : > { %3574 = vmatprep.subr.bf16.mxu1 %v3843_v9 }
 0x909   : > { %3553 = vmatpush3.bf16.msra.mxu0 %v3844_v13 }
 0x90a   : > { %3575 = vmatpush3.bf16.msra.mxu1 %v3845_v6  ;;  %3582 = vmatprep.subr.bf16.mxu0 %v3846_v53 }
 0x90b   : > { %3604 = vmatprep.subr.bf16.mxu1 %v3847_v40 }
 0x90c   : > { %3012 = vmatmul.mubr.bf16.vlgmr.msra.gmra.mxu0 %v1780_v16 }
 0x90d   : > { %3052 = vmatmul.mubr.bf16.vlgmr.msra.gmra.mxu1 %v1782_v57  ;;  %3583 = vmatpush3.bf16.msra.mxu0 %v3848_v14 }
 0x90e   : > { %3091 = vmatprep.mubr.bf16.mxu0 %v1785_v46  ;;  %3605 = vmatpush3.bf16.msra.mxu1 %v3849_v56 }
 0x90f   : > { %3131 = vmatprep.mubr.bf16.mxu1 %v1787_v59  ;;  %3584 = vmatprep.subr.bf16.mxu0 %v3850_v58 }
 0x910   : > { %3606 = vmatprep.subr.bf16.mxu1 %v3851_v47 }
 0x911   : > { %3585 = vmatpush3.bf16.msra.mxu0 %v3852_v60 }
 0x912   : > { %3607 = vmatpush3.bf16.msra.mxu1 %v3853_v61  ;;  %3586 = vmatprep.subr.bf16.mxu0 %v3854_v62 }
 0x913   : > { %3608 = vmatprep.subr.bf16.mxu1 %v3855_v63 }
 0x915   : > { %3587 = vmatpush3.bf16.msra.mxu0 %v3856_v1 }
 0x916   : > { %3609 = vmatpush3.bf16.msra.mxu1 %v3857_v2  ;;  %3588 = vmatprep.subr.bf16.mxu0 %v3858_v3 }
 0x917   : > { %3610 = vmatprep.subr.bf16.mxu1 %v3859_v4 }
 0x919   : > { %3589 = vmatpush3.bf16.msra.mxu0 %v3860_v17 }
 0x91a   : > { %3611 = vmatpush3.bf16.msra.mxu1 %v3861_v18  ;;  %3590 = vmatprep.subr.bf16.mxu0 %v3862_v19 }
 0x91b   : > { %3612 = vmatprep.subr.bf16.mxu1 %v3863_v20 }
 0x91d   : > { %3591 = vmatpush3.bf16.msra.mxu0 %v3864_v21 }
 0x91e   : > { %3613 = vmatpush3.bf16.msra.mxu1 %v3865_v22  ;;  %3592 = vmatprep.subr.bf16.mxu0 %v3866_v23 }
 0x91f   : > { %3614 = vmatprep.subr.bf16.mxu1 %v3867_v25 }
 0x921   : > { %3593 = vmatpush3.bf16.msra.mxu0 %v3868_v0 }
 0x922   : > { %3615 = vmatpush3.bf16.msra.mxu1 %v3869_v26  ;;  %3594 = vmatprep.subr.bf16.mxu0 %v3870_v27 }
 0x923   : > { %3616 = vmatprep.subr.bf16.mxu1 %v3871_v28 }
 0x925   : > { %3595 = vmatpush3.bf16.msra.mxu0 %v3872_v31 }
 0x926   : > { %3617 = vmatpush3.bf16.msra.mxu1 %v3873_v32  ;;  %3596 = vmatprep.subr.bf16.mxu0 %v3874_v24 }
 0x927   : > { %3618 = vmatprep.subr.bf16.mxu1 %v3875_v33 }
 0x929   : > { %3597 = vmatpush3.bf16.msra.mxu0 %v3876_v34 }
 0x92a   : > { %3619 = vmatpush3.bf16.msra.mxu1 %v3877_v36 }
 0x92c   : > { %3092 = vmatmul.mubr.bf16.vlgmr.msra.gmra.mxu0 %v1784_v42 }
 0x92d   : > { %3132 = vmatmul.mubr.bf16.vlgmr.msra.gmra.mxu1 %v1786_v43 }
 0x98c   : > { %v3466_v44 = vpop.f32.mrf.mxu0  ;;  %v3488_v10 = vpop.f32.mrf.mxu1 }
 0x98e   : > { %v3467_v45 = vpop.f32.mrf.mxu0  ;;  %v3489_v48 = vpop.f32.mrf.mxu1 }
 0x98f   : > { %v3468_v49 = vadd.f32 %v3467_v45, %v3466_v44  ;;  %v3490_v11 = vadd.f32 %v3489_v48, %v3488_v10 }
 0x990   : > { %v3469_v50 = vpop.f32.mrf.mxu0  ;;  %v3491_v51 = vpop.f32.mrf.mxu1 }
 0x991   : > { %v2854_v39 = vadd.f32 %v3468_v49, %v3294_v38 }
 0x992   : > { %v3470_v12 = vpop.f32.mrf.mxu0  ;;  %v3492_v7 = vpop.f32.mrf.mxu1 }
 0x993   : > { %v2894_v29 = vadd.f32 %v3490_v11, %v2854_v39 }
 0x9ac   : > { %v3510_v8 = vpop.f32.mrf.mxu0  ;;  %v3532_v9 = vpop.f32.mrf.mxu1 }
 0x9ae   : > { %v3511_v30 = vpop.f32.mrf.mxu0  ;;  %v3533_v5 = vpop.f32.mrf.mxu1 }
 0x9af   : > { %v3512_v58 = vadd.f32 %v3511_v30, %v3510_v8  ;;  %v3534_v47 = vadd.f32 %v3533_v5, %v3532_v9 }
 0x9b0   : > { %v3513_v13 = vpop.f32.mrf.mxu0  ;;  %v3535_v52 = vpop.f32.mrf.mxu1 }
 0x9b1   : > { %v2934_v46 = vadd.f32 %v3512_v58, %v2894_v29 }
 0x9b2   : > { %v3514_v6 = vpop.f32.mrf.mxu0  ;;  %v3536_v53 = vpop.f32.mrf.mxu1 }
 0x9b3   : > { %v2974_v60 = vadd.f32 %v3534_v47, %v2934_v46 }
 0x9cc   : > { %v3554_v54 = vpop.f32.mrf.mxu0 }
 0x9cd   : > { %v3576_v40 = vpop.f32.mrf.mxu1 }
 0x9ce   : > { %v3555_v41 = vpop.f32.mrf.mxu0 }
 0x9cf   : > { %v3577_v55 = vpop.f32.mrf.mxu1  ;;  %v3556_v59 = vadd.f32 %v3555_v41, %v3554_v54 }
 0x9d0   : > { %v3557_v14 = vpop.f32.mrf.mxu0  ;;  %v3578_v63 = vadd.f32 %v3577_v55, %v3576_v40 }
 0x9d1   : > { %v3579_v16 = vpop.f32.mrf.mxu1  ;;  %v3014_v61 = vadd.f32 %v3556_v59, %v2974_v60 }
 0x9d2   : > { %v3558_v56 = vpop.f32.mrf.mxu0 }
 0x9d3   : > { %v3580_v57 = vpop.f32.mrf.mxu1  ;;  %v3054_v3 = vadd.f32 %v3578_v63, %v3014_v61 }
 0x9ec   : > { %v3598_v62 = vpop.f32.mrf.mxu0 }
 0x9ed   : > { %v3620_v1 = vpop.f32.mrf.mxu1 }
 0x9ee   : > { %v3599_v2 = vpop.f32.mrf.mxu0 }
 0x9ef   : > { %v3600_v4 = vadd.f32 %v3599_v2, %v3598_v62  ;;  %v3621_v17 = vpop.f32.mrf.mxu1 }
 0x9f0   : > { %v3601_v18 = vpop.f32.mrf.mxu0  ;;  %v3622_v20 = vadd.f32 %v3621_v17, %v3620_v1 }
 0x9f1   : > { %v3094_v19 = vadd.f32 %v3600_v4, %v3054_v3  ;;  %v3623_v21 = vpop.f32.mrf.mxu1 }
 0x9f2   : > { %v3602_v22 = vpop.f32.mrf.mxu0 }
 0x9f3   : > { %v3134_v23 = vadd.f32 %v3622_v20, %v3094_v19  ;;  %v3624_v25 = vpop.f32.mrf.mxu1 }
 0x9f5   : > { %v3139_v0 = vadd.f32 %v3134_v23, %v4217_v15 }
 0x9f7   : > { %vm3140_vm6 = vcmp.ne.f32.partialorder %v3139_v0, %v3139_v0 }
 0x9f8   : > { %v3141_v26 = vsel %vm3140_vm6, 0.0, %v3139_v0 }
 0x9f9   : > { %v3423_v27 = vclamps-f32 %v3141_v26, 3.4028235e+38 }
 0x9fb   : > { %3144 = vst.msk [vmem:[%s469_s27] sm:$0xff] %vm482_vm0, %v3423_v27 }
 0x9fc   : > { %3911 = shalt.err (!%p3908_p3)
}
 0x9fd   : > { %s3912_s28 = scalar_lea.hbm %s3157_s25, 128  ;;  %s3916_s27 = scalar_lea.hbm %s4879_s14, 256 }
 0x9fe   : > { %p3913_p4 = scmp.ne.s32.totalorder %s3157_s25, %s3912_s28  ;;  %p3917_p9 = scmp.lt.s32.totalorder %s3157_s25, %s4879_s14 }
 0x9ff   : > { %p3918_p10 = scmp.lt.s32.totalorder %s3916_s27, %s3912_s28 }
 0xa00   : > { %p3914_p7 = pnand %p3913_p4, %p4091_p5 }
 0xa01   : > { %p3919_p11 = por %p3918_p10, %p3917_p9 }
 0xa02   : > { %p3915_p8 = pneg %p3914_p7 }
 0xa04   : > { %p3920_p12 = pnand %p3919_p11, %p3915_p8 }
 0xa06   : > { %3923 = shalt.err (!%p3920_p12)
}
 0xa07   : > { %3690 = dma.vmem_to_hbm [thread:$0]  (%p4091_p5), %s3160_s0, 128, %s3157_s25, %s3146_s20  }
 0xa08 PF: > { %p3696_p13 = scmp.ge.s32.totalorder %s3958_s16, 2  ;;  %s3171_s3 = sand.u32 1, %s3946_s29  }
 0xa09   : > { %s3172_s21 = scalar_lea.sflag [#allocation3], %s3171_s3 }
 0xa0a   : > { %p3693_p0 = pnand %p3696_p13, %p4095_p6 }
 0xa0c   : > { %p3694_p1 = pneg %p3693_p0 }
 0xa0e   : > { %3941 = dma.done.wait (%p3694_p1), %s3172_s21, 128  }
 0xa0f   : > { %3943 = vsyncadd (%p3694_p1), %s3172_s21, 4294967168  ;;  %p24_p2 = scmp.ge.s32.totalorder %s4078_s19, 4   ;;  %s4892_s29 = smov %s3950_s30 }
 0xa10   : > { %s4893_s30 = smov %s3954_s15  ;;  %s4894_s15 = smov %s4089_s22 }
 0xa11   : > { %s4895_s16 = smov %s4078_s19  ;;  %26 = sbr.rel (!%p24_p2) target bundleno = 9 (0x9), region = 114 }
 0xa16   :  { %3177 = vsyncpa [#allocation3], 1 }
 0xa17   :  { %3179 = vsyncpa [#allocation3 + $0x1], 1 }

</bundles_post_ra>
